<compile_context>
chip_gen: v6e
topology: v6e:2x2x1
jax: 0.10.0
libtpu: 0.0.40
codegen_flags: <defaults>
</compile_context>

<pallas_src>
import math
import numpy as np
import jax
import jax.numpy as jnp
from jax.experimental import pallas as pl
from jax.experimental.pallas import tpu as pltpu


# ----------------------------------------------------------------------------
# Static helpers (host side, numpy)
# ----------------------------------------------------------------------------
def _conv_out(hw):
    # k=3, stride=2, pad=1
    return (hw - 1) // 2 + 1


def _build_tap_gather(Hl, Wl):
    """0/1 gather matrices (9, Ho*Wo, Hl*Wl); tap order t = kh*3+kw.

    G[t, p, q] = 1 iff input position q is the tap-t source of output p
    (out-of-bounds taps stay all-zero, implementing the zero padding)."""
    Ho, Wo = _conv_out(Hl), _conv_out(Wl)
    G = np.zeros((9, Ho * Wo, Hl * Wl), np.float32)
    for kh in range(3):
        for kw in range(3):
            t = kh * 3 + kw
            for ho in range(Ho):
                for wo in range(Wo):
                    r = 2 * ho - 1 + kh
                    c = 2 * wo - 1 + kw
                    if 0 <= r < Hl and 0 <= c < Wl:
                        G[t, ho * Wo + wo, r * Wl + c] = 1.0
    return G, Ho, Wo


def _combine_layer(ld_p, gd_p, first):
    """Pack ld+gd conv layer params into one 2h-channel layer.

    Returns W (9, Cin_comb, 2h) with W[t, ci, co] = w_comb[co, ci, kh, kw],
    plus bias / gamma / beta as (1, 2h)."""
    w_ld, b_ld, g_ld, be_ld = ld_p
    w_gd, b_gd, g_gd, be_gd = gd_p
    h = w_ld.shape[0]
    if first:
        w_comb = jnp.concatenate([w_ld, w_gd], axis=0)               # (2h,Cin,3,3)
    else:
        top = jnp.concatenate([w_ld, jnp.zeros_like(w_ld)], axis=1)  # (h,2h,3,3)
        bot = jnp.concatenate([jnp.zeros_like(w_gd), w_gd], axis=1)
        w_comb = jnp.concatenate([top, bot], axis=0)                 # (2h,2h,3,3)
    cin_c = w_comb.shape[1]
    W = jnp.transpose(w_comb, (2, 3, 1, 0)).reshape(9, cin_c, 2 * h)
    b = jnp.concatenate([b_ld, b_gd]).reshape(1, 2 * h)
    gam = jnp.concatenate([g_ld, g_gd]).reshape(1, 2 * h)
    bet = jnp.concatenate([be_ld, be_gd]).reshape(1, 2 * h)
    return W, b, gam, bet


# ----------------------------------------------------------------------------
# Fused conv-stack kernel: all layers, both paths, one (b, t) element per step.
# ----------------------------------------------------------------------------
def make_disc_kernel(meta, n_groups, eps=1e-5):
    # meta: tuple of (Pl, Po, Cl, Co) per layer (all static)
    def kernel(*refs):
        x_ref, oh_ref, oht_ref = refs[0], refs[1], refs[2]
        out_ref = refs[-1]
        oh = oh_ref[...]                                   # (C2, G)
        oht = oht_ref[...]                                 # (G, C2)
        a = x_ref[0]                                       # (P1, Cin) channels-last
        for li, (Pl, Po, Cl, Co) in enumerate(meta):
            g_ref, w_ref, b_ref, gam_ref, bet_ref = refs[3 + 5 * li: 8 + 5 * li]
            # ---- conv as 9 per-tap gather matmuls --------------------------
            y = jnp.zeros((Po, Co), jnp.float32)
            for t in range(9):
                u = jnp.dot(g_ref[t], a, preferred_element_type=jnp.float32)   # (Po, Cl)
                y = y + jnp.dot(u, w_ref[t], preferred_element_type=jnp.float32)
            y = y + b_ref[...]                             # (1, Co) broadcast
            # ---- GroupNorm (8 groups over packed 2h channels) --------------
            gs = Co // n_groups
            cnt = jnp.float32(Po * gs)
            s1 = jnp.sum(y, axis=0, keepdims=True)         # (1, Co)
            s2 = jnp.sum(y * y, axis=0, keepdims=True)
            gmean = jnp.dot(s1, oh, preferred_element_type=jnp.float32) / cnt   # (1, G)
            gvar = jnp.maximum(
                jnp.dot(s2, oh, preferred_element_type=jnp.float32) / cnt
                - gmean * gmean, 0.0)
            mean_c = jnp.dot(gmean, oht, preferred_element_type=jnp.float32)    # (1, Co)
            var_c = jnp.dot(gvar, oht, preferred_element_type=jnp.float32)
            inv = jax.lax.rsqrt(var_c + eps)
            y = (y - mean_c) * inv * gam_ref[...] + bet_ref[...]
            # ---- ReLU ------------------------------------------------------
            a = jnp.maximum(y, 0.0)
        out_ref[0] = a                                     # (Pf, 2h)
    return kernel


# ----------------------------------------------------------------------------
# Linear(F -> 1) + Sigmoid per frame, then mean over frames (VPU + lane reduce)
# ----------------------------------------------------------------------------
def make_head_kernel(T):
    def head_kernel(f_ref, w_ref, b_ref, o_ref):
        # f_ref: (B, T, F), w_ref: (1, F), b_ref: (1, 1), o_ref: (B, 1)
        w = w_ref[...]
        acc = jnp.zeros(o_ref.shape, jnp.float32)
        for t in range(T):                                 # T small & static
            y = jnp.sum(f_ref[:, t, :] * w, axis=-1, keepdims=True) + b_ref[...]
            acc = acc + jax.nn.sigmoid(y)
        o_ref[...] = acc / jnp.float32(T)
    return head_kernel


# ----------------------------------------------------------------------------
# Forward
# ----------------------------------------------------------------------------
def discriminator_context_forward(x, params):
    # x: (B, T, C, H, W) float32
    B, T, C, H, W = x.shape
    n = len(params["ld"])
    hidden = params["ld"][0][0].shape[0]
    C2 = 2 * hidden
    n_groups = 8                       # 4 groups per path, paths packed
    BT = B * T

    # ---- static gather matrices + layer meta --------------------------------
    g_mats, meta = [], []
    Hl, Wl = H, W
    for li in range(n):
        G, Ho, Wo = _build_tap_gather(Hl, Wl)
        cl = C if li == 0 else C2
        meta.append((Hl * Wl, Ho * Wo, cl, C2))
        g_mats.append(jnp.asarray(G))
        Hl, Wl = Ho, Wo
    Pf = Hl * Wl

    # ---- packed per-layer weights -------------------------------------------
    layer_inputs = []
    for li in range(n):
        Wt, b, gam, bet = _combine_layer(params["ld"][li], params["gd"][li],
                                         first=(li == 0))
        layer_inputs += [g_mats[li], Wt, b, gam, bet]

    # group one-hot matrices (constant inputs, VMEM-resident across the grid)
    gsz = C2 // n_groups
    oh_np = (np.arange(C2)[:, None] // gsz ==
             np.arange(n_groups)[None, :]).astype(np.float32)
    onehot = jnp.asarray(oh_np)                      # (C2, G)
    onehot_t = jnp.asarray(oh_np.T)                  # (G, C2)

    # input: one channels-last (H*W, C) slab per (b, t) element
    x_cl = x.reshape(BT, C, H * W).transpose(0, 2, 1)        # (BT, H*W, C)

    in_specs = [
        pl.BlockSpec((1, H * W, C), lambda i: (i, 0, 0)),
        pl.BlockSpec((C2, n_groups), lambda i: (0, 0)),
        pl.BlockSpec((n_groups, C2), lambda i: (0, 0)),
    ]
    for (Pl, Po, Cl, Co) in meta:
        in_specs += [
            pl.BlockSpec((9, Po, Pl), lambda i: (0, 0, 0)),
            pl.BlockSpec((9, Cl, Co), lambda i: (0, 0, 0)),
            pl.BlockSpec((1, Co), lambda i: (0, 0)),
            pl.BlockSpec((1, Co), lambda i: (0, 0)),
            pl.BlockSpec((1, Co), lambda i: (0, 0)),
        ]

    feats_pc = pl.pallas_call(
        make_disc_kernel(tuple(meta), n_groups),
        out_shape=jax.ShapeDtypeStruct((BT, Pf, C2), jnp.float32),
        grid=(BT,),
        in_specs=in_specs,
        out_specs=pl.BlockSpec((1, Pf, C2), lambda i: (i, 0, 0)),
        compiler_params=pltpu.CompilerParams(dimension_semantics=("parallel",)),
    )(x_cl, onehot, onehot_t, *layer_inputs)

    # PyTorch flattens NCHW => channel-major; transpose tiny (BT, Pf, C2) slab.
    feats_cp = feats_pc.transpose(0, 2, 1)                    # (BT, C2, Pf)
    ld_flat = feats_cp[:, :hidden, :].reshape(BT, hidden * Pf)
    gd_flat = feats_cp[:, hidden:, :].reshape(BT, hidden * Pf)
    total = jnp.concatenate([ld_flat, gd_flat], axis=-1)      # (BT, F)
    F = total.shape[-1]
    feats = total.reshape(B, T, F)

    w_lin, b_lin = params["linear"]                           # (F, 1), (1,)
    out = pl.pallas_call(
        make_head_kernel(T),
        out_shape=jax.ShapeDtypeStruct((B, 1), jnp.float32),
        grid=(1,),
        in_specs=[
            pl.BlockSpec((B, T, F), lambda i: (0, 0, 0)),
            pl.BlockSpec((1, F), lambda i: (0, 0)),
            pl.BlockSpec((1, 1), lambda i: (0, 0)),
        ],
        out_specs=pl.BlockSpec((B, 1), lambda i: (0, 0)),
    )(feats, w_lin.reshape(1, F), b_lin.reshape(1, 1))

    output = out[:, 0]                                        # (B,)
    gd_feats = gd_flat.reshape(B, T, hidden * Pf)
    ld_feats = ld_flat.reshape(B, T, hidden * Pf)
    return output, gd_feats, ld_feats


# ----------------------------------------------------------------------------
# Pure-JAX reference (same math, via lax.conv) for a correctness cross-check
# ----------------------------------------------------------------------------
def _ref_conv_gn_relu(x, w, b, gamma, beta):
    y = jax.lax.conv_general_dilated(
        x, w, window_strides=(2, 2), padding=((1, 1), (1, 1)),
        dimension_numbers=("NCHW", "OIHW", "NCHW"))
    y = y + b[None, :, None, None]
    N, Cf, Hh, Ww = y.shape
    g = 4
    yr = y.reshape(N, g, Cf // g, Hh, Ww)
    mean = yr.mean(axis=(2, 3, 4), keepdims=True)
    var = yr.var(axis=(2, 3, 4), keepdims=True)
    yn = ((yr - mean) * jax.lax.rsqrt(var + 1e-5)).reshape(N, Cf, Hh, Ww)
    yn = yn * gamma[None, :, None, None] + beta[None, :, None, None]
    return jnp.maximum(yn, 0.0)


def _ref_forward(x, params):
    B, T = x.shape[0], x.shape[1]
    w_lin, b_lin = params["linear"]
    outs, gds, lds = [], [], []
    for i in range(T):
        xi = x[:, i]
        ld = xi
        for p in params["ld"]:
            ld = _ref_conv_gn_relu(ld, *p)
        ld = ld.reshape(B, -1)
        gd = xi
        for p in params["gd"]:
            gd = _ref_conv_gn_relu(gd, *p)
        gd = gd.reshape(B, -1)
        tot = jnp.concatenate([ld, gd], axis=-1)
        outs.append(jax.nn.sigmoid(tot @ w_lin + b_lin))
        gds.append(gd)
        lds.append(ld)
    out = jnp.concatenate(outs, axis=1).mean(axis=1)
    return out, jnp.stack(gds, axis=1), jnp.stack(lds, axis=1)


# ----------------------------------------------------------------------------
# Deterministic parameter init (mirrors module __init__ shapes)
# ----------------------------------------------------------------------------
def init_params(key, height, width, in_channels, hidden):
    assert hidden % 4 == 0
    n = int(math.log2(height))

    def conv_block(k, cin, cout):
        k1, k2 = jax.random.split(k)
        fan_in = cin * 9
        w = jax.random.normal(k1, (cout, cin, 3, 3), jnp.float32) / math.sqrt(fan_in)
        b = jax.random.normal(k2, (cout,), jnp.float32) * 0.01
        gamma = jnp.ones((cout,), jnp.float32)
        beta = jnp.zeros((cout,), jnp.float32)
        return (w, b, gamma, beta)

    keys = jax.random.split(key, 2 * n + 1)
    gd = [conv_block(keys[0], in_channels, hidden)]
    gd += [conv_block(keys[i], hidden, hidden) for i in range(1, n)]
    ld = [conv_block(keys[n], in_channels, hidden)]
    ld += [conv_block(keys[n + i], hidden, hidden) for i in range(1, n)]

    lin_in = int(math.ceil(float(width) / 2 ** n) * hidden * 2)
    k1, k2 = jax.random.split(keys[2 * n])
    w_lin = jax.random.normal(k1, (lin_in, 1), jnp.float32) / math.sqrt(lin_in)
    b_lin = jax.random.normal(k2, (1,), jnp.float32) * 0.01
    return {"gd": gd, "ld": ld, "linear": (w_lin, b_lin)}


if __name__ == "__main__":
    # height=width=16 => n=log2(16)=4 stride-2 convs collapse spatial to 1x1.
    B, T, C, H, W = 2, 2, 4, 16, 16
    HIDDEN = 8  # must be divisible by 4 (GroupNorm groups)

    key = jax.random.PRNGKey(0)
    kx, kp = jax.random.split(key)
    x = jax.random.normal(kx, (B, T, C, H, W), jnp.float32)
    params = init_params(kp, H, W, C, HIDDEN)

    fwd = jax.jit(discriminator_context_forward)
    out, gd_feats, ld_feats = fwd(x, params)
    jax.block_until_ready((out, gd_feats, ld_feats))

    assert out.shape == (B,)
    assert gd_feats.shape == (B, T, HIDDEN * 1 * 1)
    assert ld_feats.shape == (B, T, HIDDEN * 1 * 1)

    # cross-check against the pure-JAX/XLA reference of the same module
    ref_out, ref_gd, ref_ld = _ref_forward(x, params)
    np.testing.assert_allclose(np.asarray(out), np.asarray(ref_out),
                               rtol=5e-3, atol=5e-3)
    np.testing.assert_allclose(np.asarray(gd_feats), np.asarray(ref_gd),
                               rtol=5e-3, atol=5e-3)
    np.testing.assert_allclose(np.asarray(ld_feats), np.asarray(ref_ld),
                               rtol=5e-3, atol=5e-3)
    print("KERNEL_OK")
</pallas_src>

<mosaic_0001>
module attributes {stable_mosaic.version = 11 : i64} {
  func.func @head_kernel(%arg0: i32, %arg1: memref<2x2x16xf32, #tpu.memory_space<vmem>>, %arg2: memref<1x16xf32, #tpu.memory_space<vmem>>, %arg3: memref<1x1xf32, #tpu.memory_space<vmem>>, %arg4: memref<2x1xf32, #tpu.memory_space<vmem>>) attributes {dimension_semantics = [#tpu.dimension_semantics<arbitrary>], iteration_bounds = array<i64: 1>, scalar_prefetch = 0 : i64, scratch_operands = 0 : i64, tpu.core_type = #tpu.core_type<tc>, window_params = [{pipeline_mode = #tpu.pipeline_mode<synchronous>, transform_indices = @transform_0, window_bounds = array<i64: 2, 2, 16>}, {pipeline_mode = #tpu.pipeline_mode<synchronous>, transform_indices = @transform_1, window_bounds = array<i64: 1, 16>}, {pipeline_mode = #tpu.pipeline_mode<synchronous>, transform_indices = @transform_2, window_bounds = array<i64: 1, 1>}, {pipeline_mode = #tpu.pipeline_mode<synchronous>, transform_indices = @transform_3, window_bounds = array<i64: 2, 1>}]} {
    %c0 = arith.constant 0 : index
    %c0_0 = arith.constant 0 : index
    %0 = vector.load %arg2[%c0, %c0_0] : memref<1x16xf32, #tpu.memory_space<vmem>>, vector<1x16xf32>
    %cst = arith.constant 0.000000e+00 : f32
    %1 = vector.broadcast %cst : f32 to vector<2x1xf32>
    %c0_1 = arith.constant 0 : index
    %c0_2 = arith.constant 0 : index
    %c0_3 = arith.constant 0 : index
    %2 = vector.load %arg1[%c0_1, %c0_2, %c0_3] : memref<2x2x16xf32, #tpu.memory_space<vmem>>, vector<2x1x16xf32>
    %3 = vector.shape_cast %2 : vector<2x1x16xf32> to vector<2x16xf32>
    %4 = vector.broadcast %0 : vector<1x16xf32> to vector<2x16xf32>
    %5 = arith.mulf %3, %4 : vector<2x16xf32>
    %cst_4 = arith.constant dense<0.000000e+00> : vector<2xf32>
    %6 = vector.multi_reduction <add>, %5, %cst_4 [1] : vector<2x16xf32> to vector<2xf32>
    %7 = vector.shape_cast %6 : vector<2xf32> to vector<2x1xf32>
    %c0_5 = arith.constant 0 : index
    %c0_6 = arith.constant 0 : index
    %8 = vector.load %arg3[%c0_5, %c0_6] : memref<1x1xf32, #tpu.memory_space<vmem>>, vector<1x1xf32>
    %9 = vector.broadcast %8 : vector<1x1xf32> to vector<2x1xf32>
    %10 = arith.addf %7, %9 : vector<2x1xf32>
    %11 = arith.negf %10 : vector<2x1xf32>
    %12 = math.exp %11 : vector<2x1xf32>
    %cst_7 = arith.constant 1.000000e+00 : f32
    %13 = vector.broadcast %cst_7 : f32 to vector<2x1xf32>
    %14 = arith.addf %13, %12 : vector<2x1xf32>
    %15 = arith.divf %13, %14 : vector<2x1xf32>
    %16 = arith.addf %1, %15 : vector<2x1xf32>
    %c0_8 = arith.constant 0 : index
    %c1 = arith.constant 1 : index
    %c0_9 = arith.constant 0 : index
    %17 = vector.load %arg1[%c0_8, %c1, %c0_9] : memref<2x2x16xf32, #tpu.memory_space<vmem>>, vector<2x1x16xf32>
    %18 = vector.shape_cast %17 : vector<2x1x16xf32> to vector<2x16xf32>
    %19 = vector.broadcast %0 : vector<1x16xf32> to vector<2x16xf32>
    %20 = arith.mulf %18, %19 : vector<2x16xf32>
    %cst_10 = arith.constant dense<0.000000e+00> : vector<2xf32>
    %21 = vector.multi_reduction <add>, %20, %cst_10 [1] : vector<2x16xf32> to vector<2xf32>
    %22 = vector.shape_cast %21 : vector<2xf32> to vector<2x1xf32>
    %c0_11 = arith.constant 0 : index
    %c0_12 = arith.constant 0 : index
    %23 = vector.load %arg3[%c0_11, %c0_12] : memref<1x1xf32, #tpu.memory_space<vmem>>, vector<1x1xf32>
    %24 = vector.broadcast %23 : vector<1x1xf32> to vector<2x1xf32>
    %25 = arith.addf %22, %24 : vector<2x1xf32>
    %26 = arith.negf %25 : vector<2x1xf32>
    %27 = math.exp %26 : vector<2x1xf32>
    %cst_13 = arith.constant 1.000000e+00 : f32
    %28 = vector.broadcast %cst_13 : f32 to vector<2x1xf32>
    %29 = arith.addf %28, %27 : vector<2x1xf32>
    %30 = arith.divf %28, %29 : vector<2x1xf32>
    %31 = arith.addf %16, %30 : vector<2x1xf32>
    %cst_14 = arith.constant 2.000000e+00 : f32
    %32 = vector.broadcast %cst_14 : f32 to vector<2x1xf32>
    %33 = arith.divf %31, %32 : vector<2x1xf32>
    %c0_15 = arith.constant 0 : index
    %c0_16 = arith.constant 0 : index
    %34 = vector.load %arg4[%c0_15, %c0_16] : memref<2x1xf32, #tpu.memory_space<vmem>>, vector<2x1xf32>
    tpu.vector_store %arg4[%c0_15, %c0_16], %33 {strides = array<i32>} : memref<2x1xf32, #tpu.memory_space<vmem>>, vector<2x1xf32>,
    return
  }
  func.func @transform_0(%arg0: i32) -> (i32, i32, i32) {
    %c0_i32 = arith.constant 0 : i32
    %c0_i32_0 = arith.constant 0 : i32
    %c0_i32_1 = arith.constant 0 : i32
    %c0_i32_2 = arith.constant 0 : i32
    return %c0_i32, %c0_i32_0, %c0_i32_1 : i32, i32, i32
  }
  func.func @transform_1(%arg0: i32) -> (i32, i32) {
    %c0_i32 = arith.constant 0 : i32
    %c0_i32_0 = arith.constant 0 : i32
    %c0_i32_1 = arith.constant 0 : i32
    return %c0_i32, %c0_i32_0 : i32, i32
  }
  func.func @transform_2(%arg0: i32) -> (i32, i32) {
    %c0_i32 = arith.constant 0 : i32
    %c0_i32_0 = arith.constant 0 : i32
    %c0_i32_1 = arith.constant 0 : i32
    return %c0_i32, %c0_i32_0 : i32, i32
  }
  func.func @transform_3(%arg0: i32) -> (i32, i32) {
    %c0_i32 = arith.constant 0 : i32
    %c0_i32_0 = arith.constant 0 : i32
    %c0_i32_1 = arith.constant 0 : i32
    return %c0_i32, %c0_i32_0 : i32, i32
  }
}

module attributes {stable_mosaic.version = 11 : i64} {
  func.func @kernel(%arg0: i32, %arg1: memref<1x256x4xf32, #tpu.memory_space<vmem>>, %arg2: memref<16x8xf32, #tpu.memory_space<vmem>>, %arg3: memref<8x16xf32, #tpu.memory_space<vmem>>, %arg4: memref<9x64x256xf32, #tpu.memory_space<vmem>>, %arg5: memref<9x4x16xf32, #tpu.memory_space<vmem>>, %arg6: memref<1x16xf32, #tpu.memory_space<vmem>>, %arg7: memref<1x16xf32, #tpu.memory_space<vmem>>, %arg8: memref<1x16xf32, #tpu.memory_space<vmem>>, %arg9: memref<9x16x64xf32, #tpu.memory_space<vmem>>, %arg10: memref<9x16x16xf32, #tpu.memory_space<vmem>>, %arg11: memref<1x16xf32, #tpu.memory_space<vmem>>, %arg12: memref<1x16xf32, #tpu.memory_space<vmem>>, %arg13: memref<1x16xf32, #tpu.memory_space<vmem>>, %arg14: memref<9x4x16xf32, #tpu.memory_space<vmem>>, %arg15: memref<9x16x16xf32, #tpu.memory_space<vmem>>, %arg16: memref<1x16xf32, #tpu.memory_space<vmem>>, %arg17: memref<1x16xf32, #tpu.memory_space<vmem>>, %arg18: memref<1x16xf32, #tpu.memory_space<vmem>>, %arg19: memref<9x1x4xf32, #tpu.memory_space<vmem>>, %arg20: memref<9x16x16xf32, #tpu.memory_space<vmem>>, %arg21: memref<1x16xf32, #tpu.memory_space<vmem>>, %arg22: memref<1x16xf32, #tpu.memory_space<vmem>>, %arg23: memref<1x16xf32, #tpu.memory_space<vmem>>, %arg24: memref<1x1x16xf32, #tpu.memory_space<vmem>>) attributes {dimension_semantics = [#tpu.dimension_semantics<parallel>], iteration_bounds = array<i64: 4>, scalar_prefetch = 0 : i64, scratch_operands = 0 : i64, tpu.core_type = #tpu.core_type<tc>, window_params = [{transform_indices = @transform_0, window_bounds = array<i64: 1, 256, 4>}, {pipeline_mode = #tpu.pipeline_mode<synchronous>, transform_indices = @transform_1, window_bounds = array<i64: 16, 8>}, {pipeline_mode = #tpu.pipeline_mode<synchronous>, transform_indices = @transform_2, window_bounds = array<i64: 8, 16>}, {pipeline_mode = #tpu.pipeline_mode<synchronous>, transform_indices = @transform_3, window_bounds = array<i64: 9, 64, 256>}, {pipeline_mode = #tpu.pipeline_mode<synchronous>, transform_indices = @transform_4, window_bounds = array<i64: 9, 4, 16>}, {pipeline_mode = #tpu.pipeline_mode<synchronous>, transform_indices = @transform_5, window_bounds = array<i64: 1, 16>}, {pipeline_mode = #tpu.pipeline_mode<synchronous>, transform_indices = @transform_6, window_bounds = array<i64: 1, 16>}, {pipeline_mode = #tpu.pipeline_mode<synchronous>, transform_indices = @transform_7, window_bounds = array<i64: 1, 16>}, {pipeline_mode = #tpu.pipeline_mode<synchronous>, transform_indices = @transform_8, window_bounds = array<i64: 9, 16, 64>}, {pipeline_mode = #tpu.pipeline_mode<synchronous>, transform_indices = @transform_9, window_bounds = array<i64: 9, 16, 16>}, {pipeline_mode = #tpu.pipeline_mode<synchronous>, transform_indices = @transform_10, window_bounds = array<i64: 1, 16>}, {pipeline_mode = #tpu.pipeline_mode<synchronous>, transform_indices = @transform_11, window_bounds = array<i64: 1, 16>}, {pipeline_mode = #tpu.pipeline_mode<synchronous>, transform_indices = @transform_12, window_bounds = array<i64: 1, 16>}, {pipeline_mode = #tpu.pipeline_mode<synchronous>, transform_indices = @transform_13, window_bounds = array<i64: 9, 4, 16>}, {pipeline_mode = #tpu.pipeline_mode<synchronous>, transform_indices = @transform_14, window_bounds = array<i64: 9, 16, 16>}, {pipeline_mode = #tpu.pipeline_mode<synchronous>, transform_indices = @transform_15, window_bounds = array<i64: 1, 16>}, {pipeline_mode = #tpu.pipeline_mode<synchronous>, transform_indices = @transform_16, window_bounds = array<i64: 1, 16>}, {pipeline_mode = #tpu.pipeline_mode<synchronous>, transform_indices = @transform_17, window_bounds = array<i64: 1, 16>}, {pipeline_mode = #tpu.pipeline_mode<synchronous>, transform_indices = @transform_18, window_bounds = array<i64: 9, 1, 4>}, {pipeline_mode = #tpu.pipeline_mode<synchronous>, transform_indices = @transform_19, window_bounds = array<i64: 9, 16, 16>}, {pipeline_mode = #tpu.pipeline_mode<synchronous>, transform_indices = @transform_20, window_bounds = array<i64: 1, 16>}, {pipeline_mode = #tpu.pipeline_mode<synchronous>, transform_indices = @transform_21, window_bounds = array<i64: 1, 16>}, {pipeline_mode = #tpu.pipeline_mode<synchronous>, transform_indices = @transform_22, window_bounds = array<i64: 1, 16>}, {transform_indices = @transform_23, window_bounds = array<i64: 1, 1, 16>}]} {
    %c0 = arith.constant 0 : index
    %c0_0 = arith.constant 0 : index
    %0 = vector.load %arg2[%c0, %c0_0] : memref<16x8xf32, #tpu.memory_space<vmem>>, vector<16x8xf32>
    %c0_1 = arith.constant 0 : index
    %c0_2 = arith.constant 0 : index
    %1 = vector.load %arg3[%c0_1, %c0_2] : memref<8x16xf32, #tpu.memory_space<vmem>>, vector<8x16xf32>
    %c0_3 = arith.constant 0 : index
    %c0_4 = arith.constant 0 : index
    %c0_5 = arith.constant 0 : index
    %2 = vector.load %arg1[%c0_3, %c0_4, %c0_5] : memref<1x256x4xf32, #tpu.memory_space<vmem>>, vector<1x256x4xf32>
    %3 = vector.shape_cast %2 : vector<1x256x4xf32> to vector<256x4xf32>
    %cst = arith.constant 0.000000e+00 : f32
    %4 = vector.broadcast %cst : f32 to vector<64x16xf32>
    %c0_6 = arith.constant 0 : index
    %c0_7 = arith.constant 0 : index
    %c0_8 = arith.constant 0 : index
    %5 = vector.load %arg4[%c0_6, %c0_7, %c0_8] : memref<9x64x256xf32, #tpu.memory_space<vmem>>, vector<1x64x256xf32>
    %6 = vector.shape_cast %5 : vector<1x64x256xf32> to vector<64x256xf32>
    %cst_9 = arith.constant dense<0.000000e+00> : vector<64x4xf32>
    %7 = tpu.matmul %6, %3, %cst_9 {dimension_numbers = #tpu.dot_dimension_numbers<[1], [0], [0], [1], [0, 0, 1, 1], [], []>} : vector<64x256xf32>, vector<256x4xf32>, vector<64x4xf32> -> vector<64x4xf32>
    %c0_10 = arith.constant 0 : index
    %c0_11 = arith.constant 0 : index
    %c0_12 = arith.constant 0 : index
    %8 = vector.load %arg5[%c0_10, %c0_11, %c0_12] : memref<9x4x16xf32, #tpu.memory_space<vmem>>, vector<1x4x16xf32>
    %9 = vector.shape_cast %8 : vector<1x4x16xf32> to vector<4x16xf32>
    %cst_13 = arith.constant dense<0.000000e+00> : vector<64x16xf32>
    %10 = tpu.matmul %7, %9, %cst_13 {dimension_numbers = #tpu.dot_dimension_numbers<[1], [0], [0], [1], [0, 0, 1, 1], [], []>} : vector<64x4xf32>, vector<4x16xf32>, vector<64x16xf32> -> vector<64x16xf32>
    %11 = arith.addf %4, %10 : vector<64x16xf32>
    %c1 = arith.constant 1 : index
    %c0_14 = arith.constant 0 : index
    %c0_15 = arith.constant 0 : index
    %12 = vector.load %arg4[%c1, %c0_14, %c0_15] : memref<9x64x256xf32, #tpu.memory_space<vmem>>, vector<1x64x256xf32>
    %13 = vector.shape_cast %12 : vector<1x64x256xf32> to vector<64x256xf32>
    %cst_16 = arith.constant dense<0.000000e+00> : vector<64x4xf32>
    %14 = tpu.matmul %13, %3, %cst_16 {dimension_numbers = #tpu.dot_dimension_numbers<[1], [0], [0], [1], [0, 0, 1, 1], [], []>} : vector<64x256xf32>, vector<256x4xf32>, vector<64x4xf32> -> vector<64x4xf32>
    %c1_17 = arith.constant 1 : index
    %c0_18 = arith.constant 0 : index
    %c0_19 = arith.constant 0 : index
    %15 = vector.load %arg5[%c1_17, %c0_18, %c0_19] : memref<9x4x16xf32, #tpu.memory_space<vmem>>, vector<1x4x16xf32>
    %16 = vector.shape_cast %15 : vector<1x4x16xf32> to vector<4x16xf32>
    %cst_20 = arith.constant dense<0.000000e+00> : vector<64x16xf32>
    %17 = tpu.matmul %14, %16, %cst_20 {dimension_numbers = #tpu.dot_dimension_numbers<[1], [0], [0], [1], [0, 0, 1, 1], [], []>} : vector<64x4xf32>, vector<4x16xf32>, vector<64x16xf32> -> vector<64x16xf32>
    %18 = arith.addf %11, %17 : vector<64x16xf32>
    %c2 = arith.constant 2 : index
    %c0_21 = arith.constant 0 : index
    %c0_22 = arith.constant 0 : index
    %19 = vector.load %arg4[%c2, %c0_21, %c0_22] : memref<9x64x256xf32, #tpu.memory_space<vmem>>, vector<1x64x256xf32>
    %20 = vector.shape_cast %19 : vector<1x64x256xf32> to vector<64x256xf32>
    %cst_23 = arith.constant dense<0.000000e+00> : vector<64x4xf32>
    %21 = tpu.matmul %20, %3, %cst_23 {dimension_numbers = #tpu.dot_dimension_numbers<[1], [0], [0], [1], [0, 0, 1, 1], [], []>} : vector<64x256xf32>, vector<256x4xf32>, vector<64x4xf32> -> vector<64x4xf32>
    %c2_24 = arith.constant 2 : index
    %c0_25 = arith.constant 0 : index
    %c0_26 = arith.constant 0 : index
    %22 = vector.load %arg5[%c2_24, %c0_25, %c0_26] : memref<9x4x16xf32, #tpu.memory_space<vmem>>, vector<1x4x16xf32>
    %23 = vector.shape_cast %22 : vector<1x4x16xf32> to vector<4x16xf32>
    %cst_27 = arith.constant dense<0.000000e+00> : vector<64x16xf32>
    %24 = tpu.matmul %21, %23, %cst_27 {dimension_numbers = #tpu.dot_dimension_numbers<[1], [0], [0], [1], [0, 0, 1, 1], [], []>} : vector<64x4xf32>, vector<4x16xf32>, vector<64x16xf32> -> vector<64x16xf32>
    %25 = arith.addf %18, %24 : vector<64x16xf32>
    %c3 = arith.constant 3 : index
    %c0_28 = arith.constant 0 : index
    %c0_29 = arith.constant 0 : index
    %26 = vector.load %arg4[%c3, %c0_28, %c0_29] : memref<9x64x256xf32, #tpu.memory_space<vmem>>, vector<1x64x256xf32>
    %27 = vector.shape_cast %26 : vector<1x64x256xf32> to vector<64x256xf32>
    %cst_30 = arith.constant dense<0.000000e+00> : vector<64x4xf32>
    %28 = tpu.matmul %27, %3, %cst_30 {dimension_numbers = #tpu.dot_dimension_numbers<[1], [0], [0], [1], [0, 0, 1, 1], [], []>} : vector<64x256xf32>, vector<256x4xf32>, vector<64x4xf32> -> vector<64x4xf32>
    %c3_31 = arith.constant 3 : index
    %c0_32 = arith.constant 0 : index
    %c0_33 = arith.constant 0 : index
    %29 = vector.load %arg5[%c3_31, %c0_32, %c0_33] : memref<9x4x16xf32, #tpu.memory_space<vmem>>, vector<1x4x16xf32>
    %30 = vector.shape_cast %29 : vector<1x4x16xf32> to vector<4x16xf32>
    %cst_34 = arith.constant dense<0.000000e+00> : vector<64x16xf32>
    %31 = tpu.matmul %28, %30, %cst_34 {dimension_numbers = #tpu.dot_dimension_numbers<[1], [0], [0], [1], [0, 0, 1, 1], [], []>} : vector<64x4xf32>, vector<4x16xf32>, vector<64x16xf32> -> vector<64x16xf32>
    %32 = arith.addf %25, %31 : vector<64x16xf32>
    %c4 = arith.constant 4 : index
    %c0_35 = arith.constant 0 : index
    %c0_36 = arith.constant 0 : index
    %33 = vector.load %arg4[%c4, %c0_35, %c0_36] : memref<9x64x256xf32, #tpu.memory_space<vmem>>, vector<1x64x256xf32>
    %34 = vector.shape_cast %33 : vector<1x64x256xf32> to vector<64x256xf32>
    %cst_37 = arith.constant dense<0.000000e+00> : vector<64x4xf32>
    %35 = tpu.matmul %34, %3, %cst_37 {dimension_numbers = #tpu.dot_dimension_numbers<[1], [0], [0], [1], [0, 0, 1, 1], [], []>} : vector<64x256xf32>, vector<256x4xf32>, vector<64x4xf32> -> vector<64x4xf32>
    %c4_38 = arith.constant 4 : index
    %c0_39 = arith.constant 0 : index
    %c0_40 = arith.constant 0 : index
    %36 = vector.load %arg5[%c4_38, %c0_39, %c0_40] : memref<9x4x16xf32, #tpu.memory_space<vmem>>, vector<1x4x16xf32>
    %37 = vector.shape_cast %36 : vector<1x4x16xf32> to vector<4x16xf32>
    %cst_41 = arith.constant dense<0.000000e+00> : vector<64x16xf32>
    %38 = tpu.matmul %35, %37, %cst_41 {dimension_numbers = #tpu.dot_dimension_numbers<[1], [0], [0], [1], [0, 0, 1, 1], [], []>} : vector<64x4xf32>, vector<4x16xf32>, vector<64x16xf32> -> vector<64x16xf32>
    %39 = arith.addf %32, %38 : vector<64x16xf32>
    %c5 = arith.constant 5 : index
    %c0_42 = arith.constant 0 : index
    %c0_43 = arith.constant 0 : index
    %40 = vector.load %arg4[%c5, %c0_42, %c0_43] : memref<9x64x256xf32, #tpu.memory_space<vmem>>, vector<1x64x256xf32>
    %41 = vector.shape_cast %40 : vector<1x64x256xf32> to vector<64x256xf32>
    %cst_44 = arith.constant dense<0.000000e+00> : vector<64x4xf32>
    %42 = tpu.matmul %41, %3, %cst_44 {dimension_numbers = #tpu.dot_dimension_numbers<[1], [0], [0], [1], [0, 0, 1, 1], [], []>} : vector<64x256xf32>, vector<256x4xf32>, vector<64x4xf32> -> vector<64x4xf32>
    %c5_45 = arith.constant 5 : index
    %c0_46 = arith.constant 0 : index
    %c0_47 = arith.constant 0 : index
    %43 = vector.load %arg5[%c5_45, %c0_46, %c0_47] : memref<9x4x16xf32, #tpu.memory_space<vmem>>, vector<1x4x16xf32>
    %44 = vector.shape_cast %43 : vector<1x4x16xf32> to vector<4x16xf32>
    %cst_48 = arith.constant dense<0.000000e+00> : vector<64x16xf32>
    %45 = tpu.matmul %42, %44, %cst_48 {dimension_numbers = #tpu.dot_dimension_numbers<[1], [0], [0], [1], [0, 0, 1, 1], [], []>} : vector<64x4xf32>, vector<4x16xf32>, vector<64x16xf32> -> vector<64x16xf32>
    %46 = arith.addf %39, %45 : vector<64x16xf32>
    %c6 = arith.constant 6 : index
    %c0_49 = arith.constant 0 : index
    %c0_50 = arith.constant 0 : index
    %47 = vector.load %arg4[%c6, %c0_49, %c0_50] : memref<9x64x256xf32, #tpu.memory_space<vmem>>, vector<1x64x256xf32>
    %48 = vector.shape_cast %47 : vector<1x64x256xf32> to vector<64x256xf32>
    %cst_51 = arith.constant dense<0.000000e+00> : vector<64x4xf32>
    %49 = tpu.matmul %48, %3, %cst_51 {dimension_numbers = #tpu.dot_dimension_numbers<[1], [0], [0], [1], [0, 0, 1, 1], [], []>} : vector<64x256xf32>, vector<256x4xf32>, vector<64x4xf32> -> vector<64x4xf32>
    %c6_52 = arith.constant 6 : index
    %c0_53 = arith.constant 0 : index
    %c0_54 = arith.constant 0 : index
    %50 = vector.load %arg5[%c6_52, %c0_53, %c0_54] : memref<9x4x16xf32, #tpu.memory_space<vmem>>, vector<1x4x16xf32>
    %51 = vector.shape_cast %50 : vector<1x4x16xf32> to vector<4x16xf32>
    %cst_55 = arith.constant dense<0.000000e+00> : vector<64x16xf32>
    %52 = tpu.matmul %49, %51, %cst_55 {dimension_numbers = #tpu.dot_dimension_numbers<[1], [0], [0], [1], [0, 0, 1, 1], [], []>} : vector<64x4xf32>, vector<4x16xf32>, vector<64x16xf32> -> vector<64x16xf32>
    %53 = arith.addf %46, %52 : vector<64x16xf32>
    %c7 = arith.constant 7 : index
    %c0_56 = arith.constant 0 : index
    %c0_57 = arith.constant 0 : index
    %54 = vector.load %arg4[%c7, %c0_56, %c0_57] : memref<9x64x256xf32, #tpu.memory_space<vmem>>, vector<1x64x256xf32>
    %55 = vector.shape_cast %54 : vector<1x64x256xf32> to vector<64x256xf32>
    %cst_58 = arith.constant dense<0.000000e+00> : vector<64x4xf32>
    %56 = tpu.matmul %55, %3, %cst_58 {dimension_numbers = #tpu.dot_dimension_numbers<[1], [0], [0], [1], [0, 0, 1, 1], [], []>} : vector<64x256xf32>, vector<256x4xf32>, vector<64x4xf32> -> vector<64x4xf32>
    %c7_59 = arith.constant 7 : index
    %c0_60 = arith.constant 0 : index
    %c0_61 = arith.constant 0 : index
    %57 = vector.load %arg5[%c7_59, %c0_60, %c0_61] : memref<9x4x16xf32, #tpu.memory_space<vmem>>, vector<1x4x16xf32>
    %58 = vector.shape_cast %57 : vector<1x4x16xf32> to vector<4x16xf32>
    %cst_62 = arith.constant dense<0.000000e+00> : vector<64x16xf32>
    %59 = tpu.matmul %56, %58, %cst_62 {dimension_numbers = #tpu.dot_dimension_numbers<[1], [0], [0], [1], [0, 0, 1, 1], [], []>} : vector<64x4xf32>, vector<4x16xf32>, vector<64x16xf32> -> vector<64x16xf32>
    %60 = arith.addf %53, %59 : vector<64x16xf32>
    %c8 = arith.constant 8 : index
    %c0_63 = arith.constant 0 : index
    %c0_64 = arith.constant 0 : index
    %61 = vector.load %arg4[%c8, %c0_63, %c0_64] : memref<9x64x256xf32, #tpu.memory_space<vmem>>, vector<1x64x256xf32>
    %62 = vector.shape_cast %61 : vector<1x64x256xf32> to vector<64x256xf32>
    %cst_65 = arith.constant dense<0.000000e+00> : vector<64x4xf32>
    %63 = tpu.matmul %62, %3, %cst_65 {dimension_numbers = #tpu.dot_dimension_numbers<[1], [0], [0], [1], [0, 0, 1, 1], [], []>} : vector<64x256xf32>, vector<256x4xf32>, vector<64x4xf32> -> vector<64x4xf32>
    %c8_66 = arith.constant 8 : index
    %c0_67 = arith.constant 0 : index
    %c0_68 = arith.constant 0 : index
    %64 = vector.load %arg5[%c8_66, %c0_67, %c0_68] : memref<9x4x16xf32, #tpu.memory_space<vmem>>, vector<1x4x16xf32>
    %65 = vector.shape_cast %64 : vector<1x4x16xf32> to vector<4x16xf32>
    %cst_69 = arith.constant dense<0.000000e+00> : vector<64x16xf32>
    %66 = tpu.matmul %63, %65, %cst_69 {dimension_numbers = #tpu.dot_dimension_numbers<[1], [0], [0], [1], [0, 0, 1, 1], [], []>} : vector<64x4xf32>, vector<4x16xf32>, vector<64x16xf32> -> vector<64x16xf32>
    %67 = arith.addf %60, %66 : vector<64x16xf32>
    %c0_70 = arith.constant 0 : index
    %c0_71 = arith.constant 0 : index
    %68 = vector.load %arg6[%c0_70, %c0_71] : memref<1x16xf32, #tpu.memory_space<vmem>>, vector<1x16xf32>
    %69 = vector.broadcast %68 : vector<1x16xf32> to vector<64x16xf32>
    %70 = arith.addf %67, %69 : vector<64x16xf32>
    %cst_72 = arith.constant dense<0.000000e+00> : vector<16xf32>
    %71 = vector.multi_reduction <add>, %70, %cst_72 [0] : vector<64x16xf32> to vector<16xf32>
    %72 = vector.shape_cast %71 : vector<16xf32> to vector<1x16xf32>
    %73 = arith.mulf %70, %70 : vector<64x16xf32>
    %cst_73 = arith.constant dense<0.000000e+00> : vector<16xf32>
    %74 = vector.multi_reduction <add>, %73, %cst_73 [0] : vector<64x16xf32> to vector<16xf32>
    %75 = vector.shape_cast %74 : vector<16xf32> to vector<1x16xf32>
    %cst_74 = arith.constant dense<0.000000e+00> : vector<1x8xf32>
    %76 = tpu.matmul %72, %0, %cst_74 {dimension_numbers = #tpu.dot_dimension_numbers<[1], [0], [0], [1], [0, 0, 1, 1], [], []>} : vector<1x16xf32>, vector<16x8xf32>, vector<1x8xf32> -> vector<1x8xf32>
    %cst_75 = arith.constant 1.280000e+02 : f32
    %77 = vector.broadcast %cst_75 : f32 to vector<1x8xf32>
    %78 = arith.divf %76, %77 : vector<1x8xf32>
    %cst_76 = arith.constant dense<0.000000e+00> : vector<1x8xf32>
    %79 = tpu.matmul %75, %0, %cst_76 {dimension_numbers = #tpu.dot_dimension_numbers<[1], [0], [0], [1], [0, 0, 1, 1], [], []>} : vector<1x16xf32>, vector<16x8xf32>, vector<1x8xf32> -> vector<1x8xf32>
    %cst_77 = arith.constant 1.280000e+02 : f32
    %80 = vector.broadcast %cst_77 : f32 to vector<1x8xf32>
    %81 = arith.divf %79, %80 : vector<1x8xf32>
    %82 = arith.mulf %78, %78 : vector<1x8xf32>
    %83 = arith.subf %81, %82 : vector<1x8xf32>
    %cst_78 = arith.constant 0.000000e+00 : f32
    %84 = vector.broadcast %cst_78 : f32 to vector<1x8xf32>
    %85 = arith.maximumf %83, %84 : vector<1x8xf32>
    %cst_79 = arith.constant dense<0.000000e+00> : vector<1x16xf32>
    %86 = tpu.matmul %78, %1, %cst_79 {dimension_numbers = #tpu.dot_dimension_numbers<[1], [0], [0], [1], [0, 0, 1, 1], [], []>} : vector<1x8xf32>, vector<8x16xf32>, vector<1x16xf32> -> vector<1x16xf32>
    %cst_80 = arith.constant dense<0.000000e+00> : vector<1x16xf32>
    %87 = tpu.matmul %85, %1, %cst_80 {dimension_numbers = #tpu.dot_dimension_numbers<[1], [0], [0], [1], [0, 0, 1, 1], [], []>} : vector<1x8xf32>, vector<8x16xf32>, vector<1x16xf32> -> vector<1x16xf32>
    %cst_81 = arith.constant 9.99999974E-6 : f32
    %88 = vector.broadcast %cst_81 : f32 to vector<1x16xf32>
    %89 = arith.addf %87, %88 : vector<1x16xf32>
    %90 = math.rsqrt %89 : vector<1x16xf32>
    %91 = vector.broadcast %86 : vector<1x16xf32> to vector<64x16xf32>
    %92 = arith.subf %70, %91 : vector<64x16xf32>
    %93 = vector.broadcast %90 : vector<1x16xf32> to vector<64x16xf32>
    %94 = arith.mulf %92, %93 : vector<64x16xf32>
    %c0_82 = arith.constant 0 : index
    %c0_83 = arith.constant 0 : index
    %95 = vector.load %arg7[%c0_82, %c0_83] : memref<1x16xf32, #tpu.memory_space<vmem>>, vector<1x16xf32>
    %96 = vector.broadcast %95 : vector<1x16xf32> to vector<64x16xf32>
    %97 = arith.mulf %94, %96 : vector<64x16xf32>
    %c0_84 = arith.constant 0 : index
    %c0_85 = arith.constant 0 : index
    %98 = vector.load %arg8[%c0_84, %c0_85] : memref<1x16xf32, #tpu.memory_space<vmem>>, vector<1x16xf32>
    %99 = vector.broadcast %98 : vector<1x16xf32> to vector<64x16xf32>
    %100 = arith.addf %97, %99 : vector<64x16xf32>
    %cst_86 = arith.constant 0.000000e+00 : f32
    %101 = vector.broadcast %cst_86 : f32 to vector<64x16xf32>
    %102 = arith.maximumf %100, %101 : vector<64x16xf32>
    %cst_87 = arith.constant 0.000000e+00 : f32
    %103 = vector.broadcast %cst_87 : f32 to vector<16x16xf32>
    %c0_88 = arith.constant 0 : index
    %c0_89 = arith.constant 0 : index
    %c0_90 = arith.constant 0 : index
    %104 = vector.load %arg9[%c0_88, %c0_89, %c0_90] : memref<9x16x64xf32, #tpu.memory_space<vmem>>, vector<1x16x64xf32>
    %105 = vector.shape_cast %104 : vector<1x16x64xf32> to vector<16x64xf32>
    %cst_91 = arith.constant dense<0.000000e+00> : vector<16x16xf32>
    %106 = tpu.matmul %105, %102, %cst_91 {dimension_numbers = #tpu.dot_dimension_numbers<[1], [0], [0], [1], [0, 0, 1, 1], [], []>} : vector<16x64xf32>, vector<64x16xf32>, vector<16x16xf32> -> vector<16x16xf32>
    %c0_92 = arith.constant 0 : index
    %c0_93 = arith.constant 0 : index
    %c0_94 = arith.constant 0 : index
    %107 = vector.load %arg10[%c0_92, %c0_93, %c0_94] : memref<9x16x16xf32, #tpu.memory_space<vmem>>, vector<1x16x16xf32>
    %108 = vector.shape_cast %107 : vector<1x16x16xf32> to vector<16x16xf32>
    %cst_95 = arith.constant dense<0.000000e+00> : vector<16x16xf32>
    %109 = tpu.matmul %106, %108, %cst_95 {dimension_numbers = #tpu.dot_dimension_numbers<[1], [0], [0], [1], [0, 0, 1, 1], [], []>} : vector<16x16xf32>, vector<16x16xf32>, vector<16x16xf32> -> vector<16x16xf32>
    %110 = arith.addf %103, %109 : vector<16x16xf32>
    %c1_96 = arith.constant 1 : index
    %c0_97 = arith.constant 0 : index
    %c0_98 = arith.constant 0 : index
    %111 = vector.load %arg9[%c1_96, %c0_97, %c0_98] : memref<9x16x64xf32, #tpu.memory_space<vmem>>, vector<1x16x64xf32>
    %112 = vector.shape_cast %111 : vector<1x16x64xf32> to vector<16x64xf32>
    %cst_99 = arith.constant dense<0.000000e+00> : vector<16x16xf32>
    %113 = tpu.matmul %112, %102, %cst_99 {dimension_numbers = #tpu.dot_dimension_numbers<[1], [0], [0], [1], [0, 0, 1, 1], [], []>} : vector<16x64xf32>, vector<64x16xf32>, vector<16x16xf32> -> vector<16x16xf32>
    %c1_100 = arith.constant 1 : index
    %c0_101 = arith.constant 0 : index
    %c0_102 = arith.constant 0 : index
    %114 = vector.load %arg10[%c1_100, %c0_101, %c0_102] : memref<9x16x16xf32, #tpu.memory_space<vmem>>, vector<1x16x16xf32>
    %115 = vector.shape_cast %114 : vector<1x16x16xf32> to vector<16x16xf32>
    %cst_103 = arith.constant dense<0.000000e+00> : vector<16x16xf32>
    %116 = tpu.matmul %113, %115, %cst_103 {dimension_numbers = #tpu.dot_dimension_numbers<[1], [0], [0], [1], [0, 0, 1, 1], [], []>} : vector<16x16xf32>, vector<16x16xf32>, vector<16x16xf32> -> vector<16x16xf32>
    %117 = arith.addf %110, %116 : vector<16x16xf32>
    %c2_104 = arith.constant 2 : index
    %c0_105 = arith.constant 0 : index
    %c0_106 = arith.constant 0 : index
    %118 = vector.load %arg9[%c2_104, %c0_105, %c0_106] : memref<9x16x64xf32, #tpu.memory_space<vmem>>, vector<1x16x64xf32>
    %119 = vector.shape_cast %118 : vector<1x16x64xf32> to vector<16x64xf32>
    %cst_107 = arith.constant dense<0.000000e+00> : vector<16x16xf32>
    %120 = tpu.matmul %119, %102, %cst_107 {dimension_numbers = #tpu.dot_dimension_numbers<[1], [0], [0], [1], [0, 0, 1, 1], [], []>} : vector<16x64xf32>, vector<64x16xf32>, vector<16x16xf32> -> vector<16x16xf32>
    %c2_108 = arith.constant 2 : index
    %c0_109 = arith.constant 0 : index
    %c0_110 = arith.constant 0 : index
    %121 = vector.load %arg10[%c2_108, %c0_109, %c0_110] : memref<9x16x16xf32, #tpu.memory_space<vmem>>, vector<1x16x16xf32>
    %122 = vector.shape_cast %121 : vector<1x16x16xf32> to vector<16x16xf32>
    %cst_111 = arith.constant dense<0.000000e+00> : vector<16x16xf32>
    %123 = tpu.matmul %120, %122, %cst_111 {dimension_numbers = #tpu.dot_dimension_numbers<[1], [0], [0], [1], [0, 0, 1, 1], [], []>} : vector<16x16xf32>, vector<16x16xf32>, vector<16x16xf32> -> vector<16x16xf32>
    %124 = arith.addf %117, %123 : vector<16x16xf32>
    %c3_112 = arith.constant 3 : index
    %c0_113 = arith.constant 0 : index
    %c0_114 = arith.constant 0 : index
    %125 = vector.load %arg9[%c3_112, %c0_113, %c0_114] : memref<9x16x64xf32, #tpu.memory_space<vmem>>, vector<1x16x64xf32>
    %126 = vector.shape_cast %125 : vector<1x16x64xf32> to vector<16x64xf32>
    %cst_115 = arith.constant dense<0.000000e+00> : vector<16x16xf32>
    %127 = tpu.matmul %126, %102, %cst_115 {dimension_numbers = #tpu.dot_dimension_numbers<[1], [0], [0], [1], [0, 0, 1, 1], [], []>} : vector<16x64xf32>, vector<64x16xf32>, vector<16x16xf32> -> vector<16x16xf32>
    %c3_116 = arith.constant 3 : index
    %c0_117 = arith.constant 0 : index
    %c0_118 = arith.constant 0 : index
    %128 = vector.load %arg10[%c3_116, %c0_117, %c0_118] : memref<9x16x16xf32, #tpu.memory_space<vmem>>, vector<1x16x16xf32>
    %129 = vector.shape_cast %128 : vector<1x16x16xf32> to vector<16x16xf32>
    %cst_119 = arith.constant dense<0.000000e+00> : vector<16x16xf32>
    %130 = tpu.matmul %127, %129, %cst_119 {dimension_numbers = #tpu.dot_dimension_numbers<[1], [0], [0], [1], [0, 0, 1, 1], [], []>} : vector<16x16xf32>, vector<16x16xf32>, vector<16x16xf32> -> vector<16x16xf32>
    %131 = arith.addf %124, %130 : vector<16x16xf32>
    %c4_120 = arith.constant 4 : index
    %c0_121 = arith.constant 0 : index
    %c0_122 = arith.constant 0 : index
    %132 = vector.load %arg9[%c4_120, %c0_121, %c0_122] : memref<9x16x64xf32, #tpu.memory_space<vmem>>, vector<1x16x64xf32>
    %133 = vector.shape_cast %132 : vector<1x16x64xf32> to vector<16x64xf32>
    %cst_123 = arith.constant dense<0.000000e+00> : vector<16x16xf32>
    %134 = tpu.matmul %133, %102, %cst_123 {dimension_numbers = #tpu.dot_dimension_numbers<[1], [0], [0], [1], [0, 0, 1, 1], [], []>} : vector<16x64xf32>, vector<64x16xf32>, vector<16x16xf32> -> vector<16x16xf32>
    %c4_124 = arith.constant 4 : index
    %c0_125 = arith.constant 0 : index
    %c0_126 = arith.constant 0 : index
    %135 = vector.load %arg10[%c4_124, %c0_125, %c0_126] : memref<9x16x16xf32, #tpu.memory_space<vmem>>, vector<1x16x16xf32>
    %136 = vector.shape_cast %135 : vector<1x16x16xf32> to vector<16x16xf32>
    %cst_127 = arith.constant dense<0.000000e+00> : vector<16x16xf32>
    %137 = tpu.matmul %134, %136, %cst_127 {dimension_numbers = #tpu.dot_dimension_numbers<[1], [0], [0], [1], [0, 0, 1, 1], [], []>} : vector<16x16xf32>, vector<16x16xf32>, vector<16x16xf32> -> vector<16x16xf32>
    %138 = arith.addf %131, %137 : vector<16x16xf32>
    %c5_128 = arith.constant 5 : index
    %c0_129 = arith.constant 0 : index
    %c0_130 = arith.constant 0 : index
    %139 = vector.load %arg9[%c5_128, %c0_129, %c0_130] : memref<9x16x64xf32, #tpu.memory_space<vmem>>, vector<1x16x64xf32>
    %140 = vector.shape_cast %139 : vector<1x16x64xf32> to vector<16x64xf32>
    %cst_131 = arith.constant dense<0.000000e+00> : vector<16x16xf32>
    %141 = tpu.matmul %140, %102, %cst_131 {dimension_numbers = #tpu.dot_dimension_numbers<[1], [0], [0], [1], [0, 0, 1, 1], [], []>} : vector<16x64xf32>, vector<64x16xf32>, vector<16x16xf32> -> vector<16x16xf32>
    %c5_132 = arith.constant 5 : index
    %c0_133 = arith.constant 0 : index
    %c0_134 = arith.constant 0 : index
    %142 = vector.load %arg10[%c5_132, %c0_133, %c0_134] : memref<9x16x16xf32, #tpu.memory_space<vmem>>, vector<1x16x16xf32>
    %143 = vector.shape_cast %142 : vector<1x16x16xf32> to vector<16x16xf32>
    %cst_135 = arith.constant dense<0.000000e+00> : vector<16x16xf32>
    %144 = tpu.matmul %141, %143, %cst_135 {dimension_numbers = #tpu.dot_dimension_numbers<[1], [0], [0], [1], [0, 0, 1, 1], [], []>} : vector<16x16xf32>, vector<16x16xf32>, vector<16x16xf32> -> vector<16x16xf32>
    %145 = arith.addf %138, %144 : vector<16x16xf32>
    %c6_136 = arith.constant 6 : index
    %c0_137 = arith.constant 0 : index
    %c0_138 = arith.constant 0 : index
    %146 = vector.load %arg9[%c6_136, %c0_137, %c0_138] : memref<9x16x64xf32, #tpu.memory_space<vmem>>, vector<1x16x64xf32>
    %147 = vector.shape_cast %146 : vector<1x16x64xf32> to vector<16x64xf32>
    %cst_139 = arith.constant dense<0.000000e+00> : vector<16x16xf32>
    %148 = tpu.matmul %147, %102, %cst_139 {dimension_numbers = #tpu.dot_dimension_numbers<[1], [0], [0], [1], [0, 0, 1, 1], [], []>} : vector<16x64xf32>, vector<64x16xf32>, vector<16x16xf32> -> vector<16x16xf32>
    %c6_140 = arith.constant 6 : index
    %c0_141 = arith.constant 0 : index
    %c0_142 = arith.constant 0 : index
    %149 = vector.load %arg10[%c6_140, %c0_141, %c0_142] : memref<9x16x16xf32, #tpu.memory_space<vmem>>, vector<1x16x16xf32>
    %150 = vector.shape_cast %149 : vector<1x16x16xf32> to vector<16x16xf32>
    %cst_143 = arith.constant dense<0.000000e+00> : vector<16x16xf32>
    %151 = tpu.matmul %148, %150, %cst_143 {dimension_numbers = #tpu.dot_dimension_numbers<[1], [0], [0], [1], [0, 0, 1, 1], [], []>} : vector<16x16xf32>, vector<16x16xf32>, vector<16x16xf32> -> vector<16x16xf32>
    %152 = arith.addf %145, %151 : vector<16x16xf32>
    %c7_144 = arith.constant 7 : index
    %c0_145 = arith.constant 0 : index
    %c0_146 = arith.constant 0 : index
    %153 = vector.load %arg9[%c7_144, %c0_145, %c0_146] : memref<9x16x64xf32, #tpu.memory_space<vmem>>, vector<1x16x64xf32>
    %154 = vector.shape_cast %153 : vector<1x16x64xf32> to vector<16x64xf32>
    %cst_147 = arith.constant dense<0.000000e+00> : vector<16x16xf32>
    %155 = tpu.matmul %154, %102, %cst_147 {dimension_numbers = #tpu.dot_dimension_numbers<[1], [0], [0], [1], [0, 0, 1, 1], [], []>} : vector<16x64xf32>, vector<64x16xf32>, vector<16x16xf32> -> vector<16x16xf32>
    %c7_148 = arith.constant 7 : index
    %c0_149 = arith.constant 0 : index
    %c0_150 = arith.constant 0 : index
    %156 = vector.load %arg10[%c7_148, %c0_149, %c0_150] : memref<9x16x16xf32, #tpu.memory_space<vmem>>, vector<1x16x16xf32>
    %157 = vector.shape_cast %156 : vector<1x16x16xf32> to vector<16x16xf32>
    %cst_151 = arith.constant dense<0.000000e+00> : vector<16x16xf32>
    %158 = tpu.matmul %155, %157, %cst_151 {dimension_numbers = #tpu.dot_dimension_numbers<[1], [0], [0], [1], [0, 0, 1, 1], [], []>} : vector<16x16xf32>, vector<16x16xf32>, vector<16x16xf32> -> vector<16x16xf32>
    %159 = arith.addf %152, %158 : vector<16x16xf32>
    %c8_152 = arith.constant 8 : index
    %c0_153 = arith.constant 0 : index
    %c0_154 = arith.constant 0 : index
    %160 = vector.load %arg9[%c8_152, %c0_153, %c0_154] : memref<9x16x64xf32, #tpu.memory_space<vmem>>, vector<1x16x64xf32>
    %161 = vector.shape_cast %160 : vector<1x16x64xf32> to vector<16x64xf32>
    %cst_155 = arith.constant dense<0.000000e+00> : vector<16x16xf32>
    %162 = tpu.matmul %161, %102, %cst_155 {dimension_numbers = #tpu.dot_dimension_numbers<[1], [0], [0], [1], [0, 0, 1, 1], [], []>} : vector<16x64xf32>, vector<64x16xf32>, vector<16x16xf32> -> vector<16x16xf32>
    %c8_156 = arith.constant 8 : index
    %c0_157 = arith.constant 0 : index
    %c0_158 = arith.constant 0 : index
    %163 = vector.load %arg10[%c8_156, %c0_157, %c0_158] : memref<9x16x16xf32, #tpu.memory_space<vmem>>, vector<1x16x16xf32>
    %164 = vector.shape_cast %163 : vector<1x16x16xf32> to vector<16x16xf32>
    %cst_159 = arith.constant dense<0.000000e+00> : vector<16x16xf32>
    %165 = tpu.matmul %162, %164, %cst_159 {dimension_numbers = #tpu.dot_dimension_numbers<[1], [0], [0], [1], [0, 0, 1, 1], [], []>} : vector<16x16xf32>, vector<16x16xf32>, vector<16x16xf32> -> vector<16x16xf32>
    %166 = arith.addf %159, %165 : vector<16x16xf32>
    %c0_160 = arith.constant 0 : index
    %c0_161 = arith.constant 0 : index
    %167 = vector.load %arg11[%c0_160, %c0_161] : memref<1x16xf32, #tpu.memory_space<vmem>>, vector<1x16xf32>
    %168 = vector.broadcast %167 : vector<1x16xf32> to vector<16x16xf32>
    %169 = arith.addf %166, %168 : vector<16x16xf32>
    %cst_162 = arith.constant dense<0.000000e+00> : vector<16xf32>
    %170 = vector.multi_reduction <add>, %169, %cst_162 [0] : vector<16x16xf32> to vector<16xf32>
    %171 = vector.shape_cast %170 : vector<16xf32> to vector<1x16xf32>
    %172 = arith.mulf %169, %169 : vector<16x16xf32>
    %cst_163 = arith.constant dense<0.000000e+00> : vector<16xf32>
    %173 = vector.multi_reduction <add>, %172, %cst_163 [0] : vector<16x16xf32> to vector<16xf32>
    %174 = vector.shape_cast %173 : vector<16xf32> to vector<1x16xf32>
    %cst_164 = arith.constant dense<0.000000e+00> : vector<1x8xf32>
    %175 = tpu.matmul %171, %0, %cst_164 {dimension_numbers = #tpu.dot_dimension_numbers<[1], [0], [0], [1], [0, 0, 1, 1], [], []>} : vector<1x16xf32>, vector<16x8xf32>, vector<1x8xf32> -> vector<1x8xf32>
    %cst_165 = arith.constant 3.200000e+01 : f32
    %176 = vector.broadcast %cst_165 : f32 to vector<1x8xf32>
    %177 = arith.divf %175, %176 : vector<1x8xf32>
    %cst_166 = arith.constant dense<0.000000e+00> : vector<1x8xf32>
    %178 = tpu.matmul %174, %0, %cst_166 {dimension_numbers = #tpu.dot_dimension_numbers<[1], [0], [0], [1], [0, 0, 1, 1], [], []>} : vector<1x16xf32>, vector<16x8xf32>, vector<1x8xf32> -> vector<1x8xf32>
    %cst_167 = arith.constant 3.200000e+01 : f32
    %179 = vector.broadcast %cst_167 : f32 to vector<1x8xf32>
    %180 = arith.divf %178, %179 : vector<1x8xf32>
    %181 = arith.mulf %177, %177 : vector<1x8xf32>
    %182 = arith.subf %180, %181 : vector<1x8xf32>
    %cst_168 = arith.constant 0.000000e+00 : f32
    %183 = vector.broadcast %cst_168 : f32 to vector<1x8xf32>
    %184 = arith.maximumf %182, %183 : vector<1x8xf32>
    %cst_169 = arith.constant dense<0.000000e+00> : vector<1x16xf32>
    %185 = tpu.matmul %177, %1, %cst_169 {dimension_numbers = #tpu.dot_dimension_numbers<[1], [0], [0], [1], [0, 0, 1, 1], [], []>} : vector<1x8xf32>, vector<8x16xf32>, vector<1x16xf32> -> vector<1x16xf32>
    %cst_170 = arith.constant dense<0.000000e+00> : vector<1x16xf32>
    %186 = tpu.matmul %184, %1, %cst_170 {dimension_numbers = #tpu.dot_dimension_numbers<[1], [0], [0], [1], [0, 0, 1, 1], [], []>} : vector<1x8xf32>, vector<8x16xf32>, vector<1x16xf32> -> vector<1x16xf32>
    %cst_171 = arith.constant 9.99999974E-6 : f32
    %187 = vector.broadcast %cst_171 : f32 to vector<1x16xf32>
    %188 = arith.addf %186, %187 : vector<1x16xf32>
    %189 = math.rsqrt %188 : vector<1x16xf32>
    %190 = vector.broadcast %185 : vector<1x16xf32> to vector<16x16xf32>
    %191 = arith.subf %169, %190 : vector<16x16xf32>
    %192 = vector.broadcast %189 : vector<1x16xf32> to vector<16x16xf32>
    %193 = arith.mulf %191, %192 : vector<16x16xf32>
    %c0_172 = arith.constant 0 : index
    %c0_173 = arith.constant 0 : index
    %194 = vector.load %arg12[%c0_172, %c0_173] : memref<1x16xf32, #tpu.memory_space<vmem>>, vector<1x16xf32>
    %195 = vector.broadcast %194 : vector<1x16xf32> to vector<16x16xf32>
    %196 = arith.mulf %193, %195 : vector<16x16xf32>
    %c0_174 = arith.constant 0 : index
    %c0_175 = arith.constant 0 : index
    %197 = vector.load %arg13[%c0_174, %c0_175] : memref<1x16xf32, #tpu.memory_space<vmem>>, vector<1x16xf32>
    %198 = vector.broadcast %197 : vector<1x16xf32> to vector<16x16xf32>
    %199 = arith.addf %196, %198 : vector<16x16xf32>
    %cst_176 = arith.constant 0.000000e+00 : f32
    %200 = vector.broadcast %cst_176 : f32 to vector<16x16xf32>
    %201 = arith.maximumf %199, %200 : vector<16x16xf32>
    %cst_177 = arith.constant 0.000000e+00 : f32
    %202 = vector.broadcast %cst_177 : f32 to vector<4x16xf32>
    %c0_178 = arith.constant 0 : index
    %c0_179 = arith.constant 0 : index
    %c0_180 = arith.constant 0 : index
    %203 = vector.load %arg14[%c0_178, %c0_179, %c0_180] : memref<9x4x16xf32, #tpu.memory_space<vmem>>, vector<1x4x16xf32>
    %204 = vector.shape_cast %203 : vector<1x4x16xf32> to vector<4x16xf32>
    %cst_181 = arith.constant dense<0.000000e+00> : vector<4x16xf32>
    %205 = tpu.matmul %204, %201, %cst_181 {dimension_numbers = #tpu.dot_dimension_numbers<[1], [0], [0], [1], [0, 0, 1, 1], [], []>} : vector<4x16xf32>, vector<16x16xf32>, vector<4x16xf32> -> vector<4x16xf32>
    %c0_182 = arith.constant 0 : index
    %c0_183 = arith.constant 0 : index
    %c0_184 = arith.constant 0 : index
    %206 = vector.load %arg15[%c0_182, %c0_183, %c0_184] : memref<9x16x16xf32, #tpu.memory_space<vmem>>, vector<1x16x16xf32>
    %207 = vector.shape_cast %206 : vector<1x16x16xf32> to vector<16x16xf32>
    %cst_185 = arith.constant dense<0.000000e+00> : vector<4x16xf32>
    %208 = tpu.matmul %205, %207, %cst_185 {dimension_numbers = #tpu.dot_dimension_numbers<[1], [0], [0], [1], [0, 0, 1, 1], [], []>} : vector<4x16xf32>, vector<16x16xf32>, vector<4x16xf32> -> vector<4x16xf32>
    %209 = arith.addf %202, %208 : vector<4x16xf32>
    %c1_186 = arith.constant 1 : index
    %c0_187 = arith.constant 0 : index
    %c0_188 = arith.constant 0 : index
    %210 = vector.load %arg14[%c1_186, %c0_187, %c0_188] : memref<9x4x16xf32, #tpu.memory_space<vmem>>, vector<1x4x16xf32>
    %211 = vector.shape_cast %210 : vector<1x4x16xf32> to vector<4x16xf32>
    %cst_189 = arith.constant dense<0.000000e+00> : vector<4x16xf32>
    %212 = tpu.matmul %211, %201, %cst_189 {dimension_numbers = #tpu.dot_dimension_numbers<[1], [0], [0], [1], [0, 0, 1, 1], [], []>} : vector<4x16xf32>, vector<16x16xf32>, vector<4x16xf32> -> vector<4x16xf32>
    %c1_190 = arith.constant 1 : index
    %c0_191 = arith.constant 0 : index
    %c0_192 = arith.constant 0 : index
    %213 = vector.load %arg15[%c1_190, %c0_191, %c0_192] : memref<9x16x16xf32, #tpu.memory_space<vmem>>, vector<1x16x16xf32>
    %214 = vector.shape_cast %213 : vector<1x16x16xf32> to vector<16x16xf32>
    %cst_193 = arith.constant dense<0.000000e+00> : vector<4x16xf32>
    %215 = tpu.matmul %212, %214, %cst_193 {dimension_numbers = #tpu.dot_dimension_numbers<[1], [0], [0], [1], [0, 0, 1, 1], [], []>} : vector<4x16xf32>, vector<16x16xf32>, vector<4x16xf32> -> vector<4x16xf32>
    %216 = arith.addf %209, %215 : vector<4x16xf32>
    %c2_194 = arith.constant 2 : index
    %c0_195 = arith.constant 0 : index
    %c0_196 = arith.constant 0 : index
    %217 = vector.load %arg14[%c2_194, %c0_195, %c0_196] : memref<9x4x16xf32, #tpu.memory_space<vmem>>, vector<1x4x16xf32>
    %218 = vector.shape_cast %217 : vector<1x4x16xf32> to vector<4x16xf32>
    %cst_197 = arith.constant dense<0.000000e+00> : vector<4x16xf32>
    %219 = tpu.matmul %218, %201, %cst_197 {dimension_numbers = #tpu.dot_dimension_numbers<[1], [0], [0], [1], [0, 0, 1, 1], [], []>} : vector<4x16xf32>, vector<16x16xf32>, vector<4x16xf32> -> vector<4x16xf32>
    %c2_198 = arith.constant 2 : index
    %c0_199 = arith.constant 0 : index
    %c0_200 = arith.constant 0 : index
    %220 = vector.load %arg15[%c2_198, %c0_199, %c0_200] : memref<9x16x16xf32, #tpu.memory_space<vmem>>, vector<1x16x16xf32>
    %221 = vector.shape_cast %220 : vector<1x16x16xf32> to vector<16x16xf32>
    %cst_201 = arith.constant dense<0.000000e+00> : vector<4x16xf32>
    %222 = tpu.matmul %219, %221, %cst_201 {dimension_numbers = #tpu.dot_dimension_numbers<[1], [0], [0], [1], [0, 0, 1, 1], [], []>} : vector<4x16xf32>, vector<16x16xf32>, vector<4x16xf32> -> vector<4x16xf32>
    %223 = arith.addf %216, %222 : vector<4x16xf32>
    %c3_202 = arith.constant 3 : index
    %c0_203 = arith.constant 0 : index
    %c0_204 = arith.constant 0 : index
    %224 = vector.load %arg14[%c3_202, %c0_203, %c0_204] : memref<9x4x16xf32, #tpu.memory_space<vmem>>, vector<1x4x16xf32>
    %225 = vector.shape_cast %224 : vector<1x4x16xf32> to vector<4x16xf32>
    %cst_205 = arith.constant dense<0.000000e+00> : vector<4x16xf32>
    %226 = tpu.matmul %225, %201, %cst_205 {dimension_numbers = #tpu.dot_dimension_numbers<[1], [0], [0], [1], [0, 0, 1, 1], [], []>} : vector<4x16xf32>, vector<16x16xf32>, vector<4x16xf32> -> vector<4x16xf32>
    %c3_206 = arith.constant 3 : index
    %c0_207 = arith.constant 0 : index
    %c0_208 = arith.constant 0 : index
    %227 = vector.load %arg15[%c3_206, %c0_207, %c0_208] : memref<9x16x16xf32, #tpu.memory_space<vmem>>, vector<1x16x16xf32>
    %228 = vector.shape_cast %227 : vector<1x16x16xf32> to vector<16x16xf32>
    %cst_209 = arith.constant dense<0.000000e+00> : vector<4x16xf32>
    %229 = tpu.matmul %226, %228, %cst_209 {dimension_numbers = #tpu.dot_dimension_numbers<[1], [0], [0], [1], [0, 0, 1, 1], [], []>} : vector<4x16xf32>, vector<16x16xf32>, vector<4x16xf32> -> vector<4x16xf32>
    %230 = arith.addf %223, %229 : vector<4x16xf32>
    %c4_210 = arith.constant 4 : index
    %c0_211 = arith.constant 0 : index
    %c0_212 = arith.constant 0 : index
    %231 = vector.load %arg14[%c4_210, %c0_211, %c0_212] : memref<9x4x16xf32, #tpu.memory_space<vmem>>, vector<1x4x16xf32>
    %232 = vector.shape_cast %231 : vector<1x4x16xf32> to vector<4x16xf32>
    %cst_213 = arith.constant dense<0.000000e+00> : vector<4x16xf32>
    %233 = tpu.matmul %232, %201, %cst_213 {dimension_numbers = #tpu.dot_dimension_numbers<[1], [0], [0], [1], [0, 0, 1, 1], [], []>} : vector<4x16xf32>, vector<16x16xf32>, vector<4x16xf32> -> vector<4x16xf32>
    %c4_214 = arith.constant 4 : index
    %c0_215 = arith.constant 0 : index
    %c0_216 = arith.constant 0 : index
    %234 = vector.load %arg15[%c4_214, %c0_215, %c0_216] : memref<9x16x16xf32, #tpu.memory_space<vmem>>, vector<1x16x16xf32>
    %235 = vector.shape_cast %234 : vector<1x16x16xf32> to vector<16x16xf32>
    %cst_217 = arith.constant dense<0.000000e+00> : vector<4x16xf32>
    %236 = tpu.matmul %233, %235, %cst_217 {dimension_numbers = #tpu.dot_dimension_numbers<[1], [0], [0], [1], [0, 0, 1, 1], [], []>} : vector<4x16xf32>, vector<16x16xf32>, vector<4x16xf32> -> vector<4x16xf32>
    %237 = arith.addf %230, %236 : vector<4x16xf32>
    %c5_218 = arith.constant 5 : index
    %c0_219 = arith.constant 0 : index
    %c0_220 = arith.constant 0 : index
    %238 = vector.load %arg14[%c5_218, %c0_219, %c0_220] : memref<9x4x16xf32, #tpu.memory_space<vmem>>, vector<1x4x16xf32>
    %239 = vector.shape_cast %238 : vector<1x4x16xf32> to vector<4x16xf32>
    %cst_221 = arith.constant dense<0.000000e+00> : vector<4x16xf32>
    %240 = tpu.matmul %239, %201, %cst_221 {dimension_numbers = #tpu.dot_dimension_numbers<[1], [0], [0], [1], [0, 0, 1, 1], [], []>} : vector<4x16xf32>, vector<16x16xf32>, vector<4x16xf32> -> vector<4x16xf32>
    %c5_222 = arith.constant 5 : index
    %c0_223 = arith.constant 0 : index
    %c0_224 = arith.constant 0 : index
    %241 = vector.load %arg15[%c5_222, %c0_223, %c0_224] : memref<9x16x16xf32, #tpu.memory_space<vmem>>, vector<1x16x16xf32>
    %242 = vector.shape_cast %241 : vector<1x16x16xf32> to vector<16x16xf32>
    %cst_225 = arith.constant dense<0.000000e+00> : vector<4x16xf32>
    %243 = tpu.matmul %240, %242, %cst_225 {dimension_numbers = #tpu.dot_dimension_numbers<[1], [0], [0], [1], [0, 0, 1, 1], [], []>} : vector<4x16xf32>, vector<16x16xf32>, vector<4x16xf32> -> vector<4x16xf32>
    %244 = arith.addf %237, %243 : vector<4x16xf32>
    %c6_226 = arith.constant 6 : index
    %c0_227 = arith.constant 0 : index
    %c0_228 = arith.constant 0 : index
    %245 = vector.load %arg14[%c6_226, %c0_227, %c0_228] : memref<9x4x16xf32, #tpu.memory_space<vmem>>, vector<1x4x16xf32>
    %246 = vector.shape_cast %245 : vector<1x4x16xf32> to vector<4x16xf32>
    %cst_229 = arith.constant dense<0.000000e+00> : vector<4x16xf32>
    %247 = tpu.matmul %246, %201, %cst_229 {dimension_numbers = #tpu.dot_dimension_numbers<[1], [0], [0], [1], [0, 0, 1, 1], [], []>} : vector<4x16xf32>, vector<16x16xf32>, vector<4x16xf32> -> vector<4x16xf32>
    %c6_230 = arith.constant 6 : index
    %c0_231 = arith.constant 0 : index
    %c0_232 = arith.constant 0 : index
    %248 = vector.load %arg15[%c6_230, %c0_231, %c0_232] : memref<9x16x16xf32, #tpu.memory_space<vmem>>, vector<1x16x16xf32>
    %249 = vector.shape_cast %248 : vector<1x16x16xf32> to vector<16x16xf32>
    %cst_233 = arith.constant dense<0.000000e+00> : vector<4x16xf32>
    %250 = tpu.matmul %247, %249, %cst_233 {dimension_numbers = #tpu.dot_dimension_numbers<[1], [0], [0], [1], [0, 0, 1, 1], [], []>} : vector<4x16xf32>, vector<16x16xf32>, vector<4x16xf32> -> vector<4x16xf32>
    %251 = arith.addf %244, %250 : vector<4x16xf32>
    %c7_234 = arith.constant 7 : index
    %c0_235 = arith.constant 0 : index
    %c0_236 = arith.constant 0 : index
    %252 = vector.load %arg14[%c7_234, %c0_235, %c0_236] : memref<9x4x16xf32, #tpu.memory_space<vmem>>, vector<1x4x16xf32>
    %253 = vector.shape_cast %252 : vector<1x4x16xf32> to vector<4x16xf32>
    %cst_237 = arith.constant dense<0.000000e+00> : vector<4x16xf32>
    %254 = tpu.matmul %253, %201, %cst_237 {dimension_numbers = #tpu.dot_dimension_numbers<[1], [0], [0], [1], [0, 0, 1, 1], [], []>} : vector<4x16xf32>, vector<16x16xf32>, vector<4x16xf32> -> vector<4x16xf32>
    %c7_238 = arith.constant 7 : index
    %c0_239 = arith.constant 0 : index
    %c0_240 = arith.constant 0 : index
    %255 = vector.load %arg15[%c7_238, %c0_239, %c0_240] : memref<9x16x16xf32, #tpu.memory_space<vmem>>, vector<1x16x16xf32>
    %256 = vector.shape_cast %255 : vector<1x16x16xf32> to vector<16x16xf32>
    %cst_241 = arith.constant dense<0.000000e+00> : vector<4x16xf32>
    %257 = tpu.matmul %254, %256, %cst_241 {dimension_numbers = #tpu.dot_dimension_numbers<[1], [0], [0], [1], [0, 0, 1, 1], [], []>} : vector<4x16xf32>, vector<16x16xf32>, vector<4x16xf32> -> vector<4x16xf32>
    %258 = arith.addf %251, %257 : vector<4x16xf32>
    %c8_242 = arith.constant 8 : index
    %c0_243 = arith.constant 0 : index
    %c0_244 = arith.constant 0 : index
    %259 = vector.load %arg14[%c8_242, %c0_243, %c0_244] : memref<9x4x16xf32, #tpu.memory_space<vmem>>, vector<1x4x16xf32>
    %260 = vector.shape_cast %259 : vector<1x4x16xf32> to vector<4x16xf32>
    %cst_245 = arith.constant dense<0.000000e+00> : vector<4x16xf32>
    %261 = tpu.matmul %260, %201, %cst_245 {dimension_numbers = #tpu.dot_dimension_numbers<[1], [0], [0], [1], [0, 0, 1, 1], [], []>} : vector<4x16xf32>, vector<16x16xf32>, vector<4x16xf32> -> vector<4x16xf32>
    %c8_246 = arith.constant 8 : index
    %c0_247 = arith.constant 0 : index
    %c0_248 = arith.constant 0 : index
    %262 = vector.load %arg15[%c8_246, %c0_247, %c0_248] : memref<9x16x16xf32, #tpu.memory_space<vmem>>, vector<1x16x16xf32>
    %263 = vector.shape_cast %262 : vector<1x16x16xf32> to vector<16x16xf32>
    %cst_249 = arith.constant dense<0.000000e+00> : vector<4x16xf32>
    %264 = tpu.matmul %261, %263, %cst_249 {dimension_numbers = #tpu.dot_dimension_numbers<[1], [0], [0], [1], [0, 0, 1, 1], [], []>} : vector<4x16xf32>, vector<16x16xf32>, vector<4x16xf32> -> vector<4x16xf32>
    %265 = arith.addf %258, %264 : vector<4x16xf32>
    %c0_250 = arith.constant 0 : index
    %c0_251 = arith.constant 0 : index
    %266 = vector.load %arg16[%c0_250, %c0_251] : memref<1x16xf32, #tpu.memory_space<vmem>>, vector<1x16xf32>
    %267 = vector.broadcast %266 : vector<1x16xf32> to vector<4x16xf32>
    %268 = arith.addf %265, %267 : vector<4x16xf32>
    %cst_252 = arith.constant dense<0.000000e+00> : vector<16xf32>
    %269 = vector.multi_reduction <add>, %268, %cst_252 [0] : vector<4x16xf32> to vector<16xf32>
    %270 = vector.shape_cast %269 : vector<16xf32> to vector<1x16xf32>
    %271 = arith.mulf %268, %268 : vector<4x16xf32>
    %cst_253 = arith.constant dense<0.000000e+00> : vector<16xf32>
    %272 = vector.multi_reduction <add>, %271, %cst_253 [0] : vector<4x16xf32> to vector<16xf32>
    %273 = vector.shape_cast %272 : vector<16xf32> to vector<1x16xf32>
    %cst_254 = arith.constant dense<0.000000e+00> : vector<1x8xf32>
    %274 = tpu.matmul %270, %0, %cst_254 {dimension_numbers = #tpu.dot_dimension_numbers<[1], [0], [0], [1], [0, 0, 1, 1], [], []>} : vector<1x16xf32>, vector<16x8xf32>, vector<1x8xf32> -> vector<1x8xf32>
    %cst_255 = arith.constant 8.000000e+00 : f32
    %275 = vector.broadcast %cst_255 : f32 to vector<1x8xf32>
    %276 = arith.divf %274, %275 : vector<1x8xf32>
    %cst_256 = arith.constant dense<0.000000e+00> : vector<1x8xf32>
    %277 = tpu.matmul %273, %0, %cst_256 {dimension_numbers = #tpu.dot_dimension_numbers<[1], [0], [0], [1], [0, 0, 1, 1], [], []>} : vector<1x16xf32>, vector<16x8xf32>, vector<1x8xf32> -> vector<1x8xf32>
    %cst_257 = arith.constant 8.000000e+00 : f32
    %278 = vector.broadcast %cst_257 : f32 to vector<1x8xf32>
    %279 = arith.divf %277, %278 : vector<1x8xf32>
    %280 = arith.mulf %276, %276 : vector<1x8xf32>
    %281 = arith.subf %279, %280 : vector<1x8xf32>
    %cst_258 = arith.constant 0.000000e+00 : f32
    %282 = vector.broadcast %cst_258 : f32 to vector<1x8xf32>
    %283 = arith.maximumf %281, %282 : vector<1x8xf32>
    %cst_259 = arith.constant dense<0.000000e+00> : vector<1x16xf32>
    %284 = tpu.matmul %276, %1, %cst_259 {dimension_numbers = #tpu.dot_dimension_numbers<[1], [0], [0], [1], [0, 0, 1, 1], [], []>} : vector<1x8xf32>, vector<8x16xf32>, vector<1x16xf32> -> vector<1x16xf32>
    %cst_260 = arith.constant dense<0.000000e+00> : vector<1x16xf32>
    %285 = tpu.matmul %283, %1, %cst_260 {dimension_numbers = #tpu.dot_dimension_numbers<[1], [0], [0], [1], [0, 0, 1, 1], [], []>} : vector<1x8xf32>, vector<8x16xf32>, vector<1x16xf32> -> vector<1x16xf32>
    %cst_261 = arith.constant 9.99999974E-6 : f32
    %286 = vector.broadcast %cst_261 : f32 to vector<1x16xf32>
    %287 = arith.addf %285, %286 : vector<1x16xf32>
    %288 = math.rsqrt %287 : vector<1x16xf32>
    %289 = vector.broadcast %284 : vector<1x16xf32> to vector<4x16xf32>
    %290 = arith.subf %268, %289 : vector<4x16xf32>
    %291 = vector.broadcast %288 : vector<1x16xf32> to vector<4x16xf32>
    %292 = arith.mulf %290, %291 : vector<4x16xf32>
    %c0_262 = arith.constant 0 : index
    %c0_263 = arith.constant 0 : index
    %293 = vector.load %arg17[%c0_262, %c0_263] : memref<1x16xf32, #tpu.memory_space<vmem>>, vector<1x16xf32>
    %294 = vector.broadcast %293 : vector<1x16xf32> to vector<4x16xf32>
    %295 = arith.mulf %292, %294 : vector<4x16xf32>
    %c0_264 = arith.constant 0 : index
    %c0_265 = arith.constant 0 : index
    %296 = vector.load %arg18[%c0_264, %c0_265] : memref<1x16xf32, #tpu.memory_space<vmem>>, vector<1x16xf32>
    %297 = vector.broadcast %296 : vector<1x16xf32> to vector<4x16xf32>
    %298 = arith.addf %295, %297 : vector<4x16xf32>
    %cst_266 = arith.constant 0.000000e+00 : f32
    %299 = vector.broadcast %cst_266 : f32 to vector<4x16xf32>
    %300 = arith.maximumf %298, %299 : vector<4x16xf32>
    %cst_267 = arith.constant 0.000000e+00 : f32
    %301 = vector.broadcast %cst_267 : f32 to vector<1x16xf32>
    %c0_268 = arith.constant 0 : index
    %c0_269 = arith.constant 0 : index
    %c0_270 = arith.constant 0 : index
    %302 = vector.load %arg19[%c0_268, %c0_269, %c0_270] : memref<9x1x4xf32, #tpu.memory_space<vmem>>, vector<1x1x4xf32>
    %303 = vector.shape_cast %302 : vector<1x1x4xf32> to vector<1x4xf32>
    %cst_271 = arith.constant dense<0.000000e+00> : vector<1x16xf32>
    %304 = tpu.matmul %303, %300, %cst_271 {dimension_numbers = #tpu.dot_dimension_numbers<[1], [0], [0], [1], [0, 0, 1, 1], [], []>} : vector<1x4xf32>, vector<4x16xf32>, vector<1x16xf32> -> vector<1x16xf32>
    %c0_272 = arith.constant 0 : index
    %c0_273 = arith.constant 0 : index
    %c0_274 = arith.constant 0 : index
    %305 = vector.load %arg20[%c0_272, %c0_273, %c0_274] : memref<9x16x16xf32, #tpu.memory_space<vmem>>, vector<1x16x16xf32>
    %306 = vector.shape_cast %305 : vector<1x16x16xf32> to vector<16x16xf32>
    %cst_275 = arith.constant dense<0.000000e+00> : vector<1x16xf32>
    %307 = tpu.matmul %304, %306, %cst_275 {dimension_numbers = #tpu.dot_dimension_numbers<[1], [0], [0], [1], [0, 0, 1, 1], [], []>} : vector<1x16xf32>, vector<16x16xf32>, vector<1x16xf32> -> vector<1x16xf32>
    %308 = arith.addf %301, %307 : vector<1x16xf32>
    %c1_276 = arith.constant 1 : index
    %c0_277 = arith.constant 0 : index
    %c0_278 = arith.constant 0 : index
    %309 = vector.load %arg19[%c1_276, %c0_277, %c0_278] : memref<9x1x4xf32, #tpu.memory_space<vmem>>, vector<1x1x4xf32>
    %310 = vector.shape_cast %309 : vector<1x1x4xf32> to vector<1x4xf32>
    %cst_279 = arith.constant dense<0.000000e+00> : vector<1x16xf32>
    %311 = tpu.matmul %310, %300, %cst_279 {dimension_numbers = #tpu.dot_dimension_numbers<[1], [0], [0], [1], [0, 0, 1, 1], [], []>} : vector<1x4xf32>, vector<4x16xf32>, vector<1x16xf32> -> vector<1x16xf32>
    %c1_280 = arith.constant 1 : index
    %c0_281 = arith.constant 0 : index
    %c0_282 = arith.constant 0 : index
    %312 = vector.load %arg20[%c1_280, %c0_281, %c0_282] : memref<9x16x16xf32, #tpu.memory_space<vmem>>, vector<1x16x16xf32>
    %313 = vector.shape_cast %312 : vector<1x16x16xf32> to vector<16x16xf32>
    %cst_283 = arith.constant dense<0.000000e+00> : vector<1x16xf32>
    %314 = tpu.matmul %311, %313, %cst_283 {dimension_numbers = #tpu.dot_dimension_numbers<[1], [0], [0], [1], [0, 0, 1, 1], [], []>} : vector<1x16xf32>, vector<16x16xf32>, vector<1x16xf32> -> vector<1x16xf32>
    %315 = arith.addf %308, %314 : vector<1x16xf32>
    %c2_284 = arith.constant 2 : index
    %c0_285 = arith.constant 0 : index
    %c0_286 = arith.constant 0 : index
    %316 = vector.load %arg19[%c2_284, %c0_285, %c0_286] : memref<9x1x4xf32, #tpu.memory_space<vmem>>, vector<1x1x4xf32>
    %317 = vector.shape_cast %316 : vector<1x1x4xf32> to vector<1x4xf32>
    %cst_287 = arith.constant dense<0.000000e+00> : vector<1x16xf32>
    %318 = tpu.matmul %317, %300, %cst_287 {dimension_numbers = #tpu.dot_dimension_numbers<[1], [0], [0], [1], [0, 0, 1, 1], [], []>} : vector<1x4xf32>, vector<4x16xf32>, vector<1x16xf32> -> vector<1x16xf32>
    %c2_288 = arith.constant 2 : index
    %c0_289 = arith.constant 0 : index
    %c0_290 = arith.constant 0 : index
    %319 = vector.load %arg20[%c2_288, %c0_289, %c0_290] : memref<9x16x16xf32, #tpu.memory_space<vmem>>, vector<1x16x16xf32>
    %320 = vector.shape_cast %319 : vector<1x16x16xf32> to vector<16x16xf32>
    %cst_291 = arith.constant dense<0.000000e+00> : vector<1x16xf32>
    %321 = tpu.matmul %318, %320, %cst_291 {dimension_numbers = #tpu.dot_dimension_numbers<[1], [0], [0], [1], [0, 0, 1, 1], [], []>} : vector<1x16xf32>, vector<16x16xf32>, vector<1x16xf32> -> vector<1x16xf32>
    %322 = arith.addf %315, %321 : vector<1x16xf32>
    %c3_292 = arith.constant 3 : index
    %c0_293 = arith.constant 0 : index
    %c0_294 = arith.constant 0 : index
    %323 = vector.load %arg19[%c3_292, %c0_293, %c0_294] : memref<9x1x4xf32, #tpu.memory_space<vmem>>, vector<1x1x4xf32>
    %324 = vector.shape_cast %323 : vector<1x1x4xf32> to vector<1x4xf32>
    %cst_295 = arith.constant dense<0.000000e+00> : vector<1x16xf32>
    %325 = tpu.matmul %324, %300, %cst_295 {dimension_numbers = #tpu.dot_dimension_numbers<[1], [0], [0], [1], [0, 0, 1, 1], [], []>} : vector<1x4xf32>, vector<4x16xf32>, vector<1x16xf32> -> vector<1x16xf32>
    %c3_296 = arith.constant 3 : index
    %c0_297 = arith.constant 0 : index
    %c0_298 = arith.constant 0 : index
    %326 = vector.load %arg20[%c3_296, %c0_297, %c0_298] : memref<9x16x16xf32, #tpu.memory_space<vmem>>, vector<1x16x16xf32>
    %327 = vector.shape_cast %326 : vector<1x16x16xf32> to vector<16x16xf32>
    %cst_299 = arith.constant dense<0.000000e+00> : vector<1x16xf32>
    %328 = tpu.matmul %325, %327, %cst_299 {dimension_numbers = #tpu.dot_dimension_numbers<[1], [0], [0], [1], [0, 0, 1, 1], [], []>} : vector<1x16xf32>, vector<16x16xf32>, vector<1x16xf32> -> vector<1x16xf32>
    %329 = arith.addf %322, %328 : vector<1x16xf32>
    %c4_300 = arith.constant 4 : index
    %c0_301 = arith.constant 0 : index
    %c0_302 = arith.constant 0 : index
    %330 = vector.load %arg19[%c4_300, %c0_301, %c0_302] : memref<9x1x4xf32, #tpu.memory_space<vmem>>, vector<1x1x4xf32>
    %331 = vector.shape_cast %330 : vector<1x1x4xf32> to vector<1x4xf32>
    %cst_303 = arith.constant dense<0.000000e+00> : vector<1x16xf32>
    %332 = tpu.matmul %331, %300, %cst_303 {dimension_numbers = #tpu.dot_dimension_numbers<[1], [0], [0], [1], [0, 0, 1, 1], [], []>} : vector<1x4xf32>, vector<4x16xf32>, vector<1x16xf32> -> vector<1x16xf32>
    %c4_304 = arith.constant 4 : index
    %c0_305 = arith.constant 0 : index
    %c0_306 = arith.constant 0 : index
    %333 = vector.load %arg20[%c4_304, %c0_305, %c0_306] : memref<9x16x16xf32, #tpu.memory_space<vmem>>, vector<1x16x16xf32>
    %334 = vector.shape_cast %333 : vector<1x16x16xf32> to vector<16x16xf32>
    %cst_307 = arith.constant dense<0.000000e+00> : vector<1x16xf32>
    %335 = tpu.matmul %332, %334, %cst_307 {dimension_numbers = #tpu.dot_dimension_numbers<[1], [0], [0], [1], [0, 0, 1, 1], [], []>} : vector<1x16xf32>, vector<16x16xf32>, vector<1x16xf32> -> vector<1x16xf32>
    %336 = arith.addf %329, %335 : vector<1x16xf32>
    %c5_308 = arith.constant 5 : index
    %c0_309 = arith.constant 0 : index
    %c0_310 = arith.constant 0 : index
    %337 = vector.load %arg19[%c5_308, %c0_309, %c0_310] : memref<9x1x4xf32, #tpu.memory_space<vmem>>, vector<1x1x4xf32>
    %338 = vector.shape_cast %337 : vector<1x1x4xf32> to vector<1x4xf32>
    %cst_311 = arith.constant dense<0.000000e+00> : vector<1x16xf32>
    %339 = tpu.matmul %338, %300, %cst_311 {dimension_numbers = #tpu.dot_dimension_numbers<[1], [0], [0], [1], [0, 0, 1, 1], [], []>} : vector<1x4xf32>, vector<4x16xf32>, vector<1x16xf32> -> vector<1x16xf32>
    %c5_312 = arith.constant 5 : index
    %c0_313 = arith.constant 0 : index
    %c0_314 = arith.constant 0 : index
    %340 = vector.load %arg20[%c5_312, %c0_313, %c0_314] : memref<9x16x16xf32, #tpu.memory_space<vmem>>, vector<1x16x16xf32>
    %341 = vector.shape_cast %340 : vector<1x16x16xf32> to vector<16x16xf32>
    %cst_315 = arith.constant dense<0.000000e+00> : vector<1x16xf32>
    %342 = tpu.matmul %339, %341, %cst_315 {dimension_numbers = #tpu.dot_dimension_numbers<[1], [0], [0], [1], [0, 0, 1, 1], [], []>} : vector<1x16xf32>, vector<16x16xf32>, vector<1x16xf32> -> vector<1x16xf32>
    %343 = arith.addf %336, %342 : vector<1x16xf32>
    %c6_316 = arith.constant 6 : index
    %c0_317 = arith.constant 0 : index
    %c0_318 = arith.constant 0 : index
    %344 = vector.load %arg19[%c6_316, %c0_317, %c0_318] : memref<9x1x4xf32, #tpu.memory_space<vmem>>, vector<1x1x4xf32>
    %345 = vector.shape_cast %344 : vector<1x1x4xf32> to vector<1x4xf32>
    %cst_319 = arith.constant dense<0.000000e+00> : vector<1x16xf32>
    %346 = tpu.matmul %345, %300, %cst_319 {dimension_numbers = #tpu.dot_dimension_numbers<[1], [0], [0], [1], [0, 0, 1, 1], [], []>} : vector<1x4xf32>, vector<4x16xf32>, vector<1x16xf32> -> vector<1x16xf32>
    %c6_320 = arith.constant 6 : index
    %c0_321 = arith.constant 0 : index
    %c0_322 = arith.constant 0 : index
    %347 = vector.load %arg20[%c6_320, %c0_321, %c0_322] : memref<9x16x16xf32, #tpu.memory_space<vmem>>, vector<1x16x16xf32>
    %348 = vector.shape_cast %347 : vector<1x16x16xf32> to vector<16x16xf32>
    %cst_323 = arith.constant dense<0.000000e+00> : vector<1x16xf32>
    %349 = tpu.matmul %346, %348, %cst_323 {dimension_numbers = #tpu.dot_dimension_numbers<[1], [0], [0], [1], [0, 0, 1, 1], [], []>} : vector<1x16xf32>, vector<16x16xf32>, vector<1x16xf32> -> vector<1x16xf32>
    %350 = arith.addf %343, %349 : vector<1x16xf32>
    %c7_324 = arith.constant 7 : index
    %c0_325 = arith.constant 0 : index
    %c0_326 = arith.constant 0 : index
    %351 = vector.load %arg19[%c7_324, %c0_325, %c0_326] : memref<9x1x4xf32, #tpu.memory_space<vmem>>, vector<1x1x4xf32>
    %352 = vector.shape_cast %351 : vector<1x1x4xf32> to vector<1x4xf32>
    %cst_327 = arith.constant dense<0.000000e+00> : vector<1x16xf32>
    %353 = tpu.matmul %352, %300, %cst_327 {dimension_numbers = #tpu.dot_dimension_numbers<[1], [0], [0], [1], [0, 0, 1, 1], [], []>} : vector<1x4xf32>, vector<4x16xf32>, vector<1x16xf32> -> vector<1x16xf32>
    %c7_328 = arith.constant 7 : index
    %c0_329 = arith.constant 0 : index
    %c0_330 = arith.constant 0 : index
    %354 = vector.load %arg20[%c7_328, %c0_329, %c0_330] : memref<9x16x16xf32, #tpu.memory_space<vmem>>, vector<1x16x16xf32>
    %355 = vector.shape_cast %354 : vector<1x16x16xf32> to vector<16x16xf32>
    %cst_331 = arith.constant dense<0.000000e+00> : vector<1x16xf32>
    %356 = tpu.matmul %353, %355, %cst_331 {dimension_numbers = #tpu.dot_dimension_numbers<[1], [0], [0], [1], [0, 0, 1, 1], [], []>} : vector<1x16xf32>, vector<16x16xf32>, vector<1x16xf32> -> vector<1x16xf32>
    %357 = arith.addf %350, %356 : vector<1x16xf32>
    %c8_332 = arith.constant 8 : index
    %c0_333 = arith.constant 0 : index
    %c0_334 = arith.constant 0 : index
    %358 = vector.load %arg19[%c8_332, %c0_333, %c0_334] : memref<9x1x4xf32, #tpu.memory_space<vmem>>, vector<1x1x4xf32>
    %359 = vector.shape_cast %358 : vector<1x1x4xf32> to vector<1x4xf32>
    %cst_335 = arith.constant dense<0.000000e+00> : vector<1x16xf32>
    %360 = tpu.matmul %359, %300, %cst_335 {dimension_numbers = #tpu.dot_dimension_numbers<[1], [0], [0], [1], [0, 0, 1, 1], [], []>} : vector<1x4xf32>, vector<4x16xf32>, vector<1x16xf32> -> vector<1x16xf32>
    %c8_336 = arith.constant 8 : index
    %c0_337 = arith.constant 0 : index
    %c0_338 = arith.constant 0 : index
    %361 = vector.load %arg20[%c8_336, %c0_337, %c0_338] : memref<9x16x16xf32, #tpu.memory_space<vmem>>, vector<1x16x16xf32>
    %362 = vector.shape_cast %361 : vector<1x16x16xf32> to vector<16x16xf32>
    %cst_339 = arith.constant dense<0.000000e+00> : vector<1x16xf32>
    %363 = tpu.matmul %360, %362, %cst_339 {dimension_numbers = #tpu.dot_dimension_numbers<[1], [0], [0], [1], [0, 0, 1, 1], [], []>} : vector<1x16xf32>, vector<16x16xf32>, vector<1x16xf32> -> vector<1x16xf32>
    %364 = arith.addf %357, %363 : vector<1x16xf32>
    %c0_340 = arith.constant 0 : index
    %c0_341 = arith.constant 0 : index
    %365 = vector.load %arg21[%c0_340, %c0_341] : memref<1x16xf32, #tpu.memory_space<vmem>>, vector<1x16xf32>
    %366 = arith.addf %364, %365 : vector<1x16xf32>
    %cst_342 = arith.constant dense<0.000000e+00> : vector<16xf32>
    %367 = vector.multi_reduction <add>, %366, %cst_342 [0] : vector<1x16xf32> to vector<16xf32>
    %368 = vector.shape_cast %367 : vector<16xf32> to vector<1x16xf32>
    %369 = arith.mulf %366, %366 : vector<1x16xf32>
    %cst_343 = arith.constant dense<0.000000e+00> : vector<16xf32>
    %370 = vector.multi_reduction <add>, %369, %cst_343 [0] : vector<1x16xf32> to vector<16xf32>
    %371 = vector.shape_cast %370 : vector<16xf32> to vector<1x16xf32>
    %cst_344 = arith.constant dense<0.000000e+00> : vector<1x8xf32>
    %372 = tpu.matmul %368, %0, %cst_344 {dimension_numbers = #tpu.dot_dimension_numbers<[1], [0], [0], [1], [0, 0, 1, 1], [], []>} : vector<1x16xf32>, vector<16x8xf32>, vector<1x8xf32> -> vector<1x8xf32>
    %cst_345 = arith.constant 2.000000e+00 : f32
    %373 = vector.broadcast %cst_345 : f32 to vector<1x8xf32>
    %374 = arith.divf %372, %373 : vector<1x8xf32>
    %cst_346 = arith.constant dense<0.000000e+00> : vector<1x8xf32>
    %375 = tpu.matmul %371, %0, %cst_346 {dimension_numbers = #tpu.dot_dimension_numbers<[1], [0], [0], [1], [0, 0, 1, 1], [], []>} : vector<1x16xf32>, vector<16x8xf32>, vector<1x8xf32> -> vector<1x8xf32>
    %cst_347 = arith.constant 2.000000e+00 : f32
    %376 = vector.broadcast %cst_347 : f32 to vector<1x8xf32>
    %377 = arith.divf %375, %376 : vector<1x8xf32>
    %378 = arith.mulf %374, %374 : vector<1x8xf32>
    %379 = arith.subf %377, %378 : vector<1x8xf32>
    %cst_348 = arith.constant 0.000000e+00 : f32
    %380 = vector.broadcast %cst_348 : f32 to vector<1x8xf32>
    %381 = arith.maximumf %379, %380 : vector<1x8xf32>
    %cst_349 = arith.constant dense<0.000000e+00> : vector<1x16xf32>
    %382 = tpu.matmul %374, %1, %cst_349 {dimension_numbers = #tpu.dot_dimension_numbers<[1], [0], [0], [1], [0, 0, 1, 1], [], []>} : vector<1x8xf32>, vector<8x16xf32>, vector<1x16xf32> -> vector<1x16xf32>
    %cst_350 = arith.constant dense<0.000000e+00> : vector<1x16xf32>
    %383 = tpu.matmul %381, %1, %cst_350 {dimension_numbers = #tpu.dot_dimension_numbers<[1], [0], [0], [1], [0, 0, 1, 1], [], []>} : vector<1x8xf32>, vector<8x16xf32>, vector<1x16xf32> -> vector<1x16xf32>
    %cst_351 = arith.constant 9.99999974E-6 : f32
    %384 = vector.broadcast %cst_351 : f32 to vector<1x16xf32>
    %385 = arith.addf %383, %384 : vector<1x16xf32>
    %386 = math.rsqrt %385 : vector<1x16xf32>
    %387 = arith.subf %366, %382 : vector<1x16xf32>
    %388 = arith.mulf %387, %386 : vector<1x16xf32>
    %c0_352 = arith.constant 0 : index
    %c0_353 = arith.constant 0 : index
    %389 = vector.load %arg22[%c0_352, %c0_353] : memref<1x16xf32, #tpu.memory_space<vmem>>, vector<1x16xf32>
    %390 = arith.mulf %388, %389 : vector<1x16xf32>
    %c0_354 = arith.constant 0 : index
    %c0_355 = arith.constant 0 : index
    %391 = vector.load %arg23[%c0_354, %c0_355] : memref<1x16xf32, #tpu.memory_space<vmem>>, vector<1x16xf32>
    %392 = arith.addf %390, %391 : vector<1x16xf32>
    %cst_356 = arith.constant 0.000000e+00 : f32
    %393 = vector.broadcast %cst_356 : f32 to vector<1x16xf32>
    %394 = arith.maximumf %392, %393 : vector<1x16xf32>
    %c0_357 = arith.constant 0 : index
    %c0_358 = arith.constant 0 : index
    %c0_359 = arith.constant 0 : index
    %395 = vector.load %arg24[%c0_357, %c0_358, %c0_359] : memref<1x1x16xf32, #tpu.memory_space<vmem>>, vector<1x1x16xf32>
    %396 = vector.shape_cast %395 : vector<1x1x16xf32> to vector<1x16xf32>
    %397 = vector.shape_cast %394 : vector<1x16xf32> to vector<1x1x16xf32>
    tpu.vector_store %arg24[%c0_357, %c0_358, %c0_359], %397 {strides = array<i32>} : memref<1x1x16xf32, #tpu.memory_space<vmem>>, vector<1x1x16xf32>,
    return
  }
  func.func @transform_0(%arg0: i32) -> (i32, i32, i32) {
    %c0_i32 = arith.constant 0 : i32
    %c0_i32_0 = arith.constant 0 : i32
    %c0_i32_1 = arith.constant 0 : i32
    return %arg0, %c0_i32, %c0_i32_0 : i32, i32, i32
  }
  func.func @transform_1(%arg0: i32) -> (i32, i32) {
    %c0_i32 = arith.constant 0 : i32
    %c0_i32_0 = arith.constant 0 : i32
    %c0_i32_1 = arith.constant 0 : i32
    return %c0_i32, %c0_i32_0 : i32, i32
  }
  func.func @transform_2(%arg0: i32) -> (i32, i32) {
    %c0_i32 = arith.constant 0 : i32
    %c0_i32_0 = arith.constant 0 : i32
    %c0_i32_1 = arith.constant 0 : i32
    return %c0_i32, %c0_i32_0 : i32, i32
  }
  func.func @transform_3(%arg0: i32) -> (i32, i32, i32) {
    %c0_i32 = arith.constant 0 : i32
    %c0_i32_0 = arith.constant 0 : i32
    %c0_i32_1 = arith.constant 0 : i32
    %c0_i32_2 = arith.constant 0 : i32
    return %c0_i32, %c0_i32_0, %c0_i32_1 : i32, i32, i32
  }
  func.func @transform_4(%arg0: i32) -> (i32, i32, i32) {
    %c0_i32 = arith.constant 0 : i32
    %c0_i32_0 = arith.constant 0 : i32
    %c0_i32_1 = arith.constant 0 : i32
    %c0_i32_2 = arith.constant 0 : i32
    return %c0_i32, %c0_i32_0, %c0_i32_1 : i32, i32, i32
  }
  func.func @transform_5(%arg0: i32) -> (i32, i32) {
    %c0_i32 = arith.constant 0 : i32
    %c0_i32_0 = arith.constant 0 : i32
    %c0_i32_1 = arith.constant 0 : i32
    return %c0_i32, %c0_i32_0 : i32, i32
  }
  func.func @transform_6(%arg0: i32) -> (i32, i32) {
    %c0_i32 = arith.constant 0 : i32
    %c0_i32_0 = arith.constant 0 : i32
    %c0_i32_1 = arith.constant 0 : i32
    return %c0_i32, %c0_i32_0 : i32, i32
  }
  func.func @transform_7(%arg0: i32) -> (i32, i32) {
    %c0_i32 = arith.constant 0 : i32
    %c0_i32_0 = arith.constant 0 : i32
    %c0_i32_1 = arith.constant 0 : i32
    return %c0_i32, %c0_i32_0 : i32, i32
  }
  func.func @transform_8(%arg0: i32) -> (i32, i32, i32) {
    %c0_i32 = arith.constant 0 : i32
    %c0_i32_0 = arith.constant 0 : i32
    %c0_i32_1 = arith.constant 0 : i32
    %c0_i32_2 = arith.constant 0 : i32
    return %c0_i32, %c0_i32_0, %c0_i32_1 : i32, i32, i32
  }
  func.func @transform_9(%arg0: i32) -> (i32, i32, i32) {
    %c0_i32 = arith.constant 0 : i32
    %c0_i32_0 = arith.constant 0 : i32
    %c0_i32_1 = arith.constant 0 : i32
    %c0_i32_2 = arith.constant 0 : i32
    return %c0_i32, %c0_i32_0, %c0_i32_1 : i32, i32, i32
  }
  func.func @transform_10(%arg0: i32) -> (i32, i32) {
    %c0_i32 = arith.constant 0 : i32
    %c0_i32_0 = arith.constant 0 : i32
    %c0_i32_1 = arith.constant 0 : i32
    return %c0_i32, %c0_i32_0 : i32, i32
  }
  func.func @transform_11(%arg0: i32) -> (i32, i32) {
    %c0_i32 = arith.constant 0 : i32
    %c0_i32_0 = arith.constant 0 : i32
    %c0_i32_1 = arith.constant 0 : i32
    return %c0_i32, %c0_i32_0 : i32, i32
  }
  func.func @transform_12(%arg0: i32) -> (i32, i32) {
    %c0_i32 = arith.constant 0 : i32
    %c0_i32_0 = arith.constant 0 : i32
    %c0_i32_1 = arith.constant 0 : i32
    return %c0_i32, %c0_i32_0 : i32, i32
  }
  func.func @transform_13(%arg0: i32) -> (i32, i32, i32) {
    %c0_i32 = arith.constant 0 : i32
    %c0_i32_0 = arith.constant 0 : i32
    %c0_i32_1 = arith.constant 0 : i32
    %c0_i32_2 = arith.constant 0 : i32
    return %c0_i32, %c0_i32_0, %c0_i32_1 : i32, i32, i32
  }
  func.func @transform_14(%arg0: i32) -> (i32, i32, i32) {
    %c0_i32 = arith.constant 0 : i32
    %c0_i32_0 = arith.constant 0 : i32
    %c0_i32_1 = arith.constant 0 : i32
    %c0_i32_2 = arith.constant 0 : i32
    return %c0_i32, %c0_i32_0, %c0_i32_1 : i32, i32, i32
  }
  func.func @transform_15(%arg0: i32) -> (i32, i32) {
    %c0_i32 = arith.constant 0 : i32
    %c0_i32_0 = arith.constant 0 : i32
    %c0_i32_1 = arith.constant 0 : i32
    return %c0_i32, %c0_i32_0 : i32, i32
  }
  func.func @transform_16(%arg0: i32) -> (i32, i32) {
    %c0_i32 = arith.constant 0 : i32
    %c0_i32_0 = arith.constant 0 : i32
    %c0_i32_1 = arith.constant 0 : i32
    return %c0_i32, %c0_i32_0 : i32, i32
  }
  func.func @transform_17(%arg0: i32) -> (i32, i32) {
    %c0_i32 = arith.constant 0 : i32
    %c0_i32_0 = arith.constant 0 : i32
    %c0_i32_1 = arith.constant 0 : i32
    return %c0_i32, %c0_i32_0 : i32, i32
  }
  func.func @transform_18(%arg0: i32) -> (i32, i32, i32) {
    %c0_i32 = arith.constant 0 : i32
    %c0_i32_0 = arith.constant 0 : i32
    %c0_i32_1 = arith.constant 0 : i32
    %c0_i32_2 = arith.constant 0 : i32
    return %c0_i32, %c0_i32_0, %c0_i32_1 : i32, i32, i32
  }
  func.func @transform_19(%arg0: i32) -> (i32, i32, i32) {
    %c0_i32 = arith.constant 0 : i32
    %c0_i32_0 = arith.constant 0 : i32
    %c0_i32_1 = arith.constant 0 : i32
    %c0_i32_2 = arith.constant 0 : i32
    return %c0_i32, %c0_i32_0, %c0_i32_1 : i32, i32, i32
  }
  func.func @transform_20(%arg0: i32) -> (i32, i32) {
    %c0_i32 = arith.constant 0 : i32
    %c0_i32_0 = arith.constant 0 : i32
    %c0_i32_1 = arith.constant 0 : i32
    return %c0_i32, %c0_i32_0 : i32, i32
  }
  func.func @transform_21(%arg0: i32) -> (i32, i32) {
    %c0_i32 = arith.constant 0 : i32
    %c0_i32_0 = arith.constant 0 : i32
    %c0_i32_1 = arith.constant 0 : i32
    return %c0_i32, %c0_i32_0 : i32, i32
  }
  func.func @transform_22(%arg0: i32) -> (i32, i32) {
    %c0_i32 = arith.constant 0 : i32
    %c0_i32_0 = arith.constant 0 : i32
    %c0_i32_1 = arith.constant 0 : i32
    return %c0_i32, %c0_i32_0 : i32, i32
  }
  func.func @transform_23(%arg0: i32) -> (i32, i32, i32) {
    %c0_i32 = arith.constant 0 : i32
    %c0_i32_0 = arith.constant 0 : i32
    %c0_i32_1 = arith.constant 0 : i32
    return %arg0, %c0_i32, %c0_i32_0 : i32, i32, i32
  }
}

</mosaic_0001>

<bundles_post_ra>
// kernel: discriminator_context_forward.3
= control target key start
LH: loop header
LB: loop body
LE: loop exit
PB: predicated region body
PF: predicated region fallthrough
CT: control target
= control target key end

     0   :  { %vm30_vm0 = vcmask 1041409   ;;  %vm33_vm1 = vcmask 123904   ;;  %vm74_vm2 = vcmask 1024   ;;  %s133_s0 = inlined_call_operand.vmem [shape: f32[2,2,16], index: 0, kind: input, shape index: {}]   ;;  %s134_s1 = inlined_call_operand.vmem [shape: f32[1,16], index: 1, kind: input, shape index: {}]   ;;  %s135_s2 = inlined_call_operand.<no memory space> [shape: f32[1,1], index: 2, kind: input, shape index: {}]   ;;  %s136_s3 = inlined_call_operand.vmem [shape: f32[2,1], index: 3, kind: output, shape index: {}]  }
   0x1   :  { %v80_v0 = vld [vmem:[%s134_s1] ss:$0 sm:$0xff]  ;;  %v18_v2 = vld [vmem:[%s133_s0 + $0x2] sm:$0x1]  ;;  %v8_v3 = vstv %s135_s2  ;;  %v52_v6 = vld [vmem:[%s133_s0 + $0x1] sm:$0x1] }
   0x2   :  { %v17_v1 = vld [vmem:[%s133_s0] sm:$0x1]  ;;  %v26_v5 = vmul.f32 %v80_v0, %v18_v2  ;;  %v53_v7 = vld [vmem:[%s133_s0 + $0x3] sm:$0x1]  ;;  %9 = vst [vmem:[#allocation2] sm:$0x1] %v8_v3  ;;  %v54_v8 = vmul.f32 %v80_v0, %v52_v6 }
   0x3   :  { %v25_v4 = vmul.f32 %v80_v0, %v17_v1  ;;  %v55_v9 = vmul.f32 %v80_v0, %v53_v7 }
   0x4   :  { %v29_v10 = vrot.slane %v26_v5, 7 }
   0x5   :  { %v58_v11 = vrot.slane %v55_v9, 7 }
   0x6   :  { %v31_v12 = vsel %vm30_vm0, %v29_v10, %v25_v4 }
   0x7   :  { %v34_v13 = vsel %vm33_vm1, %v31_v12, 0.0  ;;  %v59_v14 = vsel %vm30_vm0, %v58_v11, %v54_v8 }
   0x8   :  { %35 = vadd.xlane.f32.xlu0 %v34_v13  ;;  %v61_v15 = vsel %vm33_vm1, %v59_v14, 0.0 }
   0x9   :  { %v81_v16 = vld [vmem:[#allocation2] ss:$0 sm:$0xff] }
   0xc   :  { %62 = vadd.xlane.f32.xlu0 %v61_v15 }
  0x91   :  { %v36_v17 = vpop.xlane.xlu0 %35 }
  0x92   :  { %v44_v18 = vadd.f32 %v81_v16, %v36_v17 }
  0x94   :  { %v82_v19 = vmul.f32 -1.442695, %v44_v18 }
  0x95   :  { %v63_v20 = vpop.xlane.xlu0 %62 }
  0x96   :  { %84 = vpow2.f32 %v82_v19  ;;  %v64_v21 = vadd.f32 %v81_v16, %v63_v20 }
  0x98   :  { %v83_v22 = vmul.f32 -1.442695, %v64_v21 }
  0x9a   :  { %86 = vpow2.f32 %v83_v22 }
  0xa3   :  { %v85_v23 = vpop.eup %84 }
  0xa4   :  { %v48_v24 = vadd.f32 1.0, %v85_v23 }
  0xa6   :  { %88 = vrcp.f32 %v48_v24 }
  0xa7   :  { %v87_v25 = vpop.eup %86 }
  0xa8   :  { %v68_v26 = vadd.f32 1.0, %v87_v25 }
  0xaa   :  { %90 = vrcp.f32 %v68_v26 }
  0xb3   :  { %v89_v27 = vpop.eup %88 }
  0xb7   :  { %v91_v28 = vpop.eup %90 }
  0xb8   :  { %v71_v29 = vadd.f32 %v91_v28, %v89_v27 }
  0xba   :  { %v73_v30 = vmul.f32 0.5, %v71_v29 }
  0xbc   :  { %75 = vst.msk [vmem:[%s136_s3] sm:$0x3] %vm74_vm2, %v73_v30 }

// kernel: discriminator_context_forward.2
= control target key start
LH: loop header
LB: loop body
LE: loop exit
PB: predicated region body
PF: predicated region fallthrough
CT: control target
= control target key end

     0   :  { %s13079_s0 = inlined_call_operand.vmem [shape: f32[4,256,4], index: 0, kind: input, shape index: {}]   ;;  %s13080_s1 = inlined_call_operand.vmem [shape: f32[16,8], index: 1, kind: input, shape index: {}]   ;;  %s13081_s2 = inlined_call_operand.vmem [shape: f32[8,16], index: 2, kind: input, shape index: {}]   ;;  %s13082_s3 = inlined_call_operand.vmem [shape: f32[9,64,256], index: 3, kind: input, shape index: {}]   ;;  %s13083_s4 = inlined_call_operand.vmem [shape: f32[9,4,16], index: 4, kind: input, shape index: {}]   ;;  %s13084_s5 = inlined_call_operand.vmem [shape: f32[1,16], index: 5, kind: input, shape index: {}]   ;;  %s13085_s6 = inlined_call_operand.vmem [shape: f32[1,16], index: 6, kind: input, shape index: {}]   ;;  %s13086_s7 = inlined_call_operand.vmem [shape: f32[1,16], index: 7, kind: input, shape index: {}]   ;;  %s13087_s8 = inlined_call_operand.vmem [shape: f32[9,16,64], index: 8, kind: input, shape index: {}]   ;;  %s13088_s9 = inlined_call_operand.vmem [shape: f32[9,16,16], index: 9, kind: input, shape index: {}]   ;;  %s13089_s10 = inlined_call_operand.vmem [shape: f32[1,16], index: 10, kind: input, shape index: {}]   ;;  %s13090_s11 = inlined_call_operand.vmem [shape: f32[1,16], index: 11, kind: input, shape index: {}]   ;;  %s13091_s12 = inlined_call_operand.vmem [shape: f32[1,16], index: 12, kind: input, shape index: {}]   ;;  %s13092_s13 = inlined_call_operand.vmem [shape: f32[9,4,16], index: 13, kind: input, shape index: {}]   ;;  %s13093_s14 = inlined_call_operand.vmem [shape: f32[9,16,16], index: 14, kind: input, shape index: {}]   ;;  %s13094_s15 = inlined_call_operand.vmem [shape: f32[1,16], index: 15, kind: input, shape index: {}]   ;;  %s13095_s16 = inlined_call_operand.vmem [shape: f32[1,16], index: 16, kind: input, shape index: {}]   ;;  %s13096_s17 = inlined_call_operand.vmem [shape: f32[1,16], index: 17, kind: input, shape index: {}]   ;;  %s13097_s18 = inlined_call_operand.vmem [shape: f32[9,1,4], index: 18, kind: input, shape index: {}]   ;;  %s13098_s19 = inlined_call_operand.vmem [shape: f32[9,16,16], index: 19, kind: input, shape index: {}]   ;;  %s13099_s20 = inlined_call_operand.vmem [shape: f32[1,16], index: 20, kind: input, shape index: {}]   ;;  %s13100_s21 = inlined_call_operand.vmem [shape: f32[1,16], index: 21, kind: input, shape index: {}]   ;;  %s13101_s22 = inlined_call_operand.vmem [shape: f32[1,16], index: 22, kind: input, shape index: {}]   ;;  %s13102_s23 = inlined_call_operand.vmem [shape: f32[4,1,16], index: 23, kind: output, shape index: {}]  }
   0x1   :  { %13107 = sst [smem:[#allocation8_spill]] %s13079_s0 }
   0x2   :  { %13108 = sst [smem:[#allocation9_spill]] %s13080_s1 }
   0x3   :  { %13109 = sst [smem:[#allocation10_spill]] %s13081_s2 }
   0x4   :  { %13110 = sst [smem:[#allocation11_spill]] %s13082_s3 }
   0x5   :  { %13111 = sst [smem:[#allocation12_spill]] %s13083_s4  ;;  %s10992_s4 = smov 0  }
   0x6   :  { %13112 = sst [smem:[#allocation13_spill]] %s13084_s5 }
   0x7   :  { %13113 = sst [smem:[#allocation14_spill]] %s13085_s6 }
   0x8   :  { %13114 = sst [smem:[#allocation15_spill]] %s13086_s7 }
   0x9 LB: > { %s8856_s30 = sadd.s32 4294967295, %s10868_s4   ;;  %p8860_p0 = scmp.ge.s32.totalorder %s10868_s4, 1  ;;  %s10868_s4 = sphi %s10992_s4, %s33_s4  }
   0xa   : > { %p637_p1 = scmp.lt.s32.totalorder %s10868_s4, 5 }
   0xc   : > { %p638_p2 = pnand %p8860_p0, %p637_p1 }
   0xe   : > { %641 = sbr.rel (%p638_p2) target bundleno = 6365 (0x18dd), region = 112 }
  0x13   : > { %p699_p3 = scmp.lt.s32.totalorder %s8856_s30, 3  ;;  %s13115_s5 = sld [smem:[#allocation11_spill]]  ;;  %vm1013_vm0 = vcmask 1043456   ;;  %vm988_vm1 = vcmask 31744   ;;  %vm10871_vm2 = vmmov 0   ;;  %vm3117_vm3 = vcmask 130048  }
  0x14   : > { %s13116_s7 = sld [smem:[#allocation8_spill]]  ;;  %vm3320_vm4 = vcmask 64512   ;;  %vm3532_vm5 = vcmask 523264   ;;  %vm6787_vm6 = vcmask 125952   ;;  %vm8807_vm7 = vcmask 122880  }
  0x15   : > { %s13136_s30 = smov (!%p699_p3, %s8856_s30), 3  ;;  %s13125_s1 = sld [smem:[#allocation9_spill]] }
  0x16   : > { %s9268_s2 = sshll.u32 %s13136_s30, 8  ;;  %s13132_s0 = sld [smem:[#allocation10_spill]] }
  0x17   : > { %s13134_s24 = sld [smem:[#allocation15_spill]]  ;;  %s706_s27 = scalar_lea.vmem %s13102_s23, %s13136_s30 }
  0x19   : > { %v743_v0 = vld [vmem:[%s13115_s5 + $0x8] sm:$0xff]  ;;  %v742_v34 = vld [vmem:[%s13115_s5] sm:$0xff]  ;;  %v745_v36 = vld [vmem:[%s13115_s5 + $0x18] sm:$0xff] }
  0x1a   : > { %v8864_v1 = vld [vmem:[%s13115_s5 + $0x88] sm:$0xff]  ;;  %822 = vmatprep.mubr.f32.mxu0 %v743_v0  ;;  %s11012_s28 = scalar_lea.vmem %s13116_s7, %s9268_s2  ;;  %v8863_v35 = vld [vmem:[%s13115_s5 + $0x80] sm:$0xff]  ;;  %v8866_v37 = vld [vmem:[%s13115_s5 + $0x98] sm:$0xff]  ;;  %s13117_s7 = sld [smem:[#allocation12_spill]] }
  0x1b   : > { %945 = vmatprep.mubr.f32.mxu1 %v8864_v1  ;;  %v11015_v2 = vld [vmem:[%s11012_s28 + $0xf8] sm:$0xff]  ;;  %v11021_v4 = vld [vmem:[%s11012_s28 + $0xf0] sm:$0xff]  ;;  %v11031_v6 = vld [vmem:[%s11012_s28 + $0xe8] sm:$0xff] }
  0x1c   : > { %v11018_v3 = vld [vmem:[%s11012_s28 + $0x78] sm:$0xff]  ;;  %9269 = vmatprep.subr.mxu0 %v11015_v2  ;;  %9325 = vmatprep.subr.mxu1 %v11015_v2  ;;  %v11026_v5 = vld [vmem:[%s11012_s28 + $0x70] sm:$0xff]  ;;  %v11036_v7 = vld [vmem:[%s11012_s28 + $0x68] sm:$0xff] }
  0x1d   : > { %9270 = vmatpush3.msra.mxu0 %v11018_v3  ;;  %9326 = vmatpush3.msra.mxu1 %v11018_v3  ;;  %v11041_v8 = vld [vmem:[%s11012_s28 + $0xe0] sm:$0xff]  ;;  %v11051_v10 = vld [vmem:[%s11012_s28 + $0xd8] sm:$0xff]  ;;  %v11061_v12 = vld [vmem:[%s11012_s28 + $0xd0] sm:$0xff] }
  0x1e   : > { %9271 = vmatprep.subr.mxu0 %v11021_v4  ;;  %9327 = vmatprep.subr.mxu1 %v11021_v4  ;;  %v11046_v9 = vld [vmem:[%s11012_s28 + $0x60] sm:$0xff]  ;;  %v11056_v11 = vld [vmem:[%s11012_s28 + $0x58] sm:$0xff]  ;;  %v11066_v13 = vld [vmem:[%s11012_s28 + $0x50] sm:$0xff] }
  0x1f   : > { %9272 = vmatpush3.msra.mxu0 %v11026_v5  ;;  %9328 = vmatpush3.msra.mxu1 %v11026_v5  ;;  %v11071_v14 = vld [vmem:[%s11012_s28 + $0xc8] sm:$0xff]  ;;  %v11081_v16 = vld [vmem:[%s11012_s28 + $0xc0] sm:$0xff]  ;;  %v11091_v18 = vld [vmem:[%s11012_s28 + $0xb8] sm:$0xff] }
  0x20   : > { %9273 = vmatprep.subr.mxu0 %v11031_v6  ;;  %9329 = vmatprep.subr.mxu1 %v11031_v6  ;;  %v11076_v15 = vld [vmem:[%s11012_s28 + $0x48] sm:$0xff]  ;;  %v11086_v17 = vld [vmem:[%s11012_s28 + $0x40] sm:$0xff]  ;;  %v11096_v19 = vld [vmem:[%s11012_s28 + $0x38] sm:$0xff] }
  0x21   : > { %9274 = vmatpush3.msra.mxu0 %v11036_v7  ;;  %9330 = vmatpush3.msra.mxu1 %v11036_v7  ;;  %v11101_v20 = vld [vmem:[%s11012_s28 + $0xb0] sm:$0xff]  ;;  %v11111_v22 = vld [vmem:[%s11012_s28 + $0xa8] sm:$0xff]  ;;  %v11121_v24 = vld [vmem:[%s11012_s28 + $0xa0] sm:$0xff] }
  0x22   : > { %9275 = vmatprep.subr.mxu0 %v11041_v8  ;;  %9331 = vmatprep.subr.mxu1 %v11041_v8  ;;  %v11106_v21 = vld [vmem:[%s11012_s28 + $0x30] sm:$0xff]  ;;  %v11116_v23 = vld [vmem:[%s11012_s28 + $0x28] sm:$0xff]  ;;  %v11126_v25 = vld [vmem:[%s11012_s28 + $0x20] sm:$0xff] }
  0x23   : > { %9276 = vmatpush3.msra.mxu0 %v11046_v9  ;;  %9332 = vmatpush3.msra.mxu1 %v11046_v9  ;;  %v11131_v26 = vld [vmem:[%s11012_s28 + $0x98] sm:$0xff]  ;;  %v11141_v28 = vld [vmem:[%s11012_s28 + $0x90] sm:$0xff]  ;;  %v11151_v30 = vld [vmem:[%s11012_s28 + $0x88] sm:$0xff] }
  0x24   : > { %9277 = vmatprep.subr.mxu0 %v11051_v10  ;;  %9333 = vmatprep.subr.mxu1 %v11051_v10  ;;  %v11136_v27 = vld [vmem:[%s11012_s28 + $0x18] sm:$0xff]  ;;  %v11146_v29 = vld [vmem:[%s11012_s28 + $0x10] sm:$0xff]  ;;  %v11156_v31 = vld [vmem:[%s11012_s28 + $0x8] sm:$0xff] }
  0x25   : > { %9278 = vmatpush3.msra.mxu0 %v11056_v11  ;;  %9334 = vmatpush3.msra.mxu1 %v11056_v11  ;;  %v11161_v32 = vld [vmem:[%s11012_s28 + $0x80] sm:$0xff]  ;;  %v744_v39 = vld [vmem:[%s13115_s5 + $0x10] sm:$0xff]  ;;  %v747_v41 = vld [vmem:[%s13115_s5 + $0x28] sm:$0xff] }
  0x26   : > { %9279 = vmatprep.subr.mxu0 %v11061_v12  ;;  %9335 = vmatprep.subr.mxu1 %v11061_v12  ;;  %v11166_v33 = vld [vmem:[%s11012_s28] sm:$0xff]  ;;  %v8865_v40 = vld [vmem:[%s13115_s5 + $0x90] sm:$0xff]  ;;  %v8868_v42 = vld [vmem:[%s13115_s5 + $0xa8] sm:$0xff] }
  0x27   : > { %9280 = vmatpush3.msra.mxu0 %v11066_v13  ;;  %9336 = vmatpush3.msra.mxu1 %v11066_v13  ;;  %v8879_v38 = vld [vmem:[%s13117_s7 + $0x4] sm:$0xf]  ;;  %v749_v45 = vld [vmem:[%s13115_s5 + $0x38] sm:$0xff]  ;;  %v748_v47 = vld [vmem:[%s13115_s5 + $0x30] sm:$0xff] }
  0x28   : > { %9281 = vmatprep.subr.mxu0 %v11071_v14  ;;  %9337 = vmatprep.subr.mxu1 %v11071_v14  ;;  %v746_v43 = vld [vmem:[%s13115_s5 + $0x20] sm:$0xff]  ;;  %v8870_v46 = vld [vmem:[%s13115_s5 + $0xb8] sm:$0xff]  ;;  %v8869_v48 = vld [vmem:[%s13115_s5 + $0xb0] sm:$0xff] }
  0x29   : > { %9282 = vmatpush3.msra.mxu0 %v11076_v15  ;;  %9338 = vmatpush3.msra.mxu1 %v11076_v15  ;;  %v8867_v44 = vld [vmem:[%s13115_s5 + $0xa0] sm:$0xff]  ;;  %v751_v49 = vld [vmem:[%s13115_s5 + $0x48] sm:$0xff]  ;;  %v753_v53 = vld [vmem:[%s13115_s5 + $0x58] sm:$0xff] }
  0x2a   : > { %9283 = vmatprep.subr.mxu0 %v11081_v16  ;;  %9339 = vmatprep.subr.mxu1 %v11081_v16  ;;  %v8872_v50 = vld [vmem:[%s13115_s5 + $0xc8] sm:$0xff]  ;;  %v750_v51 = vld [vmem:[%s13115_s5 + $0x40] sm:$0xff]  ;;  %v8874_v54 = vld [vmem:[%s13115_s5 + $0xd8] sm:$0xff] }
  0x2b   : > { %9284 = vmatpush3.msra.mxu0 %v11086_v17  ;;  %9340 = vmatpush3.msra.mxu1 %v11086_v17  ;;  %v8871_v52 = vld [vmem:[%s13115_s5 + $0xc0] sm:$0xff]  ;;  %v752_v55 = vld [vmem:[%s13115_s5 + $0x50] sm:$0xff]  ;;  %v755_v57 = vld [vmem:[%s13115_s5 + $0x68] sm:$0xff] }
  0x2c   : > { %9285 = vmatprep.subr.mxu0 %v11091_v18  ;;  %9341 = vmatprep.subr.mxu1 %v11091_v18  ;;  %v8873_v56 = vld [vmem:[%s13115_s5 + $0xd0] sm:$0xff]  ;;  %v8876_v58 = vld [vmem:[%s13115_s5 + $0xe8] sm:$0xff]  ;;  %v754_v59 = vld [vmem:[%s13115_s5 + $0x60] sm:$0xff] }
  0x2d   : > { %9286 = vmatpush3.msra.mxu0 %v11096_v19  ;;  %9342 = vmatpush3.msra.mxu1 %v11096_v19  ;;  %v8875_v60 = vld [vmem:[%s13115_s5 + $0xe0] sm:$0xff]  ;;  %v757_v61 = vld [vmem:[%s13115_s5 + $0x78] sm:$0xff]  ;;  %v756_v63 = vld [vmem:[%s13115_s5 + $0x70] sm:$0xff] }
  0x2e   : > { %9287 = vmatprep.subr.mxu0 %v11101_v20  ;;  %9343 = vmatprep.subr.mxu1 %v11101_v20  ;;  %v8878_v62 = vld [vmem:[%s13115_s5 + $0xf8] sm:$0xff]  ;;  %v8877_v0 = vld [vmem:[%s13115_s5 + $0xf0] sm:$0xff]  ;;  %v863_v1 = vld [vmem:[%s13117_s7] sm:$0xf] }
  0x2f   : > { %9288 = vmatpush3.msra.mxu0 %v11106_v21  ;;  %9344 = vmatpush3.msra.mxu1 %v11106_v21 }
  0x30   : > { %9289 = vmatprep.subr.mxu0 %v11111_v22  ;;  %9345 = vmatprep.subr.mxu1 %v11111_v22 }
  0x31   : > { %9290 = vmatpush3.msra.mxu0 %v11116_v23  ;;  %9346 = vmatpush3.msra.mxu1 %v11116_v23 }
  0x32   : > { %9291 = vmatprep.subr.mxu0 %v11121_v24  ;;  %9347 = vmatprep.subr.mxu1 %v11121_v24 }
  0x33   : > { %9292 = vmatpush3.msra.mxu0 %v11126_v25  ;;  %9348 = vmatpush3.msra.mxu1 %v11126_v25 }
  0x34   : > { %9293 = vmatprep.subr.mxu0 %v11131_v26  ;;  %9349 = vmatprep.subr.mxu1 %v11131_v26 }
  0x35   : > { %9294 = vmatpush3.msra.mxu0 %v11136_v27  ;;  %9350 = vmatpush3.msra.mxu1 %v11136_v27 }
  0x36   : > { %9295 = vmatprep.subr.mxu0 %v11141_v28  ;;  %9351 = vmatprep.subr.mxu1 %v11141_v28 }
  0x37   : > { %9296 = vmatpush3.msra.mxu0 %v11146_v29  ;;  %9352 = vmatpush3.msra.mxu1 %v11146_v29 }
  0x38   : > { %9297 = vmatprep.subr.mxu0 %v11151_v30  ;;  %9353 = vmatprep.subr.mxu1 %v11151_v30 }
  0x39   : > { %9298 = vmatpush3.msra.mxu0 %v11156_v31  ;;  %9354 = vmatpush3.msra.mxu1 %v11156_v31 }
  0x3a   : > { %9299 = vmatprep.subr.mxu0 %v11161_v32  ;;  %9355 = vmatprep.subr.mxu1 %v11161_v32 }
  0x3b   : > { %9300 = vmatpush3.msra.mxu0 %v11166_v33  ;;  %9356 = vmatpush3.msra.mxu1 %v11166_v33 }
  0x3c   : > { %823 = vmatmul.mubr.f32.vlgmr.msra.gmra.mxu0 %v742_v34  ;;  %946 = vmatmul.mubr.f32.vlgmr.msra.gmra.mxu1 %v8863_v35 }
  0x3d   : > { %827 = vmatprep.mubr.f32.mxu0 %v745_v36  ;;  %950 = vmatprep.mubr.f32.mxu1 %v8866_v37 }
  0x3e   : > { %10119 = vmatprep.subr.msk.mxu0 %vm1013_vm0, %v8879_v38  ;;  %10133 = vmatprep.subr.msk.mxu1 %vm1013_vm0, %v863_v1 }
  0x3f   : > { %10120 = vmatpush3.msk.msra.mxu0 %vm1013_vm0, %v8879_v38  ;;  %10134 = vmatpush3.msk.msra.mxu1 %vm1013_vm0, %v863_v1 }
  0x40   : > { %828 = vmatmul.mubr.f32.gmra.mxu0 %v744_v39  ;;  %951 = vmatmul.mubr.f32.gmra.mxu1 %v8865_v40 }
  0x41   : > { %832 = vmatprep.mubr.f32.mxu0 %v747_v41  ;;  %955 = vmatprep.mubr.f32.mxu1 %v8868_v42 }
  0x42   : > { %9399 = vmatprep.subr.mxu0 %v11015_v2 }
  0x44   : > { %833 = vmatmul.mubr.f32.gmra.mxu0 %v746_v43  ;;  %956 = vmatmul.mubr.f32.gmra.mxu1 %v8867_v44 }
  0x45   : > { %837 = vmatprep.mubr.f32.mxu0 %v749_v45  ;;  %960 = vmatprep.mubr.f32.mxu1 %v8870_v46 }
  0x48   : > { %838 = vmatmul.mubr.f32.gmra.mxu0 %v748_v47  ;;  %961 = vmatmul.mubr.f32.gmra.mxu1 %v8869_v48 }
  0x49   : > { %842 = vmatprep.mubr.f32.mxu0 %v751_v49  ;;  %965 = vmatprep.mubr.f32.mxu1 %v8872_v50 }
  0x4c   : > { %843 = vmatmul.mubr.f32.gmra.mxu0 %v750_v51  ;;  %966 = vmatmul.mubr.f32.gmra.mxu1 %v8871_v52 }
  0x4d   : > { %847 = vmatprep.mubr.f32.mxu0 %v753_v53  ;;  %970 = vmatprep.mubr.f32.mxu1 %v8874_v54 }
  0x50   : > { %848 = vmatmul.mubr.f32.gmra.mxu0 %v752_v55  ;;  %971 = vmatmul.mubr.f32.gmra.mxu1 %v8873_v56 }
  0x51   : > { %852 = vmatprep.mubr.f32.mxu0 %v755_v57  ;;  %975 = vmatprep.mubr.f32.mxu1 %v8876_v58 }
  0x54   : > { %853 = vmatmul.mubr.f32.gmra.mxu0 %v754_v59  ;;  %976 = vmatmul.mubr.f32.gmra.mxu1 %v8875_v60 }
  0x55   : > { %857 = vmatprep.mubr.f32.mxu0 %v757_v61  ;;  %980 = vmatprep.mubr.f32.mxu1 %v8878_v62 }
  0x58   : > { %858 = vmatmul.mubr.f32.gmra.mxu0 %v756_v63  ;;  %981 = vmatmul.mubr.f32.gmra.mxu1 %v8877_v0 }
  0xfc   : > { %v9301_v34 = vpop.f32.mrf.mxu0  ;;  %v9357_v35 = vpop.f32.mrf.mxu1 }
  0xfe   : > { %v9302_v36 = vpop.f32.mrf.mxu0  ;;  %v9358_v37 = vpop.f32.mrf.mxu1 }
  0xff   : > { %v9303_v38 = vadd.f32 %v9302_v36, %v9301_v34  ;;  %v9359_v39 = vadd.f32 %v9358_v37, %v9357_v35 }
 0x100   : > { %v9304_v40 = vpop.f32.mrf.mxu0  ;;  %v9360_v41 = vpop.f32.mrf.mxu1 }
 0x101   : > { %10121 = vmatprep.mubr.msk.f32.mxu0 %vm988_vm1, %v9359_v39  ;;  %10135 = vmatprep.mubr.msk.f32.mxu1 %vm988_vm1, %v9303_v38 }
 0x102   : > { %v9305_v42 = vpop.f32.mrf.mxu0  ;;  %v9361_v43 = vpop.f32.mrf.mxu1 }
 0x103   : > { %v9306_v44 = vadd.f32 %v9305_v42, %v9304_v40  ;;  %v9362_v45 = vadd.f32 %v9361_v43, %v9360_v41 }
 0x104   : > { %v9307_v46 = vpop.f32.mrf.mxu0  ;;  %v9363_v47 = vpop.f32.mrf.mxu1 }
 0x105   : > { %10122 = vmatmul.mubr.msk.f32.vlgmr.msra.gmra.mxu0 %vm988_vm1, %v9362_v45  ;;  %10136 = vmatmul.mubr.msk.f32.vlgmr.msra.gmra.mxu1 %vm988_vm1, %v9306_v44 }
 0x106   : > { %9400 = vmatpush3.msra.mxu0 %v11018_v3  ;;  %v9308_v48 = vpop.f32.mrf.mxu0  ;;  %v9364_v49 = vpop.f32.mrf.mxu1 }
 0x107   : > { %v9309_v50 = vadd.f32 %v9308_v48, %v9307_v46  ;;  %v9365_v51 = vadd.f32 %v9364_v49, %v9363_v47  ;;  %9401 = vmatprep.subr.mxu0 %v11021_v4 }
 0x108   : > { %9402 = vmatpush3.msra.mxu0 %v11026_v5  ;;  %v9310_v52 = vpop.f32.mrf.mxu0  ;;  %v9366_v53 = vpop.f32.mrf.mxu1 }
 0x109   : > { %9403 = vmatprep.subr.mxu0 %v11031_v6  ;;  %10124 = vmatprep.mubr.msk.f32.mxu0 %vm988_vm1, %v9365_v51  ;;  %v8898_v51 = vld [vmem:[%s13115_s5 + $0x100] sm:$0xff] }
 0x10a   : > { %9404 = vmatpush3.msra.mxu0 %v11036_v7  ;;  %v9311_v54 = vpop.f32.mrf.mxu0  ;;  %v9367_v55 = vpop.f32.mrf.mxu1  ;;  %10138 = vmatprep.mubr.msk.f32.mxu1 %vm988_vm1, %v9309_v50  ;;  %v8899_v50 = vld [vmem:[%s13115_s5 + $0x108] sm:$0xff] }
 0x10b   : > { %v9312_v56 = vadd.f32 %v9311_v54, %v9310_v52  ;;  %v9368_v57 = vadd.f32 %v9367_v55, %v9366_v53  ;;  %9405 = vmatprep.subr.mxu0 %v11041_v8  ;;  %v8901_v52 = vld [vmem:[%s13115_s5 + $0x118] sm:$0xff]  ;;  %v8900_v53 = vld [vmem:[%s13115_s5 + $0x110] sm:$0xff]  ;;  %v8903_v54 = vld [vmem:[%s13115_s5 + $0x128] sm:$0xff] }
 0x10c   : > { %9406 = vmatpush3.msra.mxu0 %v11046_v9  ;;  %v9313_v58 = vpop.f32.mrf.mxu0  ;;  %v9369_v59 = vpop.f32.mrf.mxu1  ;;  %v8902_v55 = vld [vmem:[%s13115_s5 + $0x120] sm:$0xff] }
 0x10d   : > { %9407 = vmatprep.subr.mxu0 %v11051_v10  ;;  %10125 = vmatmul.mubr.msk.f32.gmra.mxu0 %vm988_vm1, %v9368_v57  ;;  %v8904_v57 = vld [vmem:[%s13115_s5 + $0x130] sm:$0xff] }
 0x10e   : > { %10139 = vmatmul.mubr.msk.f32.gmra.mxu1 %vm988_vm1, %v9312_v56  ;;  %9408 = vmatpush3.msra.mxu0 %v11056_v11  ;;  %v9314_v60 = vpop.f32.mrf.mxu0  ;;  %v9370_v61 = vpop.f32.mrf.mxu1  ;;  %v8905_v56 = vld [vmem:[%s13115_s5 + $0x138] sm:$0xff] }
 0x10f   : > { %v9315_v62 = vadd.f32 %v9314_v60, %v9313_v58  ;;  %v9371_v63 = vadd.f32 %v9370_v61, %v9369_v59  ;;  %9409 = vmatprep.subr.mxu0 %v11061_v12  ;;  %v8907_v58 = vld [vmem:[%s13115_s5 + $0x148] sm:$0xff]  ;;  %v8906_v59 = vld [vmem:[%s13115_s5 + $0x140] sm:$0xff]  ;;  %v8909_v60 = vld [vmem:[%s13115_s5 + $0x158] sm:$0xff] }
 0x110   : > { %9410 = vmatpush3.msra.mxu0 %v11066_v13  ;;  %v9316_v0 = vpop.f32.mrf.mxu0  ;;  %v9372_v1 = vpop.f32.mrf.mxu1  ;;  %v8908_v61 = vld [vmem:[%s13115_s5 + $0x150] sm:$0xff] }
 0x111   : > { %9411 = vmatprep.subr.mxu0 %v11071_v14  ;;  %10127 = vmatprep.mubr.msk.f32.mxu0 %vm988_vm1, %v9371_v63  ;;  %v8910_v63 = vld [vmem:[%s13115_s5 + $0x160] sm:$0xff] }
 0x112   : > { %9412 = vmatpush3.msra.mxu0 %v11076_v15  ;;  %v9317_v34 = vpop.f32.mrf.mxu0  ;;  %v9373_v35 = vpop.f32.mrf.mxu1  ;;  %10141 = vmatprep.mubr.msk.f32.mxu1 %vm988_vm1, %v9315_v62  ;;  %v8911_v62 = vld [vmem:[%s13115_s5 + $0x168] sm:$0xff] }
 0x113   : > { %v9318_v36 = vadd.f32 %v9317_v34, %v9316_v0  ;;  %v9374_v37 = vadd.f32 %v9373_v35, %v9372_v1  ;;  %9413 = vmatprep.subr.mxu0 %v11081_v16  ;;  %v8913_v0 = vld [vmem:[%s13115_s5 + $0x178] sm:$0xff]  ;;  %v8912_v1 = vld [vmem:[%s13115_s5 + $0x170] sm:$0xff]  ;;  %v8914_v34 = vld [vmem:[%s13117_s7 + $0x8] sm:$0xf] }
 0x114   : > { %9414 = vmatpush3.msra.mxu0 %v11086_v17  ;;  %v9319_v38 = vpop.f32.mrf.mxu0  ;;  %v9375_v39 = vpop.f32.mrf.mxu1  ;;  %10147 = vmatprep.subr.msk.mxu1 %vm1013_vm0, %v8914_v34 }
 0x115   : > { %9415 = vmatprep.subr.mxu0 %v11091_v18  ;;  %10128 = vmatmul.mubr.msk.f32.gmra.mxu0 %vm988_vm1, %v9374_v37 }
 0x116   : > { %10142 = vmatmul.mubr.msk.f32.gmra.mxu1 %vm988_vm1, %v9318_v36  ;;  %9416 = vmatpush3.msra.mxu0 %v11096_v19  ;;  %v9320_v40 = vpop.f32.mrf.mxu0  ;;  %v9376_v41 = vpop.f32.mrf.mxu1 }
 0x117   : > { %v9321_v42 = vadd.f32 %v9320_v40, %v9319_v38  ;;  %v9377_v43 = vadd.f32 %v9376_v41, %v9375_v39  ;;  %9417 = vmatprep.subr.mxu0 %v11101_v20  ;;  %10148 = vmatpush3.msk.msra.mxu1 %vm1013_vm0, %v8914_v34 }
 0x118   : > { %9418 = vmatpush3.msra.mxu0 %v11106_v21  ;;  %v9322_v44 = vpop.f32.mrf.mxu0  ;;  %v9378_v45 = vpop.f32.mrf.mxu1  ;;  %9464 = vmatprep.subr.mxu1 %v11015_v2 }
 0x119   : > { %9419 = vmatprep.subr.mxu0 %v11111_v22  ;;  %10130 = vmatprep.mubr.msk.f32.mxu0 %vm988_vm1, %v9377_v43 }
 0x11a   : > { %9420 = vmatpush3.msra.mxu0 %v11116_v23  ;;  %v9323_v46 = vpop.f32.mrf.mxu0  ;;  %v9379_v47 = vpop.f32.mrf.mxu1  ;;  %10144 = vmatprep.mubr.msk.f32.mxu1 %vm988_vm1, %v9321_v42 }
 0x11b   : > { %v9324_v48 = vadd.f32 %v9323_v46, %v9322_v44  ;;  %v9380_v49 = vadd.f32 %v9379_v47, %v9378_v45  ;;  %9421 = vmatprep.subr.mxu0 %v11121_v24 }
 0x11c   : > { %9422 = vmatpush3.msra.mxu0 %v11126_v25 }
 0x11d   : > { %9423 = vmatprep.subr.mxu0 %v11131_v26  ;;  %10131 = vmatmul.mubr.msk.f32.gmra.mxu0 %vm988_vm1, %v9380_v49 }
 0x11e   : > { %10145 = vmatmul.mubr.msk.f32.gmra.mxu1 %vm988_vm1, %v9324_v48  ;;  %9424 = vmatpush3.msra.mxu0 %v11136_v27 }
 0x11f   : > { %9425 = vmatprep.subr.mxu0 %v11141_v28  ;;  %1335 = vmatprep.mubr.f32.mxu0 %v8899_v50 }
 0x120   : > { %9426 = vmatpush3.msra.mxu0 %v11146_v29 }
 0x121   : > { %9427 = vmatprep.subr.mxu0 %v11151_v30 }
 0x122   : > { %9428 = vmatpush3.msra.mxu0 %v11156_v31 }
 0x123   : > { %9429 = vmatprep.subr.mxu0 %v11161_v32 }
 0x124   : > { %9430 = vmatpush3.msra.mxu0 %v11166_v33 }
 0x125   : > { %1336 = vmatmul.mubr.f32.vlgmr.msra.gmra.mxu0 %v8898_v51 }
 0x126   : > { %1340 = vmatprep.mubr.f32.mxu0 %v8901_v52 }
 0x129   : > { %1341 = vmatmul.mubr.f32.gmra.mxu0 %v8900_v53 }
 0x12a   : > { %1345 = vmatprep.mubr.f32.mxu0 %v8903_v54 }
 0x12d   : > { %1346 = vmatmul.mubr.f32.gmra.mxu0 %v8902_v55 }
 0x12e   : > { %1350 = vmatprep.mubr.f32.mxu0 %v8905_v56 }
 0x131   : > { %1351 = vmatmul.mubr.f32.gmra.mxu0 %v8904_v57 }
 0x132   : > { %1355 = vmatprep.mubr.f32.mxu0 %v8907_v58 }
 0x135   : > { %1356 = vmatmul.mubr.f32.gmra.mxu0 %v8906_v59 }
 0x136   : > { %1360 = vmatprep.mubr.f32.mxu0 %v8909_v60 }
 0x139   : > { %1361 = vmatmul.mubr.f32.gmra.mxu0 %v8908_v61 }
 0x13a   : > { %1365 = vmatprep.mubr.f32.mxu0 %v8911_v62 }
 0x13d   : > { %1366 = vmatmul.mubr.f32.gmra.mxu0 %v8910_v63 }
 0x13e   : > { %1370 = vmatprep.mubr.f32.mxu0 %v8913_v0 }
 0x141   : > { %1371 = vmatmul.mubr.f32.gmra.mxu0 %v8912_v1 }
 0x1c5   : > { %v10123_v35 = vpop.f32.mrf.mxu0  ;;  %v10137_v36 = vpop.f32.mrf.mxu1 }
 0x1c6   : > { %v11376_v37 = vadd.f32 %v10137_v36, %v10123_v35 }
 0x1c7   : > { %v11378_v38 = vpop.f32.mrf.mxu0  ;;  %v11380_v39 = vpop.f32.mrf.mxu1 }
 0x1c8   : > { %13118 = vst [vmem:[#allocation2_spill] sm:$0xff] %v11378_v38  ;;  %13119 = vst [vmem:[#allocation3_spill] sm:$0xff] %v11380_v39 }
 0x1cd   : > { %v10126_v40 = vpop.f32.mrf.mxu0 }
 0x1ce   : > { %v10140_v41 = vpop.f32.mrf.mxu1 }
 0x1cf   : > { %v11382_v42 = vadd.f32 %v10140_v41, %v10126_v40  ;;  %v11384_v43 = vpop.f32.mrf.mxu0 }
 0x1d0   : > { %v11386_v44 = vpop.f32.mrf.mxu1 }
 0x1d5   : > { %v10129_v45 = vpop.f32.mrf.mxu0 }
 0x1d6   : > { %v10143_v46 = vpop.f32.mrf.mxu1 }
 0x1d7   : > { %v11388_v47 = vadd.f32 %v10143_v46, %v10129_v45  ;;  %v11390_v48 = vpop.f32.mrf.mxu0 }
 0x1d8   : > { %v11392_v49 = vpop.f32.mrf.mxu1 }
 0x1dd   : > { %v10132_v50 = vpop.f32.mrf.mxu0 }
 0x1de   : > { %v10146_v51 = vpop.f32.mrf.mxu1 }
 0x1df   : > { %v11394_v52 = vadd.f32 %v10146_v51, %v10132_v50  ;;  %v11396_v53 = vpop.f32.mrf.mxu0 }
 0x1e5   : > { %v9431_v54 = vpop.f32.mrf.mxu0 }
 0x1e7   : > { %v9432_v55 = vpop.f32.mrf.mxu0 }
 0x1e8   : > { %v9433_v56 = vadd.f32 %v9432_v55, %v9431_v54 }
 0x1e9   : > { %v9434_v57 = vpop.f32.mrf.mxu0 }
 0x1ea   : > { %10149 = vmatprep.mubr.msk.f32.mxu1 %vm988_vm1, %v9433_v56 }
 0x1eb   : > { %v9435_v58 = vpop.f32.mrf.mxu0 }
 0x1ec   : > { %v9436_v59 = vadd.f32 %v9435_v58, %v9434_v57  ;;  %v8925_v57 = vld [vmem:[%s13115_s5 + $0x188] sm:$0xff]  ;;  %v8924_v58 = vld [vmem:[%s13115_s5 + $0x180] sm:$0xff] }
 0x1ed   : > { %v9437_v60 = vpop.f32.mrf.mxu0 }
 0x1ee   : > { %10150 = vmatmul.mubr.msk.f32.vlgmr.msra.gmra.mxu1 %vm988_vm1, %v9436_v59  ;;  %v8927_v59 = vld [vmem:[%s13115_s5 + $0x198] sm:$0xff] }
 0x1ef   : > { %9465 = vmatpush3.msra.mxu1 %v11018_v3  ;;  %v9438_v61 = vpop.f32.mrf.mxu0 }
 0x1f0   : > { %v9439_v62 = vadd.f32 %v9438_v61, %v9437_v60  ;;  %9466 = vmatprep.subr.mxu1 %v11021_v4  ;;  %v8926_v60 = vld [vmem:[%s13115_s5 + $0x190] sm:$0xff]  ;;  %v8929_v61 = vld [vmem:[%s13115_s5 + $0x1a8] sm:$0xff] }
 0x1f1   : > { %9467 = vmatpush3.msra.mxu1 %v11026_v5  ;;  %v9440_v63 = vpop.f32.mrf.mxu0 }
 0x1f2   : > { %9468 = vmatprep.subr.mxu1 %v11031_v6  ;;  %10152 = vmatprep.mubr.msk.f32.mxu1 %vm988_vm1, %v9439_v62  ;;  %v8965_v62 = vld [vmem:[%s13115_s5 + $0x278] sm:$0xff] }
 0x1f3   : > { %9469 = vmatpush3.msra.mxu1 %v11036_v7  ;;  %v9441_v0 = vpop.f32.mrf.mxu0 }
 0x1f4   : > { %v9442_v1 = vadd.f32 %v9441_v0, %v9440_v63  ;;  %9470 = vmatprep.subr.mxu1 %v11041_v8  ;;  %v8964_v63 = vld [vmem:[%s13115_s5 + $0x270] sm:$0xff]  ;;  %v8940_v0 = vld [vmem:[%s13117_s7 + $0xc] sm:$0xf] }
 0x1f5   : > { %9471 = vmatpush3.msra.mxu1 %v11046_v9  ;;  %v9443_v34 = vpop.f32.mrf.mxu0  ;;  %10161 = vmatprep.subr.msk.mxu0 %vm1013_vm0, %v8940_v0 }
 0x1f6   : > { %9472 = vmatprep.subr.mxu1 %v11051_v10  ;;  %10153 = vmatmul.mubr.msk.f32.gmra.mxu1 %vm988_vm1, %v9442_v1  ;;  %v8966_v1 = vld [vmem:[%s13117_s7 + $0x10] sm:$0xf] }
 0x1f7   : > { %9473 = vmatpush3.msra.mxu1 %v11056_v11  ;;  %v9444_v35 = vpop.f32.mrf.mxu0  ;;  %10162 = vmatpush3.msk.msra.mxu0 %vm1013_vm0, %v8940_v0 }
 0x1f8   : > { %v9445_v36 = vadd.f32 %v9444_v35, %v9443_v34  ;;  %9474 = vmatprep.subr.mxu1 %v11061_v12  ;;  %10175 = vmatprep.subr.msk.mxu0 %vm1013_vm0, %v8966_v1  ;;  %v11574_v34 = vpop.f32.mrf.mxu1 }
 0x1f9   : > { %9475 = vmatpush3.msra.mxu1 %v11066_v13  ;;  %v9446_v40 = vpop.f32.mrf.mxu0 }
 0x1fa   : > { %9476 = vmatprep.subr.mxu1 %v11071_v14  ;;  %10155 = vmatprep.mubr.msk.f32.mxu1 %vm988_vm1, %v9445_v36 }
 0x1fb   : > { %9477 = vmatpush3.msra.mxu1 %v11076_v15  ;;  %v9447_v41 = vpop.f32.mrf.mxu0 }
 0x1fc   : > { %v9448_v45 = vadd.f32 %v9447_v41, %v9446_v40  ;;  %9478 = vmatprep.subr.mxu1 %v11081_v16 }
 0x1fd   : > { %9479 = vmatpush3.msra.mxu1 %v11086_v17  ;;  %v9449_v46 = vpop.f32.mrf.mxu0 }
 0x1fe   : > { %9480 = vmatprep.subr.mxu1 %v11091_v18  ;;  %10156 = vmatmul.mubr.msk.f32.gmra.mxu1 %vm988_vm1, %v9448_v45 }
 0x1ff   : > { %9481 = vmatpush3.msra.mxu1 %v11096_v19  ;;  %v9450_v50 = vpop.f32.mrf.mxu0 }
 0x200   : > { %v9451_v51 = vadd.f32 %v9450_v50, %v9449_v46  ;;  %9482 = vmatprep.subr.mxu1 %v11101_v20 }
 0x201   : > { %9483 = vmatpush3.msra.mxu1 %v11106_v21  ;;  %v9452_v54 = vpop.f32.mrf.mxu0 }
 0x202   : > { %9484 = vmatprep.subr.mxu1 %v11111_v22  ;;  %10158 = vmatprep.mubr.msk.f32.mxu1 %vm988_vm1, %v9451_v51 }
 0x203   : > { %9485 = vmatpush3.msra.mxu1 %v11116_v23  ;;  %v9453_v55 = vpop.f32.mrf.mxu0 }
 0x204   : > { %v9454_v56 = vadd.f32 %v9453_v55, %v9452_v54  ;;  %9486 = vmatprep.subr.mxu1 %v11121_v24 }
 0x205   : > { %9487 = vmatpush3.msra.mxu1 %v11126_v25 }
 0x206   : > { %9488 = vmatprep.subr.mxu1 %v11131_v26  ;;  %10159 = vmatmul.mubr.msk.f32.gmra.mxu1 %vm988_vm1, %v9454_v56 }
 0x207   : > { %9489 = vmatpush3.msra.mxu1 %v11136_v27  ;;  %1599 = vmatprep.mubr.f32.mxu1 %v8925_v57 }
 0x208   : > { %9490 = vmatprep.subr.mxu1 %v11141_v28 }
 0x209   : > { %9491 = vmatpush3.msra.mxu1 %v11146_v29 }
 0x20a   : > { %9492 = vmatprep.subr.mxu1 %v11151_v30 }
 0x20b   : > { %9493 = vmatpush3.msra.mxu1 %v11156_v31 }
 0x20c   : > { %9494 = vmatprep.subr.mxu1 %v11161_v32 }
 0x20d   : > { %9495 = vmatpush3.msra.mxu1 %v11166_v33 }
 0x20e   : > { %1600 = vmatmul.mubr.f32.vlgmr.msra.gmra.mxu1 %v8924_v58  ;;  %9529 = vmatprep.subr.mxu1 %v11015_v2 }
 0x20f   : > { %9530 = vmatpush3.msra.mxu1 %v11018_v3  ;;  %1604 = vmatprep.mubr.f32.mxu1 %v8927_v59  ;;  %v8928_v3 = vld [vmem:[%s13115_s5 + $0x1a0] sm:$0xff] }
 0x210   : > { %9531 = vmatprep.subr.mxu1 %v11021_v4  ;;  %v8931_v4 = vld [vmem:[%s13115_s5 + $0x1b8] sm:$0xff] }
 0x211   : > { %9532 = vmatpush3.msra.mxu1 %v11026_v5  ;;  %v8930_v5 = vld [vmem:[%s13115_s5 + $0x1b0] sm:$0xff] }
 0x212   : > { %1605 = vmatmul.mubr.f32.gmra.mxu1 %v8926_v60  ;;  %9533 = vmatprep.subr.mxu1 %v11031_v6  ;;  %v8933_v6 = vld [vmem:[%s13115_s5 + $0x1c8] sm:$0xff] }
 0x213   : > { %9534 = vmatpush3.msra.mxu1 %v11036_v7  ;;  %1609 = vmatprep.mubr.f32.mxu1 %v8929_v61  ;;  %v8932_v7 = vld [vmem:[%s13115_s5 + $0x1c0] sm:$0xff] }
 0x214   : > { %9535 = vmatprep.subr.mxu1 %v11041_v8  ;;  %v8935_v8 = vld [vmem:[%s13115_s5 + $0x1d8] sm:$0xff] }
 0x215   : > { %9536 = vmatpush3.msra.mxu1 %v11046_v9  ;;  %v8934_v9 = vld [vmem:[%s13115_s5 + $0x1d0] sm:$0xff] }
 0x216   : > { %1610 = vmatmul.mubr.f32.gmra.mxu1 %v8928_v3  ;;  %9537 = vmatprep.subr.mxu1 %v11051_v10  ;;  %v8937_v10 = vld [vmem:[%s13115_s5 + $0x1e8] sm:$0xff] }
 0x217   : > { %9538 = vmatpush3.msra.mxu1 %v11056_v11  ;;  %1614 = vmatprep.mubr.f32.mxu1 %v8931_v4  ;;  %v8936_v11 = vld [vmem:[%s13115_s5 + $0x1e0] sm:$0xff] }
 0x218   : > { %9539 = vmatprep.subr.mxu1 %v11061_v12  ;;  %v8939_v12 = vld [vmem:[%s13115_s5 + $0x1f8] sm:$0xff] }
 0x219   : > { %9540 = vmatpush3.msra.mxu1 %v11066_v13  ;;  %v8938_v13 = vld [vmem:[%s13115_s5 + $0x1f0] sm:$0xff] }
 0x21a   : > { %1615 = vmatmul.mubr.f32.gmra.mxu1 %v8930_v5  ;;  %9541 = vmatprep.subr.mxu1 %v11071_v14  ;;  %v8951_v14 = vld [vmem:[%s13115_s5 + $0x208] sm:$0xff] }
 0x21b   : > { %9542 = vmatpush3.msra.mxu1 %v11076_v15  ;;  %1619 = vmatprep.mubr.f32.mxu1 %v8933_v6  ;;  %v8950_v15 = vld [vmem:[%s13115_s5 + $0x200] sm:$0xff] }
 0x21c   : > { %9543 = vmatprep.subr.mxu1 %v11081_v16  ;;  %v8953_v16 = vld [vmem:[%s13115_s5 + $0x218] sm:$0xff] }
 0x21d   : > { %9544 = vmatpush3.msra.mxu1 %v11086_v17  ;;  %v8952_v17 = vld [vmem:[%s13115_s5 + $0x210] sm:$0xff] }
 0x21e   : > { %1620 = vmatmul.mubr.f32.gmra.mxu1 %v8932_v7  ;;  %9545 = vmatprep.subr.mxu1 %v11091_v18  ;;  %v8955_v18 = vld [vmem:[%s13115_s5 + $0x228] sm:$0xff] }
 0x21f   : > { %9546 = vmatpush3.msra.mxu1 %v11096_v19  ;;  %1624 = vmatprep.mubr.f32.mxu1 %v8935_v8  ;;  %v8954_v19 = vld [vmem:[%s13115_s5 + $0x220] sm:$0xff] }
 0x220   : > { %9547 = vmatprep.subr.mxu1 %v11101_v20  ;;  %v8957_v20 = vld [vmem:[%s13115_s5 + $0x238] sm:$0xff] }
 0x221   : > { %9548 = vmatpush3.msra.mxu1 %v11106_v21  ;;  %v8956_v21 = vld [vmem:[%s13115_s5 + $0x230] sm:$0xff] }
 0x222   : > { %1625 = vmatmul.mubr.f32.gmra.mxu1 %v8934_v9  ;;  %9549 = vmatprep.subr.mxu1 %v11111_v22  ;;  %v8959_v22 = vld [vmem:[%s13115_s5 + $0x248] sm:$0xff] }
 0x223   : > { %9550 = vmatpush3.msra.mxu1 %v11116_v23  ;;  %1629 = vmatprep.mubr.f32.mxu1 %v8937_v10  ;;  %v8958_v23 = vld [vmem:[%s13115_s5 + $0x240] sm:$0xff] }
 0x224   : > { %9551 = vmatprep.subr.mxu1 %v11121_v24  ;;  %v8961_v24 = vld [vmem:[%s13115_s5 + $0x258] sm:$0xff] }
 0x225   : > { %9552 = vmatpush3.msra.mxu1 %v11126_v25  ;;  %v8960_v25 = vld [vmem:[%s13115_s5 + $0x250] sm:$0xff] }
 0x226   : > { %1630 = vmatmul.mubr.f32.gmra.mxu1 %v8936_v11  ;;  %9553 = vmatprep.subr.mxu1 %v11131_v26  ;;  %v8963_v26 = vld [vmem:[%s13115_s5 + $0x268] sm:$0xff] }
 0x227   : > { %9554 = vmatpush3.msra.mxu1 %v11136_v27  ;;  %1634 = vmatprep.mubr.f32.mxu1 %v8939_v12  ;;  %v8962_v27 = vld [vmem:[%s13115_s5 + $0x260] sm:$0xff] }
 0x228   : > { %9555 = vmatprep.subr.mxu1 %v11141_v28 }
 0x229   : > { %9556 = vmatpush3.msra.mxu1 %v11146_v29 }
 0x22a   : > { %1635 = vmatmul.mubr.f32.gmra.mxu1 %v8938_v13  ;;  %9557 = vmatprep.subr.mxu1 %v11151_v30 }
 0x22b   : > { %9558 = vmatpush3.msra.mxu1 %v11156_v31  ;;  %1863 = vmatprep.mubr.f32.mxu1 %v8951_v14 }
 0x22c   : > { %9559 = vmatprep.subr.mxu1 %v11161_v32 }
 0x22d   : > { %9560 = vmatpush3.msra.mxu1 %v11166_v33 }
 0x22e   : > { %1864 = vmatmul.mubr.f32.vlgmr.msra.gmra.mxu1 %v8950_v15 }
 0x22f   : > { %1868 = vmatprep.mubr.f32.mxu1 %v8953_v16 }
 0x232   : > { %1869 = vmatmul.mubr.f32.gmra.mxu1 %v8952_v17 }
 0x233   : > { %1873 = vmatprep.mubr.f32.mxu1 %v8955_v18 }
 0x236   : > { %1874 = vmatmul.mubr.f32.gmra.mxu1 %v8954_v19 }
 0x237   : > { %1878 = vmatprep.mubr.f32.mxu1 %v8957_v20 }
 0x23a   : > { %1879 = vmatmul.mubr.f32.gmra.mxu1 %v8956_v21 }
 0x23b   : > { %1883 = vmatprep.mubr.f32.mxu1 %v8959_v22 }
 0x23e   : > { %1884 = vmatmul.mubr.f32.gmra.mxu1 %v8958_v23 }
 0x23f   : > { %1888 = vmatprep.mubr.f32.mxu1 %v8961_v24 }
 0x242   : > { %1889 = vmatmul.mubr.f32.gmra.mxu1 %v8960_v25  ;;  %v11609_v25 = vld [vmem:[%s11012_s28 + $0x78] sm:$0xff] }
 0x243   : > { %1893 = vmatprep.mubr.f32.mxu1 %v8963_v26 }
 0x246   : > { %1894 = vmatmul.mubr.f32.gmra.mxu1 %v8962_v27 }
 0x247   : > { %1898 = vmatprep.mubr.f32.mxu1 %v8965_v62  ;;  %v11613_v62 = vld [vmem:[%s11012_s28 + $0xf0] sm:$0xff] }
 0x24a   : > { %1899 = vmatmul.mubr.f32.gmra.mxu1 %v8964_v63  ;;  %v11617_v63 = vld [vmem:[%s11012_s28 + $0x70] sm:$0xff] }
 0x2ae   : > { %v10151_v35 = vpop.f32.mrf.mxu1 }
 0x2af   : > { %v11577_v36 = vadd.f32 %v10151_v35, %v11376_v37  ;;  %v11626_v35 = vld [vmem:[%s11012_s28 + $0x68] sm:$0xff] }
 0x2b0   : > { %v11579_v40 = vpop.f32.mrf.mxu1 }
 0x2b1   : > { %13120 = vst [vmem:[#allocation4_spill] sm:$0xff] %v11579_v40 }
 0x2b6   : > { %v10154_v41 = vpop.f32.mrf.mxu1 }
 0x2b7   : > { %v11582_v45 = vadd.f32 %v10154_v41, %v11382_v42 }
 0x2b8   : > { %v11584_v46 = vpop.f32.mrf.mxu1 }
 0x2be   : > { %v10157_v50 = vpop.f32.mrf.mxu1 }
 0x2bf   : > { %v11587_v51 = vadd.f32 %v10157_v50, %v11388_v47 }
 0x2c0   : > { %v11589_v54 = vpop.f32.mrf.mxu1 }
 0x2c6   : > { %v10160_v55 = vpop.f32.mrf.mxu1 }
 0x2c7   : > { %v11592_v56 = vadd.f32 %v10160_v55, %v11394_v52  ;;  %v11630_v55 = vld [vmem:[%s11012_s28 + $0xe0] sm:$0xff] }
 0x2c8   : > { %v11594_v37 = vpop.f32.mrf.mxu1 }
 0x2ce   : > { %v9496_v57 = vpop.f32.mrf.mxu1 }
 0x2d0   : > { %v9497_v58 = vpop.f32.mrf.mxu1 }
 0x2d1   : > { %v9498_v59 = vadd.f32 %v9497_v58, %v9496_v57  ;;  %v11634_v57 = vld [vmem:[%s11012_s28 + $0x60] sm:$0xff] }
 0x2d2   : > { %v9499_v60 = vpop.f32.mrf.mxu1 }
 0x2d3   : > { %10163 = vmatprep.mubr.msk.f32.mxu0 %vm988_vm1, %v9498_v59  ;;  %v11638_v59 = vld [vmem:[%s11012_s28 + $0xd8] sm:$0xff] }
 0x2d4   : > { %v9500_v42 = vpop.f32.mrf.mxu1 }
 0x2d5   : > { %v9501_v61 = vadd.f32 %v9500_v42, %v9499_v60  ;;  %v11643_v60 = vld [vmem:[%s11012_s28 + $0x58] sm:$0xff] }
 0x2d6   : > { %v9502_v3 = vpop.f32.mrf.mxu1 }
 0x2d7   : > { %10164 = vmatmul.mubr.msk.f32.vlgmr.msra.gmra.mxu0 %vm988_vm1, %v9501_v61 }
 0x2d8   : > { %v9503_v47 = vpop.f32.mrf.mxu1  ;;  %10176 = vmatpush3.msk.msra.mxu0 %vm1013_vm0, %v8966_v1  ;;  %v11621_v1 = vld [vmem:[%s11012_s28 + $0xe8] sm:$0xff] }
 0x2d9   : > { %v9504_v4 = vadd.f32 %v9503_v47, %v9502_v3  ;;  %9594 = vmatprep.subr.mxu0 %v11015_v2  ;;  %v11647_v3 = vld [vmem:[%s11012_s28 + $0xd0] sm:$0xff] }
 0x2da   : > { %v9505_v52 = vpop.f32.mrf.mxu1  ;;  %v11651_v47 = vld [vmem:[%s11012_s28 + $0x50] sm:$0xff] }
 0x2db   : > { %10166 = vmatprep.mubr.msk.f32.mxu0 %vm988_vm1, %v9504_v4 }
 0x2dc   : > { %v9506_v5 = vpop.f32.mrf.mxu1 }
 0x2dd   : > { %v9507_v6 = vadd.f32 %v9506_v5, %v9505_v52  ;;  %v11655_v52 = vld [vmem:[%s11012_s28 + $0xc8] sm:$0xff] }
 0x2de   : > { %v9508_v7 = vpop.f32.mrf.mxu1  ;;  %v11660_v5 = vld [vmem:[%s11012_s28 + $0x48] sm:$0xff] }
 0x2df   : > { %10167 = vmatmul.mubr.msk.f32.gmra.mxu0 %vm988_vm1, %v9507_v6 }
 0x2e0   : > { %v9509_v8 = vpop.f32.mrf.mxu1 }
 0x2e1   : > { %v9510_v9 = vadd.f32 %v9509_v8, %v9508_v7  ;;  %v11664_v8 = vld [vmem:[%s11012_s28 + $0xc0] sm:$0xff] }
 0x2e2   : > { %v9511_v10 = vpop.f32.mrf.mxu1 }
 0x2e3   : > { %10169 = vmatprep.mubr.msk.f32.mxu0 %vm988_vm1, %v9510_v9  ;;  %v11668_v9 = vld [vmem:[%s11012_s28 + $0x40] sm:$0xff] }
 0x2e4   : > { %v9512_v11 = vpop.f32.mrf.mxu1 }
 0x2e5   : > { %v9513_v12 = vadd.f32 %v9512_v11, %v9511_v10  ;;  %v11672_v11 = vld [vmem:[%s11012_s28 + $0xb8] sm:$0xff] }
 0x2e6   : > { %v9514_v13 = vpop.f32.mrf.mxu1 }
 0x2e7   : > { %10170 = vmatmul.mubr.msk.f32.gmra.mxu0 %vm988_vm1, %v9513_v12  ;;  %v11677_v12 = vld [vmem:[%s11012_s28 + $0x38] sm:$0xff] }
 0x2e8   : > { %v9515_v14 = vpop.f32.mrf.mxu1 }
 0x2e9   : > { %v9516_v2 = vadd.f32 %v9515_v14, %v9514_v13 }
 0x2ea   : > { %v9517_v15 = vpop.f32.mrf.mxu1 }
 0x2eb   : > { %10172 = vmatprep.mubr.msk.f32.mxu0 %vm988_vm1, %v9516_v2  ;;  %v11681_v2 = vld [vmem:[%s11012_s28 + $0xb0] sm:$0xff] }
 0x2ec   : > { %v9518_v16 = vpop.f32.mrf.mxu1 }
 0x2ed   : > { %v9519_v17 = vadd.f32 %v9518_v16, %v9517_v15  ;;  %v11685_v15 = vld [vmem:[%s11012_s28 + $0x30] sm:$0xff] }
 0x2ee   : > { %v9561_v18 = vpop.f32.mrf.mxu1 }
 0x2ef   : > { %10173 = vmatmul.mubr.msk.f32.gmra.mxu0 %vm988_vm1, %v9519_v17  ;;  %v11689_v17 = vld [vmem:[%s11012_s28 + $0xa8] sm:$0xff] }
 0x2f0   : > { %v9562_v19 = vpop.f32.mrf.mxu1 }
 0x2f1   : > { %v9563_v20 = vadd.f32 %v9562_v19, %v9561_v18  ;;  %v11694_v18 = vld [vmem:[%s11012_s28 + $0x28] sm:$0xff] }
 0x2f2   : > { %v9564_v21 = vpop.f32.mrf.mxu1 }
 0x2f3   : > { %10177 = vmatprep.mubr.msk.f32.mxu0 %vm988_vm1, %v9563_v20 }
 0x2f4   : > { %v9565_v22 = vpop.f32.mrf.mxu1 }
 0x2f5   : > { %v9566_v23 = vadd.f32 %v9565_v22, %v9564_v21  ;;  %v11698_v21 = vld [vmem:[%s11012_s28 + $0xa0] sm:$0xff]  ;;  %v8977_v22 = vld [vmem:[%s13115_s5 + $0x288] sm:$0xff] }
 0x2f6   : > { %v9567_v24 = vpop.f32.mrf.mxu1 }
 0x2f7   : > { %10178 = vmatmul.mubr.msk.f32.vlgmr.msra.gmra.mxu0 %vm988_vm1, %v9566_v23  ;;  %v11705_v23 = vld [vmem:[%s11012_s28 + $0x20] sm:$0xff] }
 0x2f8   : > { %9595 = vmatpush3.msra.mxu0 %v11609_v25  ;;  %v9568_v26 = vpop.f32.mrf.mxu1 }
 0x2f9   : > { %v9569_v27 = vadd.f32 %v9568_v26, %v9567_v24  ;;  %9596 = vmatprep.subr.mxu0 %v11613_v62  ;;  %v11709_v24 = vld [vmem:[%s11012_s28 + $0x98] sm:$0xff] }
 0x2fa   : > { %9597 = vmatpush3.msra.mxu0 %v11617_v63  ;;  %v9570_v0 = vpop.f32.mrf.mxu1  ;;  %v11714_v26 = vld [vmem:[%s11012_s28 + $0x18] sm:$0xff] }
 0x2fb   : > { %9598 = vmatprep.subr.mxu0 %v11621_v1  ;;  %10180 = vmatprep.mubr.msk.f32.mxu0 %vm988_vm1, %v9569_v27  ;;  %v8976_v27 = vld [vmem:[%s13115_s5 + $0x280] sm:$0xff] }
 0x2fc   : > { %9599 = vmatpush3.msra.mxu0 %v11626_v35  ;;  %v9571_v41 = vpop.f32.mrf.mxu1 }
 0x2fd   : > { %v9572_v50 = vadd.f32 %v9571_v41, %v9570_v0  ;;  %9600 = vmatprep.subr.mxu0 %v11630_v55  ;;  %v8979_v0 = vld [vmem:[%s13115_s5 + $0x298] sm:$0xff]  ;;  %v8985_v41 = vld [vmem:[%s13115_s5 + $0x2c8] sm:$0xff] }
 0x2fe   : > { %9601 = vmatpush3.msra.mxu0 %v11634_v57  ;;  %v9573_v58 = vpop.f32.mrf.mxu1 }
 0x2ff   : > { %9602 = vmatprep.subr.mxu0 %v11638_v59  ;;  %10181 = vmatmul.mubr.msk.f32.gmra.mxu0 %vm988_vm1, %v9572_v50  ;;  %v8984_v50 = vld [vmem:[%s13115_s5 + $0x2c0] sm:$0xff] }
 0x300   : > { %9603 = vmatpush3.msra.mxu0 %v11643_v60  ;;  %v9574_v42 = vpop.f32.mrf.mxu1 }
 0x301   : > { %v9575_v61 = vadd.f32 %v9574_v42, %v9573_v58  ;;  %9604 = vmatprep.subr.mxu0 %v11647_v3  ;;  %v8987_v58 = vld [vmem:[%s13115_s5 + $0x2d8] sm:$0xff]  ;;  %v8986_v42 = vld [vmem:[%s13115_s5 + $0x2d0] sm:$0xff] }
 0x302   : > { %9605 = vmatpush3.msra.mxu0 %v11651_v47  ;;  %v9576_v4 = vpop.f32.mrf.mxu1 }
 0x303   : > { %9606 = vmatprep.subr.mxu0 %v11655_v52  ;;  %10183 = vmatprep.mubr.msk.f32.mxu0 %vm988_vm1, %v9575_v61  ;;  %v8989_v61 = vld [vmem:[%s13115_s5 + $0x2e8] sm:$0xff] }
 0x304   : > { %9607 = vmatpush3.msra.mxu0 %v11660_v5  ;;  %v9577_v6 = vpop.f32.mrf.mxu1 }
 0x305   : > { %v9578_v7 = vadd.f32 %v9577_v6, %v9576_v4  ;;  %9608 = vmatprep.subr.mxu0 %v11664_v8  ;;  %v8988_v4 = vld [vmem:[%s13115_s5 + $0x2e0] sm:$0xff]  ;;  %v8991_v6 = vld [vmem:[%s13115_s5 + $0x2f8] sm:$0xff] }
 0x306   : > { %9609 = vmatpush3.msra.mxu0 %v11668_v9  ;;  %v9579_v10 = vpop.f32.mrf.mxu1 }
 0x307   : > { %9610 = vmatprep.subr.mxu0 %v11672_v11  ;;  %10184 = vmatmul.mubr.msk.f32.gmra.mxu0 %vm988_vm1, %v9578_v7  ;;  %v8990_v7 = vld [vmem:[%s13115_s5 + $0x2f0] sm:$0xff] }
 0x308   : > { %9611 = vmatpush3.msra.mxu0 %v11677_v12  ;;  %v9580_v13 = vpop.f32.mrf.mxu1 }
 0x309   : > { %v9581_v14 = vadd.f32 %v9580_v13, %v9579_v10  ;;  %9612 = vmatprep.subr.mxu0 %v11681_v2  ;;  %v11798_v10 = vld [vmem:[%s11012_s28 + $0x90] sm:$0xff]  ;;  %v9003_v13 = vld [vmem:[%s13115_s5 + $0x308] sm:$0xff] }
 0x30a   : > { %9613 = vmatpush3.msra.mxu0 %v11685_v15  ;;  %v9582_v16 = vpop.f32.mrf.mxu1 }
 0x30b   : > { %9614 = vmatprep.subr.mxu0 %v11689_v17  ;;  %10186 = vmatprep.mubr.msk.f32.mxu0 %vm988_vm1, %v9581_v14  ;;  %v11805_v14 = vld [vmem:[%s11012_s28 + $0x10] sm:$0xff] }
 0x30c   : > { %9615 = vmatpush3.msra.mxu0 %v11694_v18  ;;  %v9583_v19 = vpop.f32.mrf.mxu1 }
 0x30d   : > { %v9584_v20 = vadd.f32 %v9583_v19, %v9582_v16  ;;  %9616 = vmatprep.subr.mxu0 %v11698_v21  ;;  %v11809_v16 = vld [vmem:[%s11012_s28 + $0x88] sm:$0xff] }
 0x30e   : > { %9617 = vmatpush3.msra.mxu0 %v11705_v23  ;;  %v11813_v19 = vld [vmem:[%s11012_s28 + $0x8] sm:$0xff] }
 0x30f   : > { %9618 = vmatprep.subr.mxu0 %v11709_v24  ;;  %10187 = vmatmul.mubr.msk.f32.gmra.mxu0 %vm988_vm1, %v9584_v20  ;;  %v9002_v20 = vld [vmem:[%s13115_s5 + $0x300] sm:$0xff] }
 0x310   : > { %9619 = vmatpush3.msra.mxu0 %v11714_v26  ;;  %2127 = vmatprep.mubr.f32.mxu0 %v8977_v22  ;;  %v11820_v22 = vld [vmem:[%s11012_s28 + $0x80] sm:$0xff] }
 0x311   : > { %9620 = vmatprep.subr.mxu0 %v11141_v28  ;;  %v11730_v28 = vld [vmem:[%s11012_s28 + $0xf8] sm:$0xff] }
 0x312   : > { %9621 = vmatpush3.msra.mxu0 %v11146_v29  ;;  %v8978_v29 = vld [vmem:[%s13115_s5 + $0x290] sm:$0xff] }
 0x313   : > { %9622 = vmatprep.subr.mxu0 %v11151_v30  ;;  %v8981_v30 = vld [vmem:[%s13115_s5 + $0x2a8] sm:$0xff] }
 0x314   : > { %9623 = vmatpush3.msra.mxu0 %v11156_v31  ;;  %v8980_v31 = vld [vmem:[%s13115_s5 + $0x2a0] sm:$0xff] }
 0x315   : > { %9624 = vmatprep.subr.mxu0 %v11161_v32  ;;  %v8983_v32 = vld [vmem:[%s13115_s5 + $0x2b8] sm:$0xff] }
 0x316   : > { %9625 = vmatpush3.msra.mxu0 %v11166_v33  ;;  %v8982_v33 = vld [vmem:[%s13115_s5 + $0x2b0] sm:$0xff] }
 0x317   : > { %2128 = vmatmul.mubr.f32.vlgmr.msra.gmra.mxu0 %v8976_v27  ;;  %9659 = vmatprep.subr.mxu0 %v11730_v28  ;;  %v9005_v27 = vld [vmem:[%s13115_s5 + $0x318] sm:$0xff] }
 0x318   : > { %9660 = vmatpush3.msra.mxu0 %v11609_v25  ;;  %2132 = vmatprep.mubr.f32.mxu0 %v8979_v0  ;;  %v11827_v0 = vld [vmem:[%s11012_s28] sm:$0xff]  ;;  %s13131_s28 = sld [smem:[#allocation13_spill]] }
 0x319   : > { %9661 = vmatprep.subr.mxu0 %v11613_v62 }
 0x31a   : > { %9662 = vmatpush3.msra.mxu0 %v11617_v63 }
 0x31b   : > { %2133 = vmatmul.mubr.f32.gmra.mxu0 %v8978_v29  ;;  %9663 = vmatprep.subr.mxu0 %v11621_v1  ;;  %v9004_v29 = vld [vmem:[%s13115_s5 + $0x310] sm:$0xff] }
 0x31c   : > { %9664 = vmatpush3.msra.mxu0 %v11626_v35  ;;  %2137 = vmatprep.mubr.f32.mxu0 %v8981_v30  ;;  %v9007_v30 = vld [vmem:[%s13115_s5 + $0x328] sm:$0xff] }
 0x31d   : > { %9665 = vmatprep.subr.mxu0 %v11630_v55 }
 0x31e   : > { %9666 = vmatpush3.msra.mxu0 %v11634_v57 }
 0x31f   : > { %2138 = vmatmul.mubr.f32.gmra.mxu0 %v8980_v31  ;;  %9667 = vmatprep.subr.mxu0 %v11638_v59  ;;  %v9006_v31 = vld [vmem:[%s13115_s5 + $0x320] sm:$0xff] }
 0x320   : > { %9668 = vmatpush3.msra.mxu0 %v11643_v60  ;;  %2142 = vmatprep.mubr.f32.mxu0 %v8983_v32  ;;  %v9009_v32 = vld [vmem:[%s13115_s5 + $0x338] sm:$0xff] }
 0x321   : > { %9669 = vmatprep.subr.mxu0 %v11647_v3 }
 0x322   : > { %9670 = vmatpush3.msra.mxu0 %v11651_v47 }
 0x323   : > { %2143 = vmatmul.mubr.f32.gmra.mxu0 %v8982_v33  ;;  %9671 = vmatprep.subr.mxu0 %v11655_v52  ;;  %v9008_v33 = vld [vmem:[%s13115_s5 + $0x330] sm:$0xff] }
 0x324   : > { %9672 = vmatpush3.msra.mxu0 %v11660_v5  ;;  %2147 = vmatprep.mubr.f32.mxu0 %v8985_v41  ;;  %v9011_v41 = vld [vmem:[%s13115_s5 + $0x348] sm:$0xff] }
 0x325   : > { %9673 = vmatprep.subr.mxu0 %v11664_v8 }
 0x326   : > { %9674 = vmatpush3.msra.mxu0 %v11668_v9 }
 0x327   : > { %2148 = vmatmul.mubr.f32.gmra.mxu0 %v8984_v50  ;;  %9675 = vmatprep.subr.mxu0 %v11672_v11  ;;  %v9010_v50 = vld [vmem:[%s13115_s5 + $0x340] sm:$0xff] }
 0x328   : > { %9676 = vmatpush3.msra.mxu0 %v11677_v12  ;;  %2152 = vmatprep.mubr.f32.mxu0 %v8987_v58  ;;  %v9013_v58 = vld [vmem:[%s13115_s5 + $0x358] sm:$0xff] }
 0x329   : > { %9677 = vmatprep.subr.mxu0 %v11681_v2 }
 0x32a   : > { %9678 = vmatpush3.msra.mxu0 %v11685_v15 }
 0x32b   : > { %2153 = vmatmul.mubr.f32.gmra.mxu0 %v8986_v42  ;;  %9679 = vmatprep.subr.mxu0 %v11689_v17  ;;  %v9012_v42 = vld [vmem:[%s13115_s5 + $0x350] sm:$0xff] }
 0x32c   : > { %9680 = vmatpush3.msra.mxu0 %v11694_v18  ;;  %2157 = vmatprep.mubr.f32.mxu0 %v8989_v61  ;;  %v9015_v61 = vld [vmem:[%s13115_s5 + $0x368] sm:$0xff] }
 0x32d   : > { %9681 = vmatprep.subr.mxu0 %v11698_v21 }
 0x32e   : > { %9682 = vmatpush3.msra.mxu0 %v11705_v23 }
 0x32f   : > { %2158 = vmatmul.mubr.f32.gmra.mxu0 %v8988_v4  ;;  %9683 = vmatprep.subr.mxu0 %v11709_v24  ;;  %v9014_v4 = vld [vmem:[%s13115_s5 + $0x360] sm:$0xff] }
 0x330   : > { %9684 = vmatpush3.msra.mxu0 %v11714_v26  ;;  %2162 = vmatprep.mubr.f32.mxu0 %v8991_v6  ;;  %v9017_v6 = vld [vmem:[%s13115_s5 + $0x378] sm:$0xff] }
 0x331   : > { %9685 = vmatprep.subr.mxu0 %v11798_v10 }
 0x332   : > { %9686 = vmatpush3.msra.mxu0 %v11805_v14 }
 0x333   : > { %2163 = vmatmul.mubr.f32.gmra.mxu0 %v8990_v7  ;;  %9687 = vmatprep.subr.mxu0 %v11809_v16  ;;  %v9016_v7 = vld [vmem:[%s13115_s5 + $0x370] sm:$0xff] }
 0x334   : > { %9688 = vmatpush3.msra.mxu0 %v11813_v19  ;;  %2391 = vmatprep.mubr.f32.mxu0 %v9003_v13  ;;  %v8992_v13 = vld [vmem:[%s13117_s7 + $0x14] sm:$0xf] }
 0x335   : > { %9689 = vmatprep.subr.mxu0 %v11820_v22  ;;  %10189 = vmatprep.subr.msk.mxu1 %vm1013_vm0, %v8992_v13 }
 0x336   : > { %9690 = vmatpush3.msra.mxu0 %v11827_v0  ;;  %10190 = vmatpush3.msk.msra.mxu1 %vm1013_vm0, %v8992_v13 }
 0x337   : > { %2392 = vmatmul.mubr.f32.vlgmr.msra.gmra.mxu0 %v9002_v20  ;;  %v9018_v20 = vld [vmem:[%s13117_s7 + $0x18] sm:$0xf] }
 0x338   : > { %2396 = vmatprep.mubr.f32.mxu0 %v9005_v27  ;;  %10203 = vmatprep.subr.msk.mxu1 %vm1013_vm0, %v9018_v20 }
 0x33b   : > { %2397 = vmatmul.mubr.f32.gmra.mxu0 %v9004_v29 }
 0x33c   : > { %2401 = vmatprep.mubr.f32.mxu0 %v9007_v30 }
 0x33f   : > { %2402 = vmatmul.mubr.f32.gmra.mxu0 %v9006_v31 }
 0x340   : > { %2406 = vmatprep.mubr.f32.mxu0 %v9009_v32 }
 0x343   : > { %2407 = vmatmul.mubr.f32.gmra.mxu0 %v9008_v33 }
 0x344   : > { %2411 = vmatprep.mubr.f32.mxu0 %v9011_v41 }
 0x347   : > { %2412 = vmatmul.mubr.f32.gmra.mxu0 %v9010_v50 }
 0x348   : > { %2416 = vmatprep.mubr.f32.mxu0 %v9013_v58 }
 0x34b   : > { %2417 = vmatmul.mubr.f32.gmra.mxu0 %v9012_v42 }
 0x34c   : > { %2421 = vmatprep.mubr.f32.mxu0 %v9015_v61 }
 0x34f   : > { %2422 = vmatmul.mubr.f32.gmra.mxu0 %v9014_v4 }
 0x350   : > { %2426 = vmatprep.mubr.f32.mxu0 %v9017_v6 }
 0x353   : > { %2427 = vmatmul.mubr.f32.gmra.mxu0 %v9016_v7 }
 0x397   : > { %v10165_v27 = vpop.f32.mrf.mxu0 }
 0x398   : > { %v1775_v29 = vadd.f32 %v10165_v27, %v11577_v36 }
 0x399   : > { %v11879_v30 = vpop.f32.mrf.mxu0 }
 0x39a   : > { %13121 = vst [vmem:[#allocation5_spill] sm:$0xff] %v11879_v30 }
 0x39f   : > { %v10168_v31 = vpop.f32.mrf.mxu0 }
 0x3a0   : > { %v1777_v32 = vadd.f32 %v10168_v31, %v11582_v45 }
 0x3a1   : > { %v11882_v33 = vpop.f32.mrf.mxu0 }
 0x3a7   : > { %v10171_v41 = vpop.f32.mrf.mxu0 }
 0x3a8   : > { %v1779_v50 = vadd.f32 %v10171_v41, %v11587_v51 }
 0x3a9   : > { %v11885_v58 = vpop.f32.mrf.mxu0 }
 0x3af   : > { %v10174_v42 = vpop.f32.mrf.mxu0 }
 0x3b0   : > { %v1781_v61 = vadd.f32 %v10174_v42, %v11592_v56 }
 0x3b1   : > { %v11888_v4 = vpop.f32.mrf.mxu0 }
 0x3b7   : > { %v10179_v6 = vpop.f32.mrf.mxu0 }
 0x3b8   : > { %v11890_v7 = vadd.f32 %v10179_v6, %v1775_v29 }
 0x3b9   : > { %v11892_v36 = vpop.f32.mrf.mxu0 }
 0x3ba   : > { %13122 = vst [vmem:[#allocation6_spill] sm:$0xff] %v11892_v36 }
 0x3bf   : > { %v10182_v13 = vpop.f32.mrf.mxu0 }
 0x3c0   : > { %v11894_v27 = vadd.f32 %v10182_v13, %v1777_v32 }
 0x3c1   : > { %v11896_v45 = vpop.f32.mrf.mxu0 }
 0x3c7   : > { %v10185_v31 = vpop.f32.mrf.mxu0 }
 0x3c8   : > { %v11898_v30 = vadd.f32 %v10185_v31, %v1779_v50 }
 0x3c9   : > { %v11900_v51 = vpop.f32.mrf.mxu0 }
 0x3cf   : > { %v10188_v41 = vpop.f32.mrf.mxu0 }
 0x3d0   : > { %v11902_v40 = vadd.f32 %v10188_v41, %v1781_v61 }
 0x3d1   : > { %v11904_v56 = vpop.f32.mrf.mxu0 }
 0x3d2   : > { %13123 = vst [vmem:[#allocation7_spill] sm:$0xff] %v11904_v56 }
 0x3d7   : > { %v9626_v42 = vpop.f32.mrf.mxu0 }
 0x3d9   : > { %v9627_v29 = vpop.f32.mrf.mxu0 }
 0x3da   : > { %v9628_v6 = vadd.f32 %v9627_v29, %v9626_v42 }
 0x3db   : > { %v9629_v39 = vpop.f32.mrf.mxu0 }
 0x3dc   : > { %10191 = vmatprep.mubr.msk.f32.mxu1 %vm988_vm1, %v9628_v6 }
 0x3dd   : > { %v9630_v32 = vpop.f32.mrf.mxu0 }
 0x3de   : > { %v9631_v13 = vadd.f32 %v9630_v32, %v9629_v39 }
 0x3df   : > { %v9632_v36 = vpop.f32.mrf.mxu0 }
 0x3e0   : > { %10192 = vmatmul.mubr.msk.f32.vlgmr.msra.gmra.mxu1 %vm988_vm1, %v9631_v13 }
 0x3e1   : > { %v9633_v50 = vpop.f32.mrf.mxu0  ;;  %10204 = vmatpush3.msk.msra.mxu1 %vm1013_vm0, %v9018_v20 }
 0x3e2   : > { %v9634_v31 = vadd.f32 %v9633_v50, %v9632_v36  ;;  %9724 = vmatprep.subr.mxu1 %v11730_v28 }
 0x3e3   : > { %v9635_v61 = vpop.f32.mrf.mxu0 }
 0x3e4   : > { %10194 = vmatprep.mubr.msk.f32.mxu1 %vm988_vm1, %v9634_v31 }
 0x3e5   : > { %v9636_v41 = vpop.f32.mrf.mxu0 }
 0x3e6   : > { %v9637_v38 = vadd.f32 %v9636_v41, %v9635_v61 }
 0x3e7   : > { %v9638_v42 = vpop.f32.mrf.mxu0 }
 0x3e8   : > { %10195 = vmatmul.mubr.msk.f32.gmra.mxu1 %vm988_vm1, %v9637_v38 }
 0x3e9   : > { %v9639_v29 = vpop.f32.mrf.mxu0 }
 0x3ea   : > { %v9640_v6 = vadd.f32 %v9639_v29, %v9638_v42 }
 0x3eb   : > { %v9641_v39 = vpop.f32.mrf.mxu0 }
 0x3ec   : > { %10197 = vmatprep.mubr.msk.f32.mxu1 %vm988_vm1, %v9640_v6 }
 0x3ed   : > { %v9642_v32 = vpop.f32.mrf.mxu0 }
 0x3ee   : > { %v9643_v13 = vadd.f32 %v9642_v32, %v9641_v39 }
 0x3ef   : > { %v9644_v56 = vpop.f32.mrf.mxu0 }
 0x3f0   : > { %10198 = vmatmul.mubr.msk.f32.gmra.mxu1 %vm988_vm1, %v9643_v13 }
 0x3f1   : > { %v9645_v20 = vpop.f32.mrf.mxu0 }
 0x3f2   : > { %v9646_v36 = vadd.f32 %v9645_v20, %v9644_v56 }
 0x3f3   : > { %v9647_v50 = vpop.f32.mrf.mxu0 }
 0x3f4   : > { %10200 = vmatprep.mubr.msk.f32.mxu1 %vm988_vm1, %v9646_v36 }
 0x3f5   : > { %v9648_v31 = vpop.f32.mrf.mxu0 }
 0x3f6   : > { %v9649_v61 = vadd.f32 %v9648_v31, %v9647_v50 }
 0x3f7   : > { %v9691_v41 = vpop.f32.mrf.mxu0 }
 0x3f8   : > { %10201 = vmatmul.mubr.msk.f32.gmra.mxu1 %vm988_vm1, %v9649_v61 }
 0x3f9   : > { %v9692_v38 = vpop.f32.mrf.mxu0 }
 0x3fa   : > { %v9693_v42 = vadd.f32 %v9692_v38, %v9691_v41 }
 0x3fb   : > { %v9694_v29 = vpop.f32.mrf.mxu0 }
 0x3fc   : > { %10205 = vmatprep.mubr.msk.f32.mxu1 %vm988_vm1, %v9693_v42 }
 0x3fd   : > { %v9695_v6 = vpop.f32.mrf.mxu0 }
 0x3fe   : > { %v9696_v39 = vadd.f32 %v9695_v6, %v9694_v29 }
 0x3ff   : > { %v9697_v32 = vpop.f32.mrf.mxu0 }
 0x400   : > { %10206 = vmatmul.mubr.msk.f32.vlgmr.msra.gmra.mxu1 %vm988_vm1, %v9696_v39 }
 0x401   : > { %9725 = vmatpush3.msra.mxu1 %v11609_v25  ;;  %v9698_v56 = vpop.f32.mrf.mxu0 }
 0x402   : > { %v9699_v13 = vadd.f32 %v9698_v56, %v9697_v32  ;;  %9726 = vmatprep.subr.mxu1 %v11613_v62 }
 0x403   : > { %9727 = vmatpush3.msra.mxu1 %v11617_v63  ;;  %v9700_v20 = vpop.f32.mrf.mxu0 }
 0x404   : > { %9728 = vmatprep.subr.mxu1 %v11621_v1  ;;  %10208 = vmatprep.mubr.msk.f32.mxu1 %vm988_vm1, %v9699_v13 }
 0x405   : > { %9729 = vmatpush3.msra.mxu1 %v11626_v35  ;;  %v9701_v36 = vpop.f32.mrf.mxu0 }
 0x406   : > { %v9702_v50 = vadd.f32 %v9701_v36, %v9700_v20  ;;  %9730 = vmatprep.subr.mxu1 %v11630_v55  ;;  %v9029_v36 = vld [vmem:[%s13115_s5 + $0x388] sm:$0xff] }
 0x407   : > { %9731 = vmatpush3.msra.mxu1 %v11634_v57  ;;  %v9703_v31 = vpop.f32.mrf.mxu0 }
 0x408   : > { %9732 = vmatprep.subr.mxu1 %v11638_v59  ;;  %10209 = vmatmul.mubr.msk.f32.gmra.mxu1 %vm988_vm1, %v9702_v50  ;;  %v9028_v50 = vld [vmem:[%s13115_s5 + $0x380] sm:$0xff] }
 0x409   : > { %9733 = vmatpush3.msra.mxu1 %v11643_v60  ;;  %v9704_v61 = vpop.f32.mrf.mxu0 }
 0x40a   : > { %v9705_v41 = vadd.f32 %v9704_v61, %v9703_v31  ;;  %9734 = vmatprep.subr.mxu1 %v11647_v3  ;;  %v9031_v31 = vld [vmem:[%s13115_s5 + $0x398] sm:$0xff]  ;;  %v9030_v61 = vld [vmem:[%s13115_s5 + $0x390] sm:$0xff] }
 0x40b   : > { %9735 = vmatpush3.msra.mxu1 %v11651_v47  ;;  %v9706_v38 = vpop.f32.mrf.mxu0 }
 0x40c   : > { %9736 = vmatprep.subr.mxu1 %v11655_v52  ;;  %10211 = vmatprep.mubr.msk.f32.mxu1 %vm988_vm1, %v9705_v41  ;;  %v9033_v41 = vld [vmem:[%s13115_s5 + $0x3a8] sm:$0xff] }
 0x40d   : > { %9737 = vmatpush3.msra.mxu1 %v11660_v5  ;;  %v9707_v42 = vpop.f32.mrf.mxu0 }
 0x40e   : > { %v9708_v29 = vadd.f32 %v9707_v42, %v9706_v38  ;;  %9738 = vmatprep.subr.mxu1 %v11664_v8 }
 0x40f   : > { %9739 = vmatpush3.msra.mxu1 %v11668_v9  ;;  %v9709_v6 = vpop.f32.mrf.mxu0 }
 0x410   : > { %9740 = vmatprep.subr.mxu1 %v11672_v11  ;;  %10212 = vmatmul.mubr.msk.f32.gmra.mxu1 %vm988_vm1, %v9708_v29 }
 0x411   : > { %9741 = vmatpush3.msra.mxu1 %v11677_v12  ;;  %v9710_v39 = vpop.f32.mrf.mxu0 }
 0x412   : > { %v9711_v32 = vadd.f32 %v9710_v39, %v9709_v6  ;;  %9742 = vmatprep.subr.mxu1 %v11681_v2 }
 0x413   : > { %9743 = vmatpush3.msra.mxu1 %v11685_v15  ;;  %v9712_v56 = vpop.f32.mrf.mxu0 }
 0x414   : > { %9744 = vmatprep.subr.mxu1 %v11689_v17  ;;  %10214 = vmatprep.mubr.msk.f32.mxu1 %vm988_vm1, %v9711_v32 }
 0x415   : > { %9745 = vmatpush3.msra.mxu1 %v11694_v18  ;;  %v9713_v13 = vpop.f32.mrf.mxu0 }
 0x416   : > { %v9714_v20 = vadd.f32 %v9713_v13, %v9712_v56  ;;  %9746 = vmatprep.subr.mxu1 %v11698_v21 }
 0x417   : > { %9747 = vmatpush3.msra.mxu1 %v11705_v23 }
 0x418   : > { %9748 = vmatprep.subr.mxu1 %v11709_v24  ;;  %10215 = vmatmul.mubr.msk.f32.gmra.mxu1 %vm988_vm1, %v9714_v20 }
 0x419   : > { %9749 = vmatpush3.msra.mxu1 %v11714_v26  ;;  %2655 = vmatprep.mubr.f32.mxu1 %v9029_v36 }
 0x41a   : > { %9750 = vmatprep.subr.mxu1 %v11798_v10 }
 0x41b   : > { %9751 = vmatpush3.msra.mxu1 %v11805_v14 }
 0x41c   : > { %9752 = vmatprep.subr.mxu1 %v11809_v16 }
 0x41d   : > { %9753 = vmatpush3.msra.mxu1 %v11813_v19 }
 0x41e   : > { %9754 = vmatprep.subr.mxu1 %v11820_v22 }
 0x41f   : > { %9755 = vmatpush3.msra.mxu1 %v11827_v0 }
 0x420   : > { %2656 = vmatmul.mubr.f32.vlgmr.msra.gmra.mxu1 %v9028_v50  ;;  %9789 = vmatprep.subr.mxu1 %v11730_v28  ;;  %v9069_v28 = vld [vmem:[%s13115_s5 + $0x478] sm:$0xff]  ;;  %v1226_v50 = vadd.f32 %v11386_v44, %v11384_v43 }
 0x421   : > { %9790 = vmatpush3.msra.mxu1 %v11609_v25  ;;  %2660 = vmatprep.mubr.f32.mxu1 %v9031_v31  ;;  %v9032_v25 = vld [vmem:[%s13115_s5 + $0x3a0] sm:$0xff] }
 0x422   : > { %9791 = vmatprep.subr.mxu1 %v11613_v62  ;;  %v9035_v62 = vld [vmem:[%s13115_s5 + $0x3b8] sm:$0xff] }
 0x423   : > { %9792 = vmatpush3.msra.mxu1 %v11617_v63  ;;  %v9034_v63 = vld [vmem:[%s13115_s5 + $0x3b0] sm:$0xff] }
 0x424   : > { %2661 = vmatmul.mubr.f32.gmra.mxu1 %v9030_v61  ;;  %9793 = vmatprep.subr.mxu1 %v11621_v1  ;;  %v9037_v1 = vld [vmem:[%s13115_s5 + $0x3c8] sm:$0xff] }
 0x425   : > { %9794 = vmatpush3.msra.mxu1 %v11626_v35  ;;  %2665 = vmatprep.mubr.f32.mxu1 %v9033_v41  ;;  %v9036_v35 = vld [vmem:[%s13115_s5 + $0x3c0] sm:$0xff] }
 0x426   : > { %9795 = vmatprep.subr.mxu1 %v11630_v55  ;;  %v9039_v55 = vld [vmem:[%s13115_s5 + $0x3d8] sm:$0xff] }
 0x427   : > { %9796 = vmatpush3.msra.mxu1 %v11634_v57  ;;  %v9038_v57 = vld [vmem:[%s13115_s5 + $0x3d0] sm:$0xff] }
 0x428   : > { %2666 = vmatmul.mubr.f32.gmra.mxu1 %v9032_v25  ;;  %9797 = vmatprep.subr.mxu1 %v11638_v59  ;;  %v9041_v59 = vld [vmem:[%s13115_s5 + $0x3e8] sm:$0xff]  ;;  %v1236_v25 = vadd.f32 %v11392_v49, %v11390_v48 }
 0x429   : > { %9798 = vmatpush3.msra.mxu1 %v11643_v60  ;;  %2670 = vmatprep.mubr.f32.mxu1 %v9035_v62  ;;  %v9040_v60 = vld [vmem:[%s13115_s5 + $0x3e0] sm:$0xff] }
 0x42a   : > { %9799 = vmatprep.subr.mxu1 %v11647_v3  ;;  %v9043_v3 = vld [vmem:[%s13115_s5 + $0x3f8] sm:$0xff]  ;;  %v1514_v43 = vadd.f32 %v11589_v54, %v1236_v25 }
 0x42b   : > { %9800 = vmatpush3.msra.mxu1 %v11651_v47  ;;  %v9042_v47 = vld [vmem:[%s13115_s5 + $0x3f0] sm:$0xff] }
 0x42c   : > { %2671 = vmatmul.mubr.f32.gmra.mxu1 %v9034_v63  ;;  %9801 = vmatprep.subr.mxu1 %v11655_v52  ;;  %v9055_v52 = vld [vmem:[%s13115_s5 + $0x408] sm:$0xff] }
 0x42d   : > { %9802 = vmatpush3.msra.mxu1 %v11660_v5  ;;  %2675 = vmatprep.mubr.f32.mxu1 %v9037_v1  ;;  %v9054_v5 = vld [vmem:[%s13115_s5 + $0x400] sm:$0xff] }
 0x42e   : > { %9803 = vmatprep.subr.mxu1 %v11664_v8  ;;  %v9057_v8 = vld [vmem:[%s13115_s5 + $0x418] sm:$0xff] }
 0x42f   : > { %9804 = vmatpush3.msra.mxu1 %v11668_v9  ;;  %v9056_v9 = vld [vmem:[%s13115_s5 + $0x410] sm:$0xff] }
 0x430   : > { %2676 = vmatmul.mubr.f32.gmra.mxu1 %v9036_v35  ;;  %9805 = vmatprep.subr.mxu1 %v11672_v11  ;;  %v9059_v11 = vld [vmem:[%s13115_s5 + $0x428] sm:$0xff] }
 0x431   : > { %9806 = vmatpush3.msra.mxu1 %v11677_v12  ;;  %2680 = vmatprep.mubr.f32.mxu1 %v9039_v55  ;;  %v9058_v12 = vld [vmem:[%s13115_s5 + $0x420] sm:$0xff] }
 0x432   : > { %9807 = vmatprep.subr.mxu1 %v11681_v2  ;;  %v9061_v2 = vld [vmem:[%s13115_s5 + $0x438] sm:$0xff] }
 0x433   : > { %9808 = vmatpush3.msra.mxu1 %v11685_v15  ;;  %v9060_v15 = vld [vmem:[%s13115_s5 + $0x430] sm:$0xff] }
 0x434   : > { %2681 = vmatmul.mubr.f32.gmra.mxu1 %v9038_v57  ;;  %9809 = vmatprep.subr.mxu1 %v11689_v17  ;;  %v9063_v17 = vld [vmem:[%s13115_s5 + $0x448] sm:$0xff] }
 0x435   : > { %9810 = vmatpush3.msra.mxu1 %v11694_v18  ;;  %2685 = vmatprep.mubr.f32.mxu1 %v9041_v59  ;;  %v9062_v18 = vld [vmem:[%s13115_s5 + $0x440] sm:$0xff]  ;;  %v13124_v59 = vld [vmem:[#allocation7_spill] sm:$0xff] }
 0x436   : > { %9811 = vmatprep.subr.mxu1 %v11698_v21  ;;  %v9065_v21 = vld [vmem:[%s13115_s5 + $0x458] sm:$0xff] }
 0x437   : > { %9812 = vmatpush3.msra.mxu1 %v11705_v23  ;;  %v9064_v23 = vld [vmem:[%s13115_s5 + $0x450] sm:$0xff] }
 0x438   : > { %2686 = vmatmul.mubr.f32.gmra.mxu1 %v9040_v60  ;;  %9813 = vmatprep.subr.mxu1 %v11709_v24  ;;  %v9067_v24 = vld [vmem:[%s13115_s5 + $0x468] sm:$0xff] }
 0x439   : > { %9814 = vmatpush3.msra.mxu1 %v11714_v26  ;;  %2690 = vmatprep.mubr.f32.mxu1 %v9043_v3  ;;  %v9066_v26 = vld [vmem:[%s13115_s5 + $0x460] sm:$0xff] }
 0x43a   : > { %9815 = vmatprep.subr.mxu1 %v11798_v10  ;;  %v9068_v10 = vld [vmem:[%s13115_s5 + $0x470] sm:$0xff] }
 0x43b   : > { %9816 = vmatpush3.msra.mxu1 %v11805_v14  ;;  %v9044_v14 = vld [vmem:[%s13117_s7 + $0x1c] sm:$0xf] }
 0x43c   : > { %2691 = vmatmul.mubr.f32.gmra.mxu1 %v9042_v47  ;;  %9817 = vmatprep.subr.mxu1 %v11809_v16  ;;  %v9070_v16 = vld [vmem:[%s13117_s7 + $0x20] sm:$0xf] }
 0x43d   : > { %9818 = vmatpush3.msra.mxu1 %v11813_v19  ;;  %2919 = vmatprep.mubr.f32.mxu1 %v9055_v52 }
 0x43e   : > { %9819 = vmatprep.subr.mxu1 %v11820_v22  ;;  %10217 = vmatprep.subr.msk.mxu0 %vm1013_vm0, %v9044_v14 }
 0x43f   : > { %9820 = vmatpush3.msra.mxu1 %v11827_v0  ;;  %10218 = vmatpush3.msk.msra.mxu0 %vm1013_vm0, %v9044_v14 }
 0x440   : > { %2920 = vmatmul.mubr.f32.vlgmr.msra.gmra.mxu1 %v9054_v5  ;;  %10231 = vmatprep.subr.msk.mxu0 %vm1013_vm0, %v9070_v16 }
 0x441   : > { %2924 = vmatprep.mubr.f32.mxu1 %v9057_v8 }
 0x444   : > { %2925 = vmatmul.mubr.f32.gmra.mxu1 %v9056_v9 }
 0x445   : > { %2929 = vmatprep.mubr.f32.mxu1 %v9059_v11 }
 0x448   : > { %2930 = vmatmul.mubr.f32.gmra.mxu1 %v9058_v12 }
 0x449   : > { %2934 = vmatprep.mubr.f32.mxu1 %v9061_v2 }
 0x44c   : > { %2935 = vmatmul.mubr.f32.gmra.mxu1 %v9060_v15 }
 0x44d   : > { %2939 = vmatprep.mubr.f32.mxu1 %v9063_v17 }
 0x450   : > { %2940 = vmatmul.mubr.f32.gmra.mxu1 %v9062_v18 }
 0x451   : > { %2944 = vmatprep.mubr.f32.mxu1 %v9065_v21 }
 0x454   : > { %2945 = vmatmul.mubr.f32.gmra.mxu1 %v9064_v23 }
 0x455   : > { %2949 = vmatprep.mubr.f32.mxu1 %v9067_v24 }
 0x458   : > { %2950 = vmatmul.mubr.f32.gmra.mxu1 %v9066_v26 }
 0x459   : > { %2954 = vmatprep.mubr.f32.mxu1 %v9069_v28 }
 0x45c   : > { %2955 = vmatmul.mubr.f32.gmra.mxu1 %v9068_v10 }
 0x4a0   : > { %v10193_v19 = vpop.f32.mrf.mxu1 }
 0x4a1   : > { %v2303_v22 = vadd.f32 %v10193_v19, %v11890_v7  ;;  %v1512_v7 = vadd.f32 %v11584_v46, %v1226_v50  ;;  %v1778_v46 = vadd.f32 %v11885_v58, %v1514_v43 }
 0x4a2   : > { %v12093_v0 = vpop.f32.mrf.mxu1 }
 0x4a3   : > { %v1776_v61 = vadd.f32 %v11882_v33, %v1512_v7  ;;  %v2042_v33 = vadd.f32 %v11900_v51, %v1778_v46 }
 0x4a5   : > { %v2040_v41 = vadd.f32 %v11896_v45, %v1776_v61  ;;  %v1246_v45 = vadd.f32 %v11574_v34, %v11396_v53 }
 0x4a7   : > { %v1516_v49 = vadd.f32 %v11594_v37, %v1246_v45 }
 0x4a8   : > { %v10196_v38 = vpop.f32.mrf.mxu1 }
 0x4a9   : > { %v2305_v42 = vadd.f32 %v10196_v38, %v11894_v27  ;;  %v1780_v54 = vadd.f32 %v11888_v4, %v1516_v49  ;;  %v10870_v49 = vmov 0.0  }
 0x4aa   : > { %v2273_v29 = vpop.f32.mrf.mxu1 }
 0x4ab   : > { %v2044_v60 = vadd.f32 %v13124_v59, %v1780_v54  ;;  %v12150_v54 = vld [vmem:[%s13125_s1 + $0x8] sm:$0xff]  ;;  %v12157_v59 = vld [vmem:[%s13125_s1] sm:$0xff] }
 0x4b0   : > { %v10199_v6 = vpop.f32.mrf.mxu1 }
 0x4b1   : > { %v2307_v39 = vadd.f32 %v10199_v6, %v11898_v30 }
 0x4b2   : > { %v2283_v32 = vpop.f32.mrf.mxu1 }
 0x4b3   : > { %v2306_v35 = vadd.f32 %v2283_v32, %v2042_v33 }
 0x4b8   : > { %v10202_v56 = vpop.f32.mrf.mxu1 }
 0x4b9   : > { %v2309_v13 = vadd.f32 %v10202_v56, %v11902_v40  ;;  %v2304_v40 = vadd.f32 %v2273_v29, %v2040_v41 }
 0x4ba   : > { %v2293_v20 = vpop.f32.mrf.mxu1 }
 0x4bb   : > { %v2308_v58 = vadd.f32 %v2293_v20, %v2044_v60 }
 0x4c0   : > { %v10207_v36 = vpop.f32.mrf.mxu1 }
 0x4c1   : > { %v12100_v31 = vadd.f32 %v10207_v36, %v2303_v22 }
 0x4c2   : > { %v12104_v27 = vpop.f32.mrf.mxu1 }
 0x4c8   : > { %v10210_v30 = vpop.f32.mrf.mxu1 }
 0x4c9   : > { %v12109_v62 = vadd.f32 %v10210_v30, %v2305_v42 }
 0x4ca   : > { %v2537_v63 = vpop.f32.mrf.mxu1 }
 0x4cb   : > { %v12112_v44 = vadd.f32 %v2537_v63, %v2304_v40 }
 0x4d0   : > { %v10213_v1 = vpop.f32.mrf.mxu1 }
 0x4d1   : > { %v12118_v55 = vadd.f32 %v10213_v1, %v2307_v39 }
 0x4d2   : > { %v2547_v48 = vpop.f32.mrf.mxu1 }
 0x4d3   : > { %v12121_v57 = vadd.f32 %v2547_v48, %v2306_v35 }
 0x4d8   : > { %v10216_v3 = vpop.f32.mrf.mxu1 }
 0x4d9   : > { %v12125_v47 = vadd.f32 %v10216_v3, %v2309_v13 }
 0x4da   : > { %v2557_v51 = vpop.f32.mrf.mxu1 }
 0x4db   : > { %v12127_v52 = vadd.f32 %v2557_v51, %v2308_v58 }
 0x4e0   : > { %v9756_v53 = vpop.f32.mrf.mxu1 }
 0x4e2   : > { %v9757_v34 = vpop.f32.mrf.mxu1 }
 0x4e3   : > { %v9758_v5 = vadd.f32 %v9757_v34, %v9756_v53  ;;  %v13126_v34 = vld [vmem:[#allocation2_spill] sm:$0xff] }
 0x4e4   : > { %v9759_v8 = vpop.f32.mrf.mxu1 }
 0x4e5   : > { %10219 = vmatprep.mubr.msk.f32.mxu0 %vm988_vm1, %v9758_v5  ;;  %v13127_v5 = vld [vmem:[#allocation3_spill] sm:$0xff] }
 0x4e6   : > { %v9760_v37 = vpop.f32.mrf.mxu1 }
 0x4e7   : > { %v9761_v9 = vadd.f32 %v9760_v37, %v9759_v8  ;;  %v1216_v8 = vadd.f32 %v13127_v5, %v13126_v34 }
 0x4e8   : > { %v9762_v11 = vpop.f32.mrf.mxu1 }
 0x4e9   : > { %10220 = vmatmul.mubr.msk.f32.vlgmr.msra.gmra.mxu0 %vm988_vm1, %v9761_v9  ;;  %v13128_v9 = vld [vmem:[#allocation4_spill] sm:$0xff] }
 0x4ea   : > { %v9763_v4 = vpop.f32.mrf.mxu1  ;;  %10232 = vmatpush3.msk.msra.mxu0 %vm1013_vm0, %v9070_v16 }
 0x4eb   : > { %v9764_v12 = vadd.f32 %v9763_v4, %v9762_v11  ;;  %10245 = vmatprep.subr.mxu0 %v10870_v49  ;;  %v1510_v11 = vadd.f32 %v13128_v9, %v1216_v8 }
 0x4ec   : > { %v9765_v2 = vpop.f32.mrf.mxu1 }
 0x4ed   : > { %10222 = vmatprep.mubr.msk.f32.mxu0 %vm988_vm1, %v9764_v12  ;;  %v13129_v12 = vld [vmem:[#allocation5_spill] sm:$0xff] }
 0x4ee   : > { %v9766_v15 = vpop.f32.mrf.mxu1 }
 0x4ef   : > { %v9767_v17 = vadd.f32 %v9766_v15, %v9765_v2  ;;  %v1774_v2 = vadd.f32 %v13129_v12, %v1510_v11  ;;  %v13130_v15 = vld [vmem:[#allocation6_spill] sm:$0xff] }
 0x4f0   : > { %v9768_v18 = vpop.f32.mrf.mxu1 }
 0x4f1   : > { %10223 = vmatmul.mubr.msk.f32.gmra.mxu0 %vm988_vm1, %v9767_v17  ;;  %v2038_v17 = vadd.f32 %v13130_v15, %v1774_v2 }
 0x4f2   : > { %v9769_v21 = vpop.f32.mrf.mxu1 }
 0x4f3   : > { %v9770_v23 = vadd.f32 %v9769_v21, %v9768_v18  ;;  %v2302_v21 = vadd.f32 %v12093_v0, %v2038_v17 }
 0x4f4   : > { %v9771_v24 = vpop.f32.mrf.mxu1 }
 0x4f5   : > { %10225 = vmatprep.mubr.msk.f32.mxu0 %vm988_vm1, %v9770_v23 }
 0x4f6   : > { %v9772_v26 = vpop.f32.mrf.mxu1 }
 0x4f7   : > { %v9773_v28 = vadd.f32 %v9772_v26, %v9771_v24  ;;  %v2566_v24 = vadd.f32 %v12104_v27, %v2302_v21 }
 0x4f8   : > { %v9774_v10 = vpop.f32.mrf.mxu1 }
 0x4f9   : > { %10226 = vmatmul.mubr.msk.f32.gmra.mxu0 %vm988_vm1, %v9773_v28 }
 0x4fa   : > { %v9775_v14 = vpop.f32.mrf.mxu1 }
 0x4fb   : > { %v9776_v16 = vadd.f32 %v9775_v14, %v9774_v10 }
 0x4fc   : > { %v9777_v19 = vpop.f32.mrf.mxu1 }
 0x4fd   : > { %10228 = vmatprep.mubr.msk.f32.mxu0 %vm988_vm1, %v9776_v16 }
 0x4fe   : > { %v9778_v22 = vpop.f32.mrf.mxu1 }
 0x4ff   : > { %v9779_v38 = vadd.f32 %v9778_v22, %v9777_v19  ;;  %v9080_v19 = vld [vmem:[%s13131_s28] ss:$0 sm:$0xff]  ;;  %s13133_s28 = sld [smem:[#allocation14_spill]] }
 0x500   : > { %v9821_v42 = vpop.f32.mrf.mxu1 }
 0x501   : > { %10229 = vmatmul.mubr.msk.f32.gmra.mxu0 %vm988_vm1, %v9779_v38 }
 0x502   : > { %v9822_v29 = vpop.f32.mrf.mxu1 }
 0x503   : > { %v9823_v6 = vadd.f32 %v9822_v29, %v9821_v42 }
 0x504   : > { %v9824_v39 = vpop.f32.mrf.mxu1 }
 0x505   : > { %10233 = vmatprep.mubr.msk.f32.mxu0 %vm988_vm1, %v9823_v6 }
 0x506   : > { %v9825_v32 = vpop.f32.mrf.mxu1 }
 0x507   : > { %v9826_v56 = vadd.f32 %v9825_v32, %v9824_v39 }
 0x508   : > { %v9827_v13 = vpop.f32.mrf.mxu1 }
 0x509   : > { %10234 = vmatmul.mubr.msk.f32.vlgmr.msra.gmra.mxu0 %vm988_vm1, %v9826_v56 }
 0x50a   : > { %v9828_v20 = vpop.f32.mrf.mxu1  ;;  %10246 = vmatpush3.msra.mxu0 %v12150_v54 }
 0x50b   : > { %v9829_v36 = vadd.f32 %v9828_v20, %v9827_v13  ;;  %10247 = vmatprep.subr.mxu0 %v10870_v49 }
 0x50c   : > { %v9830_v50 = vpop.f32.mrf.mxu1  ;;  %10248 = vmatpush3.msra.mxu0 %v12157_v59 }
 0x50d   : > { %10236 = vmatprep.mubr.msk.f32.mxu0 %vm988_vm1, %v9829_v36  ;;  %10252 = vmatprep.subr.mxu0 %v10870_v49 }
 0x50e   : > { %v9831_v7 = vpop.f32.mrf.mxu1 }
 0x50f   : > { %v9832_v61 = vadd.f32 %v9831_v7, %v9830_v50 }
 0x510   : > { %v9833_v41 = vpop.f32.mrf.mxu1 }
 0x511   : > { %10237 = vmatmul.mubr.msk.f32.gmra.mxu0 %vm988_vm1, %v9832_v61 }
 0x512   : > { %v9834_v30 = vpop.f32.mrf.mxu1 }
 0x513   : > { %v9835_v25 = vadd.f32 %v9834_v30, %v9833_v41 }
 0x514   : > { %v9836_v40 = vpop.f32.mrf.mxu1 }
 0x515   : > { %10239 = vmatprep.mubr.msk.f32.mxu0 %vm988_vm1, %v9835_v25 }
 0x516   : > { %v9837_v63 = vpop.f32.mrf.mxu1 }
 0x517   : > { %v9838_v43 = vadd.f32 %v9837_v63, %v9836_v40 }
 0x518   : > { %v9839_v46 = vpop.f32.mrf.mxu1 }
 0x519   : > { %10240 = vmatmul.mubr.msk.f32.gmra.mxu0 %vm988_vm1, %v9838_v43 }
 0x51a   : > { %v9840_v33 = vpop.f32.mrf.mxu1 }
 0x51b   : > { %v9841_v1 = vadd.f32 %v9840_v33, %v9839_v46 }
 0x51c   : > { %v9842_v45 = vpop.f32.mrf.mxu1 }
 0x51d   : > { %10242 = vmatprep.mubr.msk.f32.mxu0 %vm988_vm1, %v9841_v1 }
 0x51e   : > { %v9843_v35 = vpop.f32.mrf.mxu1 }
 0x51f   : > { %v9844_v48 = vadd.f32 %v9843_v35, %v9842_v45 }
 0x521   : > { %10243 = vmatmul.mubr.msk.f32.gmra.mxu0 %vm988_vm1, %v9844_v48 }
 0x522   : > { %10249 = vmatprep.mubr.msk.f32.mxu0 %vm10871_vm2, %v10870_v49 }
 0x5a9   : > { %v10221_v60 = vpop.f32.mrf.mxu0 }
 0x5aa   : > { %v2831_v10 = vadd.f32 %v10221_v60, %v12100_v31 }
 0x5ab   : > { %v2791_v3 = vpop.f32.mrf.mxu0 }
 0x5ac   : > { %v2830_v28 = vadd.f32 %v2791_v3, %v2566_v24 }
 0x5b1   : > { %v10224_v58 = vpop.f32.mrf.mxu0 }
 0x5b2   : > { %v2833_v0 = vadd.f32 %v10224_v58, %v12109_v62 }
 0x5b3   : > { %v2801_v51 = vpop.f32.mrf.mxu0 }
 0x5b4   : > { %v2832_v38 = vadd.f32 %v2801_v51, %v12112_v44 }
 0x5b9   : > { %v10227_v53 = vpop.f32.mrf.mxu0 }
 0x5ba   : > { %v2835_v62 = vadd.f32 %v10227_v53, %v12118_v55 }
 0x5bb   : > { %v2811_v37 = vpop.f32.mrf.mxu0 }
 0x5bc   : > { %v2834_v20 = vadd.f32 %v2811_v37, %v12121_v57 }
 0x5c1   : > { %v10230_v4 = vpop.f32.mrf.mxu0 }
 0x5c2   : > { %v2837_v45 = vadd.f32 %v10230_v4, %v12125_v47 }
 0x5c3   : > { %v2821_v18 = vpop.f32.mrf.mxu0 }
 0x5c4   : > { %v2836_v34 = vadd.f32 %v2821_v18, %v12127_v52 }
 0x5c9   : > { %v10235_v23 = vpop.f32.mrf.mxu0 }
 0x5ca   : > { %v3095_v16 = vadd.f32 %v10235_v23, %v2831_v10 }
 0x5cb   : > { %v3055_v26 = vpop.f32.mrf.mxu0 }
 0x5cc   : > { %v3094_v14 = vadd.f32 %v3055_v26, %v2830_v28  ;;  %v12178_v6 = vadd.f32 %v9080_v19, %v3095_v16 }
 0x5ce   : > { %v12175_v42 = vadd.f32 %v9080_v19, %v3094_v14  ;;  %v3140_v56 = vmul.f32 %v12178_v6, %v12178_v6  ;;  %v3119_v50 = vsel %vm3117_vm3, %v12178_v6, 0.0 }
 0x5d0   : > { %v3139_v31 = vmul.f32 %v12175_v42, %v12175_v42  ;;  %v3118_v44 = vsel %vm3117_vm3, %v12175_v42, 0.0  ;;  %v3148_v40 = vsel %vm3117_vm3, %v3140_v56, 0.0 }
 0x5d1   : > { %v10238_v22 = vpop.f32.mrf.mxu0  ;;  %v3120_v30 = vadd.f32 %v3119_v50, %v3118_v44 }
 0x5d2   : > { %v3097_v39 = vadd.f32 %v10238_v22, %v2833_v0  ;;  %v3147_v7 = vsel %vm3117_vm3, %v3139_v31, 0.0 }
 0x5d3   : > { %v3065_v29 = vpop.f32.mrf.mxu0  ;;  %v3149_v57 = vadd.f32 %v3148_v40, %v3147_v7 }
 0x5d4   : > { %v3096_v27 = vadd.f32 %v3065_v29, %v2832_v38  ;;  %v12195_v61 = vadd.f32 %v9080_v19, %v3097_v39 }
 0x5d6   : > { %v12182_v32 = vadd.f32 %v9080_v19, %v3096_v27  ;;  %v3142_v33 = vmul.f32 %v12195_v61, %v12195_v61  ;;  %v3123_v48 = vsel %vm3117_vm3, %v12195_v61, 0.0 }
 0x5d8   : > { %v3141_v13 = vmul.f32 %v12182_v32, %v12182_v32  ;;  %v3121_v41 = vsel %vm3117_vm3, %v12182_v32, 0.0  ;;  %v3152_v5 = vsel %vm3117_vm3, %v3142_v33, 0.0 }
 0x5d9   : > { %v10241_v36 = vpop.f32.mrf.mxu0  ;;  %v3122_v46 = vadd.f32 %v3121_v41, %v3120_v30  ;;  %v12249_v41 = vld [vmem:[%s13132_s0] sm:$0xff] }
 0x5da   : > { %v3150_v63 = vsel %vm3117_vm3, %v3141_v13, 0.0  ;;  %v3099_v55 = vadd.f32 %v10241_v36, %v2835_v62 }
 0x5db   : > { %v3075_v25 = vpop.f32.mrf.mxu0  ;;  %v3151_v35 = vadd.f32 %v3150_v63, %v3149_v57  ;;  %v3124_v51 = vadd.f32 %v3123_v48, %v3122_v46 }
 0x5dc   : > { %v3098_v43 = vadd.f32 %v3075_v25, %v2834_v20  ;;  %v12208_v60 = vadd.f32 %v9080_v19, %v3099_v55 }
 0x5dd   : > { %v3153_v9 = vadd.f32 %v3152_v5, %v3151_v35  ;;  %v3530_v35 = vld [vmem:[%s13087_s8] sm:$0xff] }
 0x5de   : > { %v12203_v1 = vadd.f32 %v9080_v19, %v3098_v43  ;;  %v3144_v4 = vmul.f32 %v12208_v60, %v12208_v60  ;;  %v3127_v17 = vsel %vm3117_vm3, %v12208_v60, 0.0  ;;  %10285 = vmatprep.mubr.msk.f32.mxu1 %vm3532_vm5, %v3530_v35  ;;  %v3615_v35 = vld [vmem:[%s13088_s9 + $0x8] sm:$0xff] }
 0x5e0   : > { %v3125_v3 = vsel %vm3117_vm3, %v12203_v1, 0.0  ;;  %v3143_v58 = vmul.f32 %v12203_v1, %v12203_v1  ;;  %v3156_v18 = vsel %vm3117_vm3, %v3144_v4, 0.0 }
 0x5e1   : > { %v10244_v53 = vpop.f32.mrf.mxu0  ;;  %v3126_v37 = vadd.f32 %v3125_v3, %v3124_v51 }
 0x5e2   : > { %v3154_v47 = vsel %vm3117_vm3, %v3143_v58, 0.0  ;;  %v3101_v8 = vadd.f32 %v10244_v53, %v2837_v45  ;;  %v9089_v45 = vld [vmem:[%s13087_s8 + $0x10] sm:$0xff]  ;;  %v3468_v53 = vlaneseq }
 0x5e3   : > { %v3085_v11 = vpop.f32.mrf.mxu0  ;;  %v3155_v15 = vadd.f32 %v3154_v47, %v3153_v9  ;;  %v3128_v52 = vadd.f32 %v3127_v17, %v3126_v37 }
 0x5e4   : > { %v12219_v12 = vadd.f32 %v9080_v19, %v3101_v8  ;;  %v3100_v2 = vadd.f32 %v3085_v11, %v2836_v34  ;;  %v3469_v5 = vshrl.u32 %v3468_v53, 7 }
 0x5e5   : > { %v3157_v10 = vadd.f32 %v3156_v18, %v3155_v15 }
 0x5e6   : > { %v12223_v21 = vadd.f32 %v9080_v19, %v3100_v2  ;;  %v3146_v23 = vmul.f32 %v12219_v12, %v12219_v12  ;;  %v3131_v14 = vsel %vm3117_vm3, %v12219_v12, 0.0  ;;  %v12266_v47 = vsub.s32 0, %v3469_v5  ;;  %v9100_v5 = vld [vmem:[%s13087_s8 + $0x28] sm:$0xff] }
 0x5e8   : > { %v3129_v24 = vsel %vm3117_vm3, %v12223_v21, 0.0  ;;  %v3145_v26 = vmul.f32 %v12223_v21, %v12223_v21  ;;  %v3160_v38 = vsel %vm3117_vm3, %v3146_v23, 0.0 }
 0x5e9   : > { %v3130_v28 = vadd.f32 %v3129_v24, %v3128_v52  ;;  %v9085_v52 = vld [vmem:[%s13133_s28] ss:$0 sm:$0xff] }
 0x5ea   : > { %v3158_v16 = vsel %vm3117_vm3, %v3145_v26, 0.0 }
 0x5eb   : > { %v3132_v19 = vadd.f32 %v3131_v14, %v3130_v28  ;;  %v3159_v22 = vadd.f32 %v3158_v16, %v3157_v10 }
 0x5ed   : > { %v3133_v29 = vrot.slane %v3132_v19, 4  ;;  %v3161_v0 = vadd.f32 %v3160_v38, %v3159_v22 }
 0x5ef   : > { %v3134_v27 = vadd.f32 %v3133_v29, %v3132_v19  ;;  %v3162_v31 = vrot.slane %v3161_v0, 4 }
 0x5f1   : > { %v3135_v39 = vrot.slane %v3134_v27, 2  ;;  %v3163_v56 = vadd.f32 %v3162_v31, %v3161_v0 }
 0x5f3   : > { %v3136_v44 = vadd.f32 %v3135_v39, %v3134_v27  ;;  %v3164_v13 = vrot.slane %v3163_v56, 2 }
 0x5f5   : > { %v3137_v62 = vrot.slane %v3136_v44, 1  ;;  %v3165_v20 = vadd.f32 %v3164_v13, %v3163_v56 }
 0x5f7   : > { %v3138_v36 = vadd.f32 %v3137_v62, %v3136_v44  ;;  %v3166_v50 = vrot.slane %v3165_v20, 1 }
 0x5f9   : > { %10250 = vmatmul.mubr.msk.f32.vlgmr.msra.gmra.mxu0 %vm3117_vm3, %v3138_v36  ;;  %v3167_v7 = vadd.f32 %v3166_v50, %v3165_v20 }
 0x5fa   : > { %10253 = vmatpush3.msra.mxu0 %v12150_v54  ;;  %10256 = vmatprep.mubr.msk.f32.mxu0 %vm10871_vm2, %v10870_v49 }
 0x5fb   : > { %10254 = vmatprep.subr.mxu0 %v10870_v49 }
 0x5fc   : > { %10255 = vmatpush3.msra.mxu0 %v12157_v59 }
 0x5fd   : > { %10257 = vmatmul.mubr.msk.f32.vlgmr.msra.gmra.mxu0 %vm3117_vm3, %v3167_v7  ;;  %10259 = vmatprep.subr.mxu0 %v10870_v49 }
 0x5fe   : > { %10261 = vmatprep.mubr.msk.f32.mxu0 %vm10871_vm2, %v10870_v49  ;;  %10260 = vmatpush3.msra.mxu0 %v12249_v41 }
 0x5ff   : > { %10264 = vmatprep.subr.mxu0 %v10870_v49 }
 0x6b9   : > { %v3237_v30 = vpop.f32.mrf.mxu0 }
 0x6ba   : > { %v3242_v25 = vmul.f32 0.0078125, %v3237_v30 }
 0x6bb   : > { %v10251_v40 = vpop.f32.mrf.mxu0 }
 0x6bc   : > { %10262 = vmatmul.mubr.msk.f32.vlgmr.msra.gmra.mxu0 %vm3320_vm4, %v3242_v25  ;;  %v3317_v55 = vmul.f32 %v3242_v25, %v3242_v25 }
 0x6bd   : > { %v3312_v63 = vpop.f32.mrf.mxu0  ;;  %10265 = vmatpush3.msra.mxu0 %v12249_v41  ;;  %10266 = vmatprep.mubr.msk.f32.mxu0 %vm10871_vm2, %v10870_v49 }
 0x6be   : > { %v3316_v43 = vmul.f32 0.0078125, %v3312_v63 }
 0x6bf   : > { %v10258_v57 = vpop.f32.mrf.mxu0 }
 0x6c0   : > { %v3318_v46 = vsub.f32 %v3316_v43, %v3317_v55  ;;  %v9090_v55 = vld [vmem:[%s13087_s8 + $0x18] sm:$0xff]  ;;  %v9104_v43 = vld [vmem:[%s13088_s9 + $0x28] sm:$0xff] }
 0x6c1   : > { %v3531_v57 = vld [vmem:[%s13087_s8 + $0x8] sm:$0xff] }
 0x6c2   : > { %v3319_v33 = vmax.f32 %v3318_v46, 0.0  ;;  %v9103_v46 = vld [vmem:[%s13088_s9 + $0x20] sm:$0xff] }
 0x6c4   : > { %10267 = vmatmul.mubr.msk.f32.vlgmr.msra.gmra.mxu0 %vm3320_vm4, %v3319_v33  ;;  %v9094_v33 = vld [vmem:[%s13088_s9 + $0x18] sm:$0xff] }
 0x6c5   : > { %10304 = vmatprep.mubr.msk.f32.mxu0 %vm3532_vm5, %v9089_v45  ;;  %v9093_v45 = vld [vmem:[%s13088_s9 + $0x10] sm:$0xff] }
 0x77c   : > { %v3390_v48 = vpop.f32.mrf.mxu0 }
 0x77d   : > { %v3471_v8 = vrot.slane %v3390_v48, %v12266_v47 }
 0x77e   : > { %v10263_v3 = vpop.f32.mrf.mxu0 }
 0x77f   : > { %v3476_v11 = vsub.f32 %v12203_v1, %v3471_v8  ;;  %v3477_v4 = vsub.f32 %v12208_v60, %v3471_v8  ;;  %v3478_v2 = vsub.f32 %v12223_v21, %v3471_v8  ;;  %v3479_v15 = vsub.f32 %v12219_v12, %v3471_v8  ;;  %v9086_v1 = vld [vmem:[%s13134_s24] ss:$0 sm:$0xff] }
 0x780   : > { %v3475_v17 = vsub.f32 %v12195_v61, %v3471_v8  ;;  %v3474_v28 = vsub.f32 %v12182_v32, %v3471_v8  ;;  %v3473_v61 = vsub.f32 %v12178_v6, %v3471_v8  ;;  %v3472_v38 = vsub.f32 %v12175_v42, %v3471_v8  ;;  %v9112_v8 = vld [vmem:[%s13088_s9 + $0x38] sm:$0xff] }
 0x784   : > { %v3463_v58 = vpop.f32.mrf.mxu0 }
 0x785   : > { %v3464_v51 = vadd.f32 1e-05, %v3463_v58 }
 0x786   : > { %v10268_v34 = vpop.f32.mrf.mxu0 }
 0x787   : > { %10819 = vrsqrt.f32 %v3464_v51  ;;  %v3614_v51 = vld [vmem:[%s13088_s9] sm:$0xff] }
 0x788   : > { %v9099_v34 = vld [vmem:[%s13087_s8 + $0x20] sm:$0xff] }
 0x794   : > { %v10820_v37 = vpop.eup %10819 }
 0x795   : > { %v3483_v9 = vrot.slane %v10820_v37, %v12266_v47  ;;  %v9111_v37 = vld [vmem:[%s13088_s9 + $0x30] sm:$0xff] }
 0x797   : > { %v3488_v18 = vmul.f32 %v3483_v9, %v3476_v11  ;;  %v3489_v23 = vmul.f32 %v3483_v9, %v3477_v4  ;;  %v3490_v24 = vmul.f32 %v3483_v9, %v3478_v2  ;;  %v3491_v26 = vmul.f32 %v3483_v9, %v3479_v15 }
 0x798   : > { %v3487_v60 = vmul.f32 %v3483_v9, %v3475_v17  ;;  %v3486_v14 = vmul.f32 %v3483_v9, %v3474_v28  ;;  %v3485_v29 = vmul.f32 %v3483_v9, %v3473_v61  ;;  %v3484_v31 = vmul.f32 %v3483_v9, %v3472_v38  ;;  %v9119_v28 = vld [vmem:[%s13088_s9 + $0x40] sm:$0xff] }
 0x799   : > { %v3504_v21 = vmul.f32 %v9085_v52, %v3489_v23  ;;  %v3505_v10 = vmul.f32 %v9085_v52, %v3490_v24  ;;  %v3506_v12 = vmul.f32 %v9085_v52, %v3491_v26  ;;  %v3503_v16 = vmul.f32 %v9085_v52, %v3488_v18  ;;  %v9107_v23 = vld [vmem:[%s13087_s8 + $0x30] sm:$0xff]  ;;  %v9108_v24 = vld [vmem:[%s13087_s8 + $0x38] sm:$0xff]  ;;  %v9120_v26 = vld [vmem:[%s13088_s9 + $0x48] sm:$0xff] }
 0x79a   : > { %v3502_v0 = vmul.f32 %v9085_v52, %v3487_v60  ;;  %v3501_v39 = vmul.f32 %v9085_v52, %v3486_v14  ;;  %v3500_v6 = vmul.f32 %v9085_v52, %v3485_v29  ;;  %v3499_v62 = vmul.f32 %v9085_v52, %v3484_v31  ;;  %v9115_v14 = vld [vmem:[%s13087_s8 + $0x40] sm:$0xff] }
 0x79b   : > { %v3520_v19 = vadd.f32 %v9086_v1, %v3505_v10  ;;  %v3521_v22 = vadd.f32 %v9086_v1, %v3506_v12  ;;  %v3519_v27 = vadd.f32 %v9086_v1, %v3504_v21  ;;  %v3518_v56 = vadd.f32 %v9086_v1, %v3503_v16  ;;  %v9116_v16 = vld [vmem:[%s13087_s8 + $0x48] sm:$0xff] }
 0x79c   : > { %v3517_v42 = vadd.f32 %v9086_v1, %v3502_v0  ;;  %v3516_v20 = vadd.f32 %v9086_v1, %v3501_v39  ;;  %v3515_v50 = vadd.f32 %v9086_v1, %v3500_v6  ;;  %v3514_v30 = vadd.f32 %v9086_v1, %v3499_v62  ;;  %v9124_v6 = vld [vmem:[%s13087_s8 + $0x58] sm:$0xff]  ;;  %v9135_v62 = vld [vmem:[%s13088_s9 + $0x60] sm:$0xff] }
 0x79d   : > { %v12284_v32 = vmax.f32 %v3521_v22, 0.0  ;;  %v12286_v44 = vmax.f32 %v3520_v19, 0.0  ;;  %v12292_v13 = vmax.f32 %v3519_v27, 0.0  ;;  %v12298_v36 = vmax.f32 %v3518_v56, 0.0  ;;  %v9128_v19 = vld [vmem:[%s13088_s9 + $0x58] sm:$0xff]  ;;  %v9127_v22 = vld [vmem:[%s13088_s9 + $0x50] sm:$0xff] }
 0x79e   : > { %v12304_v7 = vmax.f32 %v3517_v42, 0.0  ;;  %v12310_v25 = vmax.f32 %v3516_v20, 0.0  ;;  %v12316_v40 = vmax.f32 %v3515_v50, 0.0  ;;  %v12322_v63 = vmax.f32 %v3514_v30, 0.0  ;;  %v9123_v56 = vld [vmem:[%s13087_s8 + $0x50] sm:$0xff]  ;;  %v9136_v42 = vld [vmem:[%s13088_s9 + $0x68] sm:$0xff] }
 0x79f   : > { %10269 = vmatprep.subr.mxu1 %v12284_v32  ;;  %10288 = vmatprep.subr.mxu0 %v12284_v32 }
 0x7a0   : > { %10270 = vmatpush3.msra.mxu1 %v12284_v32  ;;  %10289 = vmatpush3.msra.mxu0 %v12284_v32 }
 0x7a1   : > { %10271 = vmatprep.subr.mxu1 %v12286_v44  ;;  %10290 = vmatprep.subr.mxu0 %v12286_v44 }
 0x7a2   : > { %10272 = vmatpush3.msra.mxu1 %v12286_v44  ;;  %10291 = vmatpush3.msra.mxu0 %v12286_v44 }
 0x7a3   : > { %10273 = vmatprep.subr.mxu1 %v12292_v13  ;;  %10292 = vmatprep.subr.mxu0 %v12292_v13 }
 0x7a4   : > { %10274 = vmatpush3.msra.mxu1 %v12292_v13  ;;  %10293 = vmatpush3.msra.mxu0 %v12292_v13 }
 0x7a5   : > { %10275 = vmatprep.subr.mxu1 %v12298_v36  ;;  %10294 = vmatprep.subr.mxu0 %v12298_v36 }
 0x7a6   : > { %10276 = vmatpush3.msra.mxu1 %v12298_v36  ;;  %10295 = vmatpush3.msra.mxu0 %v12298_v36 }
 0x7a7   : > { %10277 = vmatprep.subr.mxu1 %v12304_v7  ;;  %10296 = vmatprep.subr.mxu0 %v12304_v7 }
 0x7a8   : > { %10278 = vmatpush3.msra.mxu1 %v12304_v7  ;;  %10297 = vmatpush3.msra.mxu0 %v12304_v7 }
 0x7a9   : > { %10279 = vmatprep.subr.mxu1 %v12310_v25  ;;  %10298 = vmatprep.subr.mxu0 %v12310_v25 }
 0x7aa   : > { %10280 = vmatpush3.msra.mxu1 %v12310_v25  ;;  %10299 = vmatpush3.msra.mxu0 %v12310_v25 }
 0x7ab   : > { %10281 = vmatprep.subr.mxu1 %v12316_v40  ;;  %10300 = vmatprep.subr.mxu0 %v12316_v40 }
 0x7ac   : > { %10282 = vmatpush3.msra.mxu1 %v12316_v40  ;;  %10301 = vmatpush3.msra.mxu0 %v12316_v40 }
 0x7ad   : > { %10283 = vmatprep.subr.mxu1 %v12322_v63  ;;  %10302 = vmatprep.subr.mxu0 %v12322_v63 }
 0x7ae   : > { %10284 = vmatpush3.msra.mxu1 %v12322_v63  ;;  %10303 = vmatpush3.msra.mxu0 %v12322_v63 }
 0x7af   : > { %10305 = vmatmul.mubr.msk.f32.vlgmr.msra.gmra.mxu0 %vm3532_vm5, %v9090_v55  ;;  %10340 = vmatprep.subr.mxu0 %v9104_v43 }
 0x7b0   : > { %10341 = vmatpush3.msra.mxu0 %v9104_v43  ;;  %10286 = vmatmul.mubr.msk.f32.vlgmr.msra.gmra.mxu1 %vm3532_vm5, %v3531_v57 }
 0x7b1   : > { %10342 = vmatprep.subr.mxu0 %v9103_v46  ;;  %10307 = vmatprep.subr.mxu1 %v9094_v33 }
 0x7b2   : > { %10343 = vmatpush3.msra.mxu0 %v9103_v46  ;;  %10308 = vmatpush3.msra.mxu1 %v9094_v33  ;;  %v9131_v46 = vld [vmem:[%s13087_s8 + $0x60] sm:$0xff]  ;;  %v9132_v33 = vld [vmem:[%s13087_s8 + $0x68] sm:$0xff] }
 0x7b3   : > { %10347 = vmatprep.subr.mxu0 %v12284_v32  ;;  %10309 = vmatprep.subr.mxu1 %v9093_v45 }
 0x7b4   : > { %10310 = vmatpush3.msra.mxu1 %v9093_v45  ;;  %v9144_v45 = vld [vmem:[%s13088_s9 + $0x78] sm:$0xff] }
 0x7b5   : > { %10314 = vmatprep.subr.mxu1 %v3615_v35 }
 0x86f   : > { %v10306_v48 = vpop.f32.mrf.mxu0 }
 0x870   : > { %v10287_v3 = vpop.f32.mrf.mxu1 }
 0x871   : > { %v3691_v58 = vpop.f32.mrf.mxu0 }
 0x872   : > { %10311 = vmatprep.mubr.msk.f32.mxu1 %vm3117_vm3, %v3691_v58  ;;  %v3605_v53 = vpop.f32.mrf.mxu1 }
 0x873   : > { %10312 = vmatmul.mubr.msk.f32.vlgmr.msra.gmra.mxu1 %vm3117_vm3, %v10306_v48 }
 0x874   : > { %10315 = vmatpush3.msra.mxu1 %v3615_v35  ;;  %10318 = vmatprep.mubr.msk.f32.mxu1 %vm3117_vm3, %v3605_v53  ;;  %v9143_v35 = vld [vmem:[%s13088_s9 + $0x70] sm:$0xff] }
 0x875   : > { %10316 = vmatprep.subr.mxu1 %v3614_v51 }
 0x876   : > { %10317 = vmatpush3.msra.mxu1 %v3614_v51 }
 0x877   : > { %10321 = vmatprep.subr.mxu1 %v12284_v32  ;;  %10319 = vmatmul.mubr.msk.f32.vlgmr.msra.gmra.mxu1 %vm3117_vm3, %v10287_v3 }
 0x878   : > { %10322 = vmatpush3.msra.mxu1 %v12284_v32  ;;  %10337 = vmatprep.mubr.msk.f32.mxu1 %vm3532_vm5, %v9099_v34 }
 0x879   : > { %10323 = vmatprep.subr.mxu1 %v12286_v44 }
 0x87a   : > { %10324 = vmatpush3.msra.mxu1 %v12286_v44 }
 0x87b   : > { %10325 = vmatprep.subr.mxu1 %v12292_v13 }
 0x87c   : > { %10326 = vmatpush3.msra.mxu1 %v12292_v13 }
 0x87d   : > { %10327 = vmatprep.subr.mxu1 %v12298_v36 }
 0x87e   : > { %10328 = vmatpush3.msra.mxu1 %v12298_v36 }
 0x87f   : > { %10329 = vmatprep.subr.mxu1 %v12304_v7 }
 0x880   : > { %10330 = vmatpush3.msra.mxu1 %v12304_v7 }
 0x881   : > { %10331 = vmatprep.subr.mxu1 %v12310_v25 }
 0x882   : > { %10332 = vmatpush3.msra.mxu1 %v12310_v25 }
 0x883   : > { %10333 = vmatprep.subr.mxu1 %v12316_v40 }
 0x884   : > { %10334 = vmatpush3.msra.mxu1 %v12316_v40 }
 0x885   : > { %10335 = vmatprep.subr.mxu1 %v12322_v63 }
 0x886   : > { %10336 = vmatpush3.msra.mxu1 %v12322_v63 }
 0x887   : > { %10338 = vmatmul.mubr.msk.f32.vlgmr.msra.gmra.mxu1 %vm3532_vm5, %v9100_v5  ;;  %10366 = vmatprep.subr.mxu1 %v9112_v8  ;;  %v9139_v5 = vld [vmem:[%s13087_s8 + $0x70] sm:$0xff] }
 0x888   : > { %10367 = vmatpush3.msra.mxu1 %v9112_v8  ;;  %v9140_v8 = vld [vmem:[%s13087_s8 + $0x78] sm:$0xff] }
 0x889   : > { %10368 = vmatprep.subr.mxu1 %v9111_v37 }
 0x88a   : > { %10369 = vmatpush3.msra.mxu1 %v9111_v37 }
 0x88b   : > { %10373 = vmatprep.subr.mxu1 %v12284_v32 }
 0x933   : > { %v10313_v9 = vpop.f32.mrf.mxu1 }
 0x935   : > { %v3775_v11 = vpop.f32.mrf.mxu1 }
 0x937   : > { %v10320_v4 = vpop.f32.mrf.mxu1 }
 0x938   : > { %v3862_v2 = vadd.f32 %v10320_v4, %v10313_v9 }
 0x939   : > { %v3856_v15 = vpop.f32.mrf.mxu1 }
 0x93a   : > { %v3857_v17 = vadd.f32 %v3856_v15, %v3775_v11 }
 0x947   : > { %v10339_v52 = vpop.f32.mrf.mxu1 }
 0x949   : > { %v3940_v18 = vpop.f32.mrf.mxu1 }
 0x94a   : > { %10344 = vmatprep.mubr.msk.f32.mxu0 %vm3117_vm3, %v3940_v18 }
 0x94b   : > { %10345 = vmatmul.mubr.msk.f32.vlgmr.msra.gmra.mxu0 %vm3117_vm3, %v10339_v52 }
 0x94c   : > { %10348 = vmatpush3.msra.mxu0 %v12284_v32  ;;  %10363 = vmatprep.mubr.msk.f32.mxu0 %vm3532_vm5, %v9107_v23  ;;  %v9155_v23 = vld [vmem:[%s13089_s10] ss:$0 sm:$0xff] }
 0x94d   : > { %10349 = vmatprep.subr.mxu0 %v12286_v44 }
 0x94e   : > { %10350 = vmatpush3.msra.mxu0 %v12286_v44 }
 0x94f   : > { %10351 = vmatprep.subr.mxu0 %v12292_v13 }
 0x950   : > { %10352 = vmatpush3.msra.mxu0 %v12292_v13 }
 0x951   : > { %10353 = vmatprep.subr.mxu0 %v12298_v36 }
 0x952   : > { %10354 = vmatpush3.msra.mxu0 %v12298_v36 }
 0x953   : > { %10355 = vmatprep.subr.mxu0 %v12304_v7 }
 0x954   : > { %10356 = vmatpush3.msra.mxu0 %v12304_v7 }
 0x955   : > { %10357 = vmatprep.subr.mxu0 %v12310_v25 }
 0x956   : > { %10358 = vmatpush3.msra.mxu0 %v12310_v25 }
 0x957   : > { %10359 = vmatprep.subr.mxu0 %v12316_v40 }
 0x958   : > { %10360 = vmatpush3.msra.mxu0 %v12316_v40 }
 0x959   : > { %10361 = vmatprep.subr.mxu0 %v12322_v63 }
 0x95a   : > { %10362 = vmatpush3.msra.mxu0 %v12322_v63 }
 0x95b   : > { %10364 = vmatmul.mubr.msk.f32.vlgmr.msra.gmra.mxu0 %vm3532_vm5, %v9108_v24  ;;  %10392 = vmatprep.subr.mxu0 %v9120_v26 }
 0x95c   : > { %10393 = vmatpush3.msra.mxu0 %v9120_v26 }
 0x95d   : > { %10394 = vmatprep.subr.mxu0 %v9119_v28 }
 0x95e   : > { %10395 = vmatpush3.msra.mxu0 %v9119_v28 }
 0x95f   : > { %10399 = vmatprep.subr.mxu0 %v12284_v32 }
 0xa0b   : > { %v10346_v1 = vpop.f32.mrf.mxu0 }
 0xa0c   : > { %v4034_v60 = vadd.f32 %v10346_v1, %v3862_v2 }
 0xa0d   : > { %v4024_v21 = vpop.f32.mrf.mxu0 }
 0xa0e   : > { %v4033_v10 = vadd.f32 %v4024_v21, %v3857_v17  ;;  %v9147_v17 = vld [vmem:[%s13087_s8 + $0x80] sm:$0xff] }
 0xa1b   : > { %v10365_v12 = vpop.f32.mrf.mxu0 }
 0xa1d   : > { %v4110_v61 = vpop.f32.mrf.mxu0 }
 0xa1e   : > { %10370 = vmatprep.mubr.msk.f32.mxu1 %vm3117_vm3, %v4110_v61 }
 0xa1f   : > { %10371 = vmatmul.mubr.msk.f32.vlgmr.msra.gmra.mxu1 %vm3117_vm3, %v10365_v12 }
 0xa20   : > { %10374 = vmatpush3.msra.mxu1 %v12284_v32  ;;  %10389 = vmatprep.mubr.msk.f32.mxu1 %vm3532_vm5, %v9115_v14 }
 0xa21   : > { %10375 = vmatprep.subr.mxu1 %v12286_v44 }
 0xa22   : > { %10376 = vmatpush3.msra.mxu1 %v12286_v44 }
 0xa23   : > { %10377 = vmatprep.subr.mxu1 %v12292_v13 }
 0xa24   : > { %10378 = vmatpush3.msra.mxu1 %v12292_v13 }
 0xa25   : > { %10379 = vmatprep.subr.mxu1 %v12298_v36 }
 0xa26   : > { %10380 = vmatpush3.msra.mxu1 %v12298_v36 }
 0xa27   : > { %10381 = vmatprep.subr.mxu1 %v12304_v7 }
 0xa28   : > { %10382 = vmatpush3.msra.mxu1 %v12304_v7 }
 0xa29   : > { %10383 = vmatprep.subr.mxu1 %v12310_v25 }
 0xa2a   : > { %10384 = vmatpush3.msra.mxu1 %v12310_v25 }
 0xa2b   : > { %10385 = vmatprep.subr.mxu1 %v12316_v40 }
 0xa2c   : > { %10386 = vmatpush3.msra.mxu1 %v12316_v40 }
 0xa2d   : > { %10387 = vmatprep.subr.mxu1 %v12322_v63 }
 0xa2e   : > { %10388 = vmatpush3.msra.mxu1 %v12322_v63 }
 0xa2f   : > { %10390 = vmatmul.mubr.msk.f32.vlgmr.msra.gmra.mxu1 %vm3532_vm5, %v9116_v16  ;;  %10418 = vmatprep.subr.mxu1 %v9128_v19 }
 0xa30   : > { %10419 = vmatpush3.msra.mxu1 %v9128_v19 }
 0xa31   : > { %10420 = vmatprep.subr.mxu1 %v9127_v22 }
 0xa32   : > { %10421 = vmatpush3.msra.mxu1 %v9127_v22 }
 0xa33   : > { %10425 = vmatprep.subr.mxu1 %v12284_v32 }
 0xadf   : > { %v10372_v38 = vpop.f32.mrf.mxu1 }
 0xae0   : > { %v4204_v29 = vadd.f32 %v10372_v38, %v4034_v60 }
 0xae1   : > { %v4194_v0 = vpop.f32.mrf.mxu1 }
 0xae2   : > { %v4203_v27 = vadd.f32 %v4194_v0, %v4033_v10 }
 0xaef   : > { %v10391_v31 = vpop.f32.mrf.mxu1 }
 0xaf1   : > { %v4280_v39 = vpop.f32.mrf.mxu1 }
 0xaf2   : > { %10396 = vmatprep.mubr.msk.f32.mxu0 %vm3117_vm3, %v4280_v39 }
 0xaf3   : > { %10397 = vmatmul.mubr.msk.f32.vlgmr.msra.gmra.mxu0 %vm3117_vm3, %v10391_v31 }
 0xaf4   : > { %10400 = vmatpush3.msra.mxu0 %v12284_v32  ;;  %10415 = vmatprep.mubr.msk.f32.mxu0 %vm3532_vm5, %v9123_v56 }
 0xaf5   : > { %10401 = vmatprep.subr.mxu0 %v12286_v44 }
 0xaf6   : > { %10402 = vmatpush3.msra.mxu0 %v12286_v44 }
 0xaf7   : > { %10403 = vmatprep.subr.mxu0 %v12292_v13 }
 0xaf8   : > { %10404 = vmatpush3.msra.mxu0 %v12292_v13 }
 0xaf9   : > { %10405 = vmatprep.subr.mxu0 %v12298_v36 }
 0xafa   : > { %10406 = vmatpush3.msra.mxu0 %v12298_v36 }
 0xafb   : > { %10407 = vmatprep.subr.mxu0 %v12304_v7 }
 0xafc   : > { %10408 = vmatpush3.msra.mxu0 %v12304_v7 }
 0xafd   : > { %10409 = vmatprep.subr.mxu0 %v12310_v25 }
 0xafe   : > { %10410 = vmatpush3.msra.mxu0 %v12310_v25 }
 0xaff   : > { %10411 = vmatprep.subr.mxu0 %v12316_v40 }
 0xb00   : > { %10412 = vmatpush3.msra.mxu0 %v12316_v40 }
 0xb01   : > { %10413 = vmatprep.subr.mxu0 %v12322_v63 }
 0xb02   : > { %10414 = vmatpush3.msra.mxu0 %v12322_v63 }
 0xb03   : > { %10416 = vmatmul.mubr.msk.f32.vlgmr.msra.gmra.mxu0 %vm3532_vm5, %v9124_v6  ;;  %10444 = vmatprep.subr.mxu0 %v9136_v42 }
 0xb04   : > { %10445 = vmatpush3.msra.mxu0 %v9136_v42 }
 0xb05   : > { %10446 = vmatprep.subr.mxu0 %v9135_v62 }
 0xb06   : > { %10447 = vmatpush3.msra.mxu0 %v9135_v62  ;;  %v12603_v62 = vld [vmem:[%s13125_s1 + $0x8] sm:$0xff] }
 0xb07   : > { %10451 = vmatprep.subr.mxu0 %v12284_v32 }
 0xbb3   : > { %v10398_v20 = vpop.f32.mrf.mxu0 }
 0xbb4   : > { %v4374_v50 = vadd.f32 %v10398_v20, %v4204_v29 }
 0xbb5   : > { %v4364_v30 = vpop.f32.mrf.mxu0 }
 0xbb6   : > { %v4373_v55 = vadd.f32 %v4364_v30, %v4203_v27 }
 0xbc3   : > { %v10417_v43 = vpop.f32.mrf.mxu0 }
 0xbc5   : > { %v4450_v57 = vpop.f32.mrf.mxu0 }
 0xbc6   : > { %10422 = vmatprep.mubr.msk.f32.mxu1 %vm3117_vm3, %v4450_v57 }
 0xbc7   : > { %10423 = vmatmul.mubr.msk.f32.vlgmr.msra.gmra.mxu1 %vm3117_vm3, %v10417_v43 }
 0xbc8   : > { %10426 = vmatpush3.msra.mxu1 %v12284_v32  ;;  %10441 = vmatprep.mubr.msk.f32.mxu1 %vm3532_vm5, %v9131_v46 }
 0xbc9   : > { %10427 = vmatprep.subr.mxu1 %v12286_v44 }
 0xbca   : > { %10428 = vmatpush3.msra.mxu1 %v12286_v44 }
 0xbcb   : > { %10429 = vmatprep.subr.mxu1 %v12292_v13 }
 0xbcc   : > { %10430 = vmatpush3.msra.mxu1 %v12292_v13 }
 0xbcd   : > { %10431 = vmatprep.subr.mxu1 %v12298_v36 }
 0xbce   : > { %10432 = vmatpush3.msra.mxu1 %v12298_v36 }
 0xbcf   : > { %10433 = vmatprep.subr.mxu1 %v12304_v7 }
 0xbd0   : > { %10434 = vmatpush3.msra.mxu1 %v12304_v7 }
 0xbd1   : > { %10435 = vmatprep.subr.mxu1 %v12310_v25 }
 0xbd2   : > { %10436 = vmatpush3.msra.mxu1 %v12310_v25 }
 0xbd3   : > { %10437 = vmatprep.subr.mxu1 %v12316_v40 }
 0xbd4   : > { %10438 = vmatpush3.msra.mxu1 %v12316_v40 }
 0xbd5   : > { %10439 = vmatprep.subr.mxu1 %v12322_v63 }
 0xbd6   : > { %10440 = vmatpush3.msra.mxu1 %v12322_v63 }
 0xbd7   : > { %10442 = vmatmul.mubr.msk.f32.vlgmr.msra.gmra.mxu1 %vm3532_vm5, %v9132_v33  ;;  %10470 = vmatprep.subr.mxu1 %v9144_v45 }
 0xbd8   : > { %10471 = vmatpush3.msra.mxu1 %v9144_v45 }
 0xbd9   : > { %10472 = vmatprep.subr.mxu1 %v9143_v35 }
 0xbda   : > { %10473 = vmatpush3.msra.mxu1 %v9143_v35 }
 0xbdb   : > { %10477 = vmatprep.subr.mxu1 %v12284_v32 }
 0xc87   : > { %v10424_v48 = vpop.f32.mrf.mxu1 }
 0xc88   : > { %v4544_v3 = vadd.f32 %v10424_v48, %v4374_v50  ;;  %v12612_v50 = vld [vmem:[%s13125_s1] sm:$0xff] }
 0xc89   : > { %v4534_v58 = vpop.f32.mrf.mxu1 }
 0xc8a   : > { %v4543_v51 = vadd.f32 %v4534_v58, %v4373_v55 }
 0xc97   : > { %v10443_v53 = vpop.f32.mrf.mxu1 }
 0xc99   : > { %v4620_v34 = vpop.f32.mrf.mxu1 }
 0xc9a   : > { %10448 = vmatprep.mubr.msk.f32.mxu0 %vm3117_vm3, %v4620_v34 }
 0xc9b   : > { %10449 = vmatmul.mubr.msk.f32.vlgmr.msra.gmra.mxu0 %vm3117_vm3, %v10443_v53 }
 0xc9c   : > { %10452 = vmatpush3.msra.mxu0 %v12284_v32  ;;  %10467 = vmatprep.mubr.msk.f32.mxu0 %vm3532_vm5, %v9139_v5 }
 0xc9d   : > { %10453 = vmatprep.subr.mxu0 %v12286_v44 }
 0xc9e   : > { %10454 = vmatpush3.msra.mxu0 %v12286_v44 }
 0xc9f   : > { %10455 = vmatprep.subr.mxu0 %v12292_v13 }
 0xca0   : > { %10456 = vmatpush3.msra.mxu0 %v12292_v13 }
 0xca1   : > { %10457 = vmatprep.subr.mxu0 %v12298_v36 }
 0xca2   : > { %10458 = vmatpush3.msra.mxu0 %v12298_v36 }
 0xca3   : > { %10459 = vmatprep.subr.mxu0 %v12304_v7 }
 0xca4   : > { %10460 = vmatpush3.msra.mxu0 %v12304_v7 }
 0xca5   : > { %10461 = vmatprep.subr.mxu0 %v12310_v25 }
 0xca6   : > { %10462 = vmatpush3.msra.mxu0 %v12310_v25 }
 0xca7   : > { %10463 = vmatprep.subr.mxu0 %v12316_v40 }
 0xca8   : > { %10464 = vmatpush3.msra.mxu0 %v12316_v40 }
 0xca9   : > { %10465 = vmatprep.subr.mxu0 %v12322_v63 }
 0xcaa   : > { %10466 = vmatpush3.msra.mxu0 %v12322_v63 }
 0xcab   : > { %10468 = vmatmul.mubr.msk.f32.vlgmr.msra.gmra.mxu0 %vm3532_vm5, %v9140_v8 }
 0xd5b   : > { %v10450_v37 = vpop.f32.mrf.mxu0 }
 0xd5c   : > { %v4714_v9 = vadd.f32 %v10450_v37, %v4544_v3 }
 0xd5d   : > { %v4704_v11 = vpop.f32.mrf.mxu0 }
 0xd5e   : > { %v4713_v4 = vadd.f32 %v4704_v11, %v4543_v51  ;;  %v9160_v11 = vld [vmem:[%s13090_s11] ss:$0 sm:$0xff] }
 0xd6b   : > { %v10469_v2 = vpop.f32.mrf.mxu0 }
 0xd6d   : > { %v4790_v15 = vpop.f32.mrf.mxu0 }
 0xd6e   : > { %10474 = vmatprep.mubr.msk.f32.mxu1 %vm3117_vm3, %v4790_v15  ;;  %v9161_v15 = vld [vmem:[%s13091_s12] ss:$0 sm:$0xff] }
 0xd6f   : > { %10475 = vmatmul.mubr.msk.f32.vlgmr.msra.gmra.mxu1 %vm3117_vm3, %v10469_v2 }
 0xd70   : > { %10478 = vmatpush3.msra.mxu1 %v12284_v32  ;;  %10493 = vmatprep.mubr.msk.f32.mxu1 %vm3532_vm5, %v9147_v17  ;;  %v9148_v32 = vld [vmem:[%s13087_s8 + $0x88] sm:$0xff] }
 0xd71   : > { %10479 = vmatprep.subr.mxu1 %v12286_v44 }
 0xd72   : > { %10480 = vmatpush3.msra.mxu1 %v12286_v44  ;;  %v9152_v44 = vld [vmem:[%s13088_s9 + $0x88] sm:$0xff] }
 0xd73   : > { %10481 = vmatprep.subr.mxu1 %v12292_v13  ;;  %10496 = vmatprep.subr.mxu0 %v9152_v44 }
 0xd74   : > { %10482 = vmatpush3.msra.mxu1 %v12292_v13  ;;  %10497 = vmatpush3.msra.mxu0 %v9152_v44  ;;  %v9151_v13 = vld [vmem:[%s13088_s9 + $0x80] sm:$0xff] }
 0xd75   : > { %10483 = vmatprep.subr.mxu1 %v12298_v36  ;;  %10498 = vmatprep.subr.mxu0 %v9151_v13 }
 0xd76   : > { %10484 = vmatpush3.msra.mxu1 %v12298_v36  ;;  %10499 = vmatpush3.msra.mxu0 %v9151_v13 }
 0xd77   : > { %10485 = vmatprep.subr.mxu1 %v12304_v7  ;;  %10503 = vmatprep.subr.mxu0 %v10870_v49 }
 0xd78   : > { %10486 = vmatpush3.msra.mxu1 %v12304_v7 }
 0xd79   : > { %10487 = vmatprep.subr.mxu1 %v12310_v25 }
 0xd7a   : > { %10488 = vmatpush3.msra.mxu1 %v12310_v25 }
 0xd7b   : > { %10489 = vmatprep.subr.mxu1 %v12316_v40 }
 0xd7c   : > { %10490 = vmatpush3.msra.mxu1 %v12316_v40 }
 0xd7d   : > { %10491 = vmatprep.subr.mxu1 %v12322_v63 }
 0xd7e   : > { %10492 = vmatpush3.msra.mxu1 %v12322_v63 }
 0xd7f   : > { %10494 = vmatmul.mubr.msk.f32.vlgmr.msra.gmra.mxu1 %vm3532_vm5, %v9148_v32  ;;  %10522 = vmatprep.subr.mxu1 %v10870_v49 }
 0xd80   : > { %10523 = vmatpush3.msra.mxu1 %v12249_v41  ;;  %10524 = vmatprep.mubr.msk.f32.mxu1 %vm10871_vm2, %v10870_v49 }
 0xd81   : > { %10534 = vmatprep.subr.mxu1 %v10870_v49 }
 0xe2f   : > { %v10476_v36 = vpop.f32.mrf.mxu1 }
 0xe30   : > { %v4884_v7 = vadd.f32 %v10476_v36, %v4714_v9 }
 0xe31   : > { %v4874_v25 = vpop.f32.mrf.mxu1 }
 0xe32   : > { %v4883_v40 = vadd.f32 %v4874_v25, %v4713_v4  ;;  %v9163_v25 = vld [vmem:[%s13092_s13 + $0x4] sm:$0xf] }
 0xe3f   : > { %v10495_v63 = vpop.f32.mrf.mxu1 }
 0xe41   : > { %v4960_v52 = vpop.f32.mrf.mxu1 }
 0xe42   : > { %10500 = vmatprep.mubr.msk.f32.mxu0 %vm3117_vm3, %v4960_v52  ;;  %v9165_v52 = vld [vmem:[%s13093_s14 + $0x10] sm:$0xff] }
 0xe43   : > { %10501 = vmatmul.mubr.msk.f32.vlgmr.msra.gmra.mxu0 %vm3117_vm3, %v10495_v63  ;;  %v9166_v63 = vld [vmem:[%s13093_s14 + $0x18] sm:$0xff] }
 0xe44   : > { %10504 = vmatpush3.msra.mxu0 %v12150_v54  ;;  %10507 = vmatprep.mubr.msk.f32.mxu0 %vm10871_vm2, %v10870_v49 }
 0xe45   : > { %10505 = vmatprep.subr.mxu0 %v10870_v49 }
 0xe46   : > { %10506 = vmatpush3.msra.mxu0 %v12157_v59 }
 0xe47   : > { %10510 = vmatprep.subr.mxu0 %v10870_v49 }
 0xf03   : > { %v10502_v18 = vpop.f32.mrf.mxu0 }
 0xf04   : > { %v5054_v24 = vadd.f32 %v10502_v18, %v4884_v7  ;;  %v5490_v18 = vld [vmem:[%s13093_s14 + $0x8] sm:$0xff] }
 0xf05   : > { %v5044_v26 = vpop.f32.mrf.mxu0 }
 0xf06   : > { %v5063_v28 = vadd.f32 %v9155_v23, %v5054_v24  ;;  %v5053_v1 = vadd.f32 %v5044_v26, %v4883_v40  ;;  %v5415_v40 = vld [vmem:[%s13092_s13] sm:$0xf] }
 0xf08   : > { %v5074_v60 = vmul.f32 %v5063_v28, %v5063_v28  ;;  %v5062_v54 = vadd.f32 %v9155_v23, %v5053_v1  ;;  %v5065_v21 = vsel %vm3117_vm3, %v5063_v28, 0.0  ;;  %v5489_v23 = vld [vmem:[%s13093_s14] sm:$0xff] }
 0xf0a   : > { %v5064_v10 = vsel %vm3117_vm3, %v5062_v54, 0.0  ;;  %v5073_v12 = vmul.f32 %v5062_v54, %v5062_v54  ;;  %v5076_v59 = vsel %vm3117_vm3, %v5074_v60, 0.0 }
 0xf0b   : > { %v5066_v61 = vadd.f32 %v5065_v21, %v5064_v10  ;;  %v9179_v21 = vld [vmem:[%s13092_s13 + $0x10] sm:$0xf]  ;;  %v9184_v10 = vld [vmem:[%s13092_s13 + $0x14] sm:$0xf] }
 0xf0c   : > { %v5075_v14 = vsel %vm3117_vm3, %v5073_v12, 0.0  ;;  %v9189_v12 = vld [vmem:[%s13092_s13 + $0x18] sm:$0xf] }
 0xf0d   : > { %v5067_v16 = vrot.slane %v5066_v61, 4  ;;  %v5077_v19 = vadd.f32 %v5076_v59, %v5075_v14  ;;  %v9199_v59 = vld [vmem:[%s13092_s13 + $0x20] sm:$0xf]  ;;  %v9172_v14 = vld [vmem:[%s13093_s14 + $0x28] sm:$0xff] }
 0xf0f   : > { %v5068_v22 = vadd.f32 %v5067_v16, %v5066_v61  ;;  %v5078_v38 = vrot.slane %v5077_v19, 4  ;;  %v9194_v61 = vld [vmem:[%s13092_s13 + $0x1c] sm:$0xf]  ;;  %v9171_v16 = vld [vmem:[%s13093_s14 + $0x20] sm:$0xff] }
 0xf11   : > { %v5069_v29 = vrot.slane %v5068_v22, 2  ;;  %v5079_v0 = vadd.f32 %v5078_v38, %v5077_v19 }
 0xf13   : > { %v5070_v27 = vadd.f32 %v5069_v29, %v5068_v22  ;;  %v5080_v31 = vrot.slane %v5079_v0, 2 }
 0xf15   : > { %v5071_v39 = vrot.slane %v5070_v27, 1  ;;  %v5081_v56 = vadd.f32 %v5080_v31, %v5079_v0 }
 0xf17   : > { %v5072_v6 = vadd.f32 %v5071_v39, %v5070_v27  ;;  %v5082_v42 = vrot.slane %v5081_v56, 1  ;;  %v9177_v27 = vld [vmem:[%s13093_s14 + $0x38] sm:$0xff]  ;;  %v9176_v39 = vld [vmem:[%s13093_s14 + $0x30] sm:$0xff] }
 0xf19   : > { %10508 = vmatmul.mubr.msk.f32.vlgmr.msra.gmra.mxu0 %vm3117_vm3, %v5072_v6  ;;  %v5083_v20 = vadd.f32 %v5082_v42, %v5081_v56  ;;  %v9182_v6 = vld [vmem:[%s13093_s14 + $0x48] sm:$0xff] }
 0xf1a   : > { %10511 = vmatpush3.msra.mxu0 %v12603_v62  ;;  %10514 = vmatprep.mubr.msk.f32.mxu0 %vm10871_vm2, %v10870_v49 }
 0xf1b   : > { %10512 = vmatprep.subr.mxu0 %v10870_v49 }
 0xf1c   : > { %10513 = vmatpush3.msra.mxu0 %v12612_v50 }
 0xf1d   : > { %10515 = vmatmul.mubr.msk.f32.vlgmr.msra.gmra.mxu0 %vm3117_vm3, %v5083_v20  ;;  %10517 = vmatprep.subr.mxu0 %v10870_v49  ;;  %v9181_v20 = vld [vmem:[%s13093_s14 + $0x40] sm:$0xff] }
 0xf1e   : > { %10518 = vmatpush3.msra.mxu0 %v12249_v41  ;;  %10519 = vmatprep.mubr.msk.f32.mxu0 %vm10871_vm2, %v10870_v49 }
 0xf1f   : > { %10527 = vmatprep.subr.mxu0 %v10870_v49 }
 0xfd9   : > { %v5153_v30 = vpop.f32.mrf.mxu0 }
 0xfda   : > { %v5158_v55 = vmul.f32 0.03125, %v5153_v30 }
 0xfdb   : > { %v10509_v43 = vpop.f32.mrf.mxu0 }
 0xfdc   : > { %10520 = vmatmul.mubr.msk.f32.vlgmr.msra.gmra.mxu0 %vm3320_vm4, %v5158_v55  ;;  %v5233_v46 = vmul.f32 %v5158_v55, %v5158_v55  ;;  %v9187_v55 = vld [vmem:[%s13093_s14 + $0x58] sm:$0xff] }
 0xfdd   : > { %v5228_v57 = vpop.f32.mrf.mxu0  ;;  %10531 = vmatprep.mubr.msk.f32.mxu0 %vm10871_vm2, %v10870_v49 }
 0xfde   : > { %v5232_v33 = vmul.f32 0.03125, %v5228_v57  ;;  %v9186_v57 = vld [vmem:[%s13093_s14 + $0x50] sm:$0xff] }
 0xfdf   : > { %v10516_v45 = vpop.f32.mrf.mxu0 }
 0xfe0   : > { %v5234_v35 = vsub.f32 %v5232_v33, %v5233_v46  ;;  %v9192_v33 = vld [vmem:[%s13093_s14 + $0x68] sm:$0xff] }
 0xfe2   : > { %v5235_v48 = vmax.f32 %v5234_v35, 0.0  ;;  %v9191_v35 = vld [vmem:[%s13093_s14 + $0x60] sm:$0xff] }
 0xfe4   : > { %10525 = vmatmul.mubr.msk.f32.vlgmr.msra.gmra.mxu1 %vm3320_vm4, %v5235_v48 }
 0xfe5   : > { %10538 = vmatprep.mubr.msk.f32.mxu1 %vm10871_vm2, %v10870_v49 }
0x109c   : > { %v5305_v41 = vpop.f32.mrf.mxu0 }
0x109d   : > { %v5386_v34 = vrot.slane %v5305_v41, %v12266_v47  ;;  %v9197_v41 = vld [vmem:[%s13093_s14 + $0x78] sm:$0xff] }
0x109e   : > { %v10521_v3 = vpop.f32.mrf.mxu0 }
0x109f   : > { %v5387_v8 = vsub.f32 %v5062_v54, %v5386_v34  ;;  %v5388_v37 = vsub.f32 %v5063_v28, %v5386_v34  ;;  %v9169_v28 = vld [vmem:[%s13092_s13 + $0x8] sm:$0xf]  ;;  %v9174_v54 = vld [vmem:[%s13092_s13 + $0xc] sm:$0xf] }
0x10a4   : > { %v5378_v58 = vpop.f32.mrf.mxu1 }
0x10a5   : > { %v5379_v51 = vadd.f32 1e-05, %v5378_v58  ;;  %v9196_v58 = vld [vmem:[%s13093_s14 + $0x70] sm:$0xff] }
0x10a6   : > { %v10526_v53 = vpop.f32.mrf.mxu1 }
0x10a7   : > { %10821 = vrsqrt.f32 %v5379_v51  ;;  %v9202_v53 = vld [vmem:[%s13093_s14 + $0x88] sm:$0xff] }
0x10b4   : > { %v10822_v5 = vpop.eup %10821 }
0x10b5   : > { %v5392_v9 = vrot.slane %v10822_v5, %v12266_v47  ;;  %v9201_v5 = vld [vmem:[%s13093_s14 + $0x80] sm:$0xff] }
0x10b7   : > { %v5393_v4 = vmul.f32 %v5392_v9, %v5387_v8  ;;  %v5394_v2 = vmul.f32 %v5392_v9, %v5388_v37 }
0x10b9   : > { %v5402_v17 = vmul.f32 %v9160_v11, %v5393_v4  ;;  %v5403_v32 = vmul.f32 %v9160_v11, %v5394_v2 }
0x10bb   : > { %v5411_v44 = vadd.f32 %v9161_v15, %v5402_v17  ;;  %v5412_v13 = vadd.f32 %v9161_v15, %v5403_v32 }
0x10bd   : > { %v12635_v36 = vmax.f32 %v5412_v13, 0.0  ;;  %v12637_v7 = vmax.f32 %v5411_v44, 0.0 }
0x10bf   : > { %10528 = vmatpush3.msra.mxu0 %v12635_v36  ;;  %10535 = vmatpush3.msra.mxu1 %v12635_v36 }
0x10c0   : > { %10529 = vmatprep.subr.mxu0 %v10870_v49  ;;  %10536 = vmatprep.subr.mxu1 %v10870_v49 }
0x10c1   : > { %10530 = vmatpush3.msra.mxu0 %v12637_v7  ;;  %10537 = vmatpush3.msra.mxu1 %v12637_v7 }
0x10c2   : > { %10539 = vmatmul.mubr.msk.f32.vlgmr.msra.gmra.mxu1 %vm3117_vm3, %v9163_v25  ;;  %10532 = vmatmul.mubr.msk.f32.vlgmr.msra.gmra.mxu0 %vm3117_vm3, %v5415_v40 }
0x10c3   : > { %10541 = vmatprep.subr.mxu0 %v10870_v49  ;;  %10545 = vmatprep.mubr.msk.f32.mxu0 %vm10871_vm2, %v10870_v49 }
0x10c4   : > { %10542 = vmatpush3.msra.mxu0 %v9166_v63  ;;  %10548 = vmatprep.subr.mxu1 %v10870_v49 }
0x10c5   : > { %10543 = vmatprep.subr.mxu0 %v10870_v49  ;;  %10552 = vmatprep.mubr.msk.f32.mxu1 %vm10871_vm2, %v10870_v49 }
0x10c6   : > { %10544 = vmatpush3.msra.mxu0 %v9165_v52  ;;  %10549 = vmatpush3.msra.mxu1 %v5490_v18 }
0x10c7   : > { %10555 = vmatprep.subr.mxu0 %v10870_v49  ;;  %10550 = vmatprep.subr.mxu1 %v10870_v49 }
0x10c8   : > { %10551 = vmatpush3.msra.mxu1 %v5489_v23 }
0x10c9   : > { %10562 = vmatprep.subr.mxu1 %v10870_v49 }
0x1182   : > { %v5562_v24 = vpop.f32.mrf.mxu1  ;;  %v5485_v26 = vpop.f32.mrf.mxu0 }
0x1183   : > { %10546 = vmatmul.mubr.msk.f32.vlgmr.msra.gmra.mxu0 %vm3117_vm3, %v5562_v24  ;;  %10553 = vmatmul.mubr.msk.f32.vlgmr.msra.gmra.mxu1 %vm3117_vm3, %v5485_v26 }
0x1184   : > { %10556 = vmatpush3.msra.mxu0 %v12635_v36  ;;  %10559 = vmatprep.mubr.msk.f32.mxu0 %vm10871_vm2, %v10870_v49  ;;  %v10540_v1 = vpop.f32.mrf.mxu1  ;;  %v10533_v60 = vpop.f32.mrf.mxu0 }
0x1185   : > { %10557 = vmatprep.subr.mxu0 %v10870_v49  ;;  %10566 = vmatprep.mubr.msk.f32.mxu1 %vm10871_vm2, %v10870_v49  ;;  %v9204_v1 = vld [vmem:[%s13094_s15] ss:$0 sm:$0xff] }
0x1186   : > { %10558 = vmatpush3.msra.mxu0 %v12637_v7  ;;  %10563 = vmatpush3.msra.mxu1 %v9172_v14 }
0x1187   : > { %10569 = vmatprep.subr.mxu0 %v10870_v49  ;;  %10560 = vmatmul.mubr.msk.f32.vlgmr.msra.gmra.mxu0 %vm3117_vm3, %v9169_v28 }
0x1188   : > { %10570 = vmatpush3.msra.mxu0 %v12635_v36  ;;  %10573 = vmatprep.mubr.msk.f32.mxu0 %vm10871_vm2, %v10870_v49 }
0x1189   : > { %10571 = vmatprep.subr.mxu0 %v10870_v49  ;;  %10564 = vmatprep.subr.mxu1 %v10870_v49 }
0x118a   : > { %10572 = vmatpush3.msra.mxu0 %v12637_v7  ;;  %10565 = vmatpush3.msra.mxu1 %v9171_v16 }
0x118b   : > { %10583 = vmatprep.subr.mxu0 %v10870_v49  ;;  %10574 = vmatmul.mubr.msk.f32.vlgmr.msra.gmra.mxu0 %vm3117_vm3, %v9174_v54 }
0x118c   : > { %10584 = vmatpush3.msra.mxu0 %v12635_v36  ;;  %10587 = vmatprep.mubr.msk.f32.mxu0 %vm10871_vm2, %v10870_v49 }
0x118d   : > { %10585 = vmatprep.subr.mxu0 %v10870_v49  ;;  %10576 = vmatprep.subr.mxu1 %v10870_v49 }
0x118e   : > { %10586 = vmatpush3.msra.mxu0 %v12637_v7 }
0x118f   : > { %10597 = vmatprep.subr.mxu0 %v10870_v49  ;;  %10588 = vmatmul.mubr.msk.f32.vlgmr.msra.gmra.mxu0 %vm3117_vm3, %v9179_v21 }
0x1190   : > { %10598 = vmatpush3.msra.mxu0 %v12635_v36  ;;  %10601 = vmatprep.mubr.msk.f32.mxu0 %vm10871_vm2, %v10870_v49 }
0x1191   : > { %10599 = vmatprep.subr.mxu0 %v10870_v49 }
0x1192   : > { %10600 = vmatpush3.msra.mxu0 %v12637_v7 }
0x1193   : > { %10611 = vmatprep.subr.mxu0 %v10870_v49  ;;  %10602 = vmatmul.mubr.msk.f32.vlgmr.msra.gmra.mxu0 %vm3117_vm3, %v9184_v10 }
0x1194   : > { %10612 = vmatpush3.msra.mxu0 %v12635_v36  ;;  %10615 = vmatprep.mubr.msk.f32.mxu0 %vm10871_vm2, %v10870_v49 }
0x1195   : > { %10613 = vmatprep.subr.mxu0 %v10870_v49 }
0x1196   : > { %10614 = vmatpush3.msra.mxu0 %v12637_v7 }
0x1197   : > { %10625 = vmatprep.subr.mxu0 %v10870_v49  ;;  %10616 = vmatmul.mubr.msk.f32.vlgmr.msra.gmra.mxu0 %vm3117_vm3, %v9189_v12 }
0x1198   : > { %10626 = vmatpush3.msra.mxu0 %v12635_v36  ;;  %10629 = vmatprep.mubr.msk.f32.mxu0 %vm10871_vm2, %v10870_v49 }
0x1199   : > { %10627 = vmatprep.subr.mxu0 %v10870_v49 }
0x119a   : > { %10628 = vmatpush3.msra.mxu0 %v12637_v7 }
0x119b   : > { %10639 = vmatprep.subr.mxu0 %v10870_v49  ;;  %10630 = vmatmul.mubr.msk.f32.vlgmr.msra.gmra.mxu0 %vm3117_vm3, %v9194_v61 }
0x119c   : > { %10640 = vmatpush3.msra.mxu0 %v12635_v36  ;;  %10643 = vmatprep.mubr.msk.f32.mxu0 %vm10871_vm2, %v10870_v49 }
0x119d   : > { %10641 = vmatprep.subr.mxu0 %v10870_v49 }
0x119e   : > { %10642 = vmatpush3.msra.mxu0 %v12637_v7 }
0x119f   : > { %10644 = vmatmul.mubr.msk.f32.vlgmr.msra.gmra.mxu0 %vm3117_vm3, %v9199_v59  ;;  %10653 = vmatprep.subr.mxu0 %v10870_v49 }
0x11a0   : > { %10654 = vmatpush3.msra.mxu0 %v12603_v62  ;;  %10657 = vmatprep.mubr.msk.f32.mxu0 %vm10871_vm2, %v10870_v49 }
0x11a1   : > { %10655 = vmatprep.subr.mxu0 %v10870_v49 }
0x11a2   : > { %10656 = vmatpush3.msra.mxu0 %v12612_v50 }
0x11a3   : > { %10667 = vmatprep.subr.mxu0 %v10870_v49 }
0x1243   : > { %v5638_v19 = vpop.f32.mrf.mxu0  ;;  %v5711_v22 = vpop.f32.mrf.mxu1 }
0x1244   : > { %v12763_v38 = vadd.f32 %v5711_v22, %v5638_v19 }
0x1245   : > { %v10547_v29 = vpop.f32.mrf.mxu0  ;;  %v10554_v0 = vpop.f32.mrf.mxu1 }
0x1247   : > { %v5786_v31 = vpop.f32.mrf.mxu0 }
0x1248   : > { %10567 = vmatmul.mubr.msk.f32.vlgmr.msra.gmra.mxu1 %vm3117_vm3, %v5786_v31 }
0x1249   : > { %v10561_v56 = vpop.f32.mrf.mxu0  ;;  %10577 = vmatpush3.msra.mxu1 %v9177_v27  ;;  %10580 = vmatprep.mubr.msk.f32.mxu1 %vm10871_vm2, %v10870_v49 }
0x124a   : > { %10578 = vmatprep.subr.mxu1 %v10870_v49 }
0x124b   : > { %v5938_v42 = vpop.f32.mrf.mxu0  ;;  %10579 = vmatpush3.msra.mxu1 %v9176_v39 }
0x124c   : > { %10581 = vmatmul.mubr.msk.f32.vlgmr.msra.gmra.mxu1 %vm3117_vm3, %v5938_v42  ;;  %10590 = vmatprep.subr.mxu1 %v10870_v49 }
0x124d   : > { %v10575_v30 = vpop.f32.mrf.mxu0  ;;  %10591 = vmatpush3.msra.mxu1 %v9182_v6  ;;  %10594 = vmatprep.mubr.msk.f32.mxu1 %vm10871_vm2, %v10870_v49  ;;  %v12846_v6 = vld [vmem:[%s13132_s0] sm:$0xff] }
0x124e   : > { %10592 = vmatprep.subr.mxu1 %v10870_v49 }
0x124f   : > { %v6090_v43 = vpop.f32.mrf.mxu0  ;;  %10593 = vmatpush3.msra.mxu1 %v9181_v20 }
0x1250   : > { %10595 = vmatmul.mubr.msk.f32.vlgmr.msra.gmra.mxu1 %vm3117_vm3, %v6090_v43  ;;  %10604 = vmatprep.subr.mxu1 %v10870_v49 }
0x1251   : > { %v10589_v46 = vpop.f32.mrf.mxu0  ;;  %10605 = vmatpush3.msra.mxu1 %v9187_v55  ;;  %10608 = vmatprep.mubr.msk.f32.mxu1 %vm10871_vm2, %v10870_v49 }
0x1252   : > { %10606 = vmatprep.subr.mxu1 %v10870_v49 }
0x1253   : > { %v6242_v45 = vpop.f32.mrf.mxu0  ;;  %10607 = vmatpush3.msra.mxu1 %v9186_v57 }
0x1254   : > { %10609 = vmatmul.mubr.msk.f32.vlgmr.msra.gmra.mxu1 %vm3117_vm3, %v6242_v45  ;;  %10618 = vmatprep.subr.mxu1 %v10870_v49 }
0x1255   : > { %v10603_v48 = vpop.f32.mrf.mxu0  ;;  %10619 = vmatpush3.msra.mxu1 %v9192_v33  ;;  %10622 = vmatprep.mubr.msk.f32.mxu1 %vm10871_vm2, %v10870_v49 }
0x1256   : > { %10620 = vmatprep.subr.mxu1 %v10870_v49 }
0x1257   : > { %v6394_v3 = vpop.f32.mrf.mxu0  ;;  %10621 = vmatpush3.msra.mxu1 %v9191_v35 }
0x1258   : > { %10623 = vmatmul.mubr.msk.f32.vlgmr.msra.gmra.mxu1 %vm3117_vm3, %v6394_v3  ;;  %10632 = vmatprep.subr.mxu1 %v10870_v49 }
0x1259   : > { %v10617_v51 = vpop.f32.mrf.mxu0  ;;  %10633 = vmatpush3.msra.mxu1 %v9197_v41  ;;  %10636 = vmatprep.mubr.msk.f32.mxu1 %vm10871_vm2, %v10870_v49 }
0x125a   : > { %10634 = vmatprep.subr.mxu1 %v10870_v49 }
0x125b   : > { %v6546_v34 = vpop.f32.mrf.mxu0  ;;  %10635 = vmatpush3.msra.mxu1 %v9196_v58 }
0x125c   : > { %10637 = vmatmul.mubr.msk.f32.vlgmr.msra.gmra.mxu1 %vm3117_vm3, %v6546_v34  ;;  %10646 = vmatprep.subr.mxu1 %v10870_v49 }
0x125d   : > { %v10631_v8 = vpop.f32.mrf.mxu0  ;;  %10647 = vmatpush3.msra.mxu1 %v9202_v53  ;;  %10650 = vmatprep.mubr.msk.f32.mxu1 %vm10871_vm2, %v10870_v49 }
0x125e   : > { %10648 = vmatprep.subr.mxu1 %v10870_v49  ;;  %v9209_v8 = vld [vmem:[%s13095_s16] ss:$0 sm:$0xff] }
0x125f   : > { %v6698_v37 = vpop.f32.mrf.mxu0  ;;  %10649 = vmatpush3.msra.mxu1 %v9201_v5 }
0x1260   : > { %10651 = vmatmul.mubr.msk.f32.vlgmr.msra.gmra.mxu1 %vm3117_vm3, %v6698_v37  ;;  %10660 = vmatprep.subr.mxu1 %v10870_v49 }
0x1261   : > { %v10645_v9 = vpop.f32.mrf.mxu0  ;;  %10661 = vmatpush3.msra.mxu1 %v12603_v62  ;;  %10664 = vmatprep.mubr.msk.f32.mxu1 %vm10871_vm2, %v10870_v49 }
0x1262   : > { %10662 = vmatprep.subr.mxu1 %v10870_v49  ;;  %v9210_v9 = vld [vmem:[%s13096_s17] ss:$0 sm:$0xff] }
0x1263   : > { %10663 = vmatpush3.msra.mxu1 %v12612_v50 }
0x1264   : > { %10672 = vmatprep.subr.mxu1 %v10870_v49 }
0x1308   : > { %v5862_v11 = vpop.f32.mrf.mxu1 }
0x1309   : > { %v5866_v13 = vadd.f32 %v5862_v11, %v12763_v38 }
0x130a   : > { %v10568_v4 = vpop.f32.mrf.mxu1 }
0x130c   : > { %v6014_v2 = vpop.f32.mrf.mxu1 }
0x130d   : > { %v6018_v7 = vadd.f32 %v6014_v2, %v5866_v13  ;;  %v7206_v13 = vld [vmem:[%s13098_s19] sm:$0xff] }
0x130e   : > { %v10582_v15 = vpop.f32.mrf.mxu1 }
0x130f   : > { %v9213_v15 = vld [vmem:[%s13097_s18 + $0x1] sm:$0x1] }
0x1310   : > { %v6166_v17 = vpop.f32.mrf.mxu1 }
0x1311   : > { %v6170_v40 = vadd.f32 %v6166_v17, %v6018_v7  ;;  %v9217_v17 = vld [vmem:[%s13098_s19 + $0x18] sm:$0xff] }
0x1312   : > { %v10596_v32 = vpop.f32.mrf.mxu1 }
0x1313   : > { %v9216_v32 = vld [vmem:[%s13098_s19 + $0x10] sm:$0xff] }
0x1314   : > { %v6318_v44 = vpop.f32.mrf.mxu1 }
0x1315   : > { %v6322_v52 = vadd.f32 %v6318_v44, %v6170_v40  ;;  %v7207_v44 = vld [vmem:[%s13098_s19 + $0x8] sm:$0xff] }
0x1316   : > { %v10610_v36 = vpop.f32.mrf.mxu1 }
0x1318   : > { %v6470_v25 = vpop.f32.mrf.mxu1 }
0x1319   : > { %v6474_v23 = vadd.f32 %v6470_v25, %v6322_v52  ;;  %v9220_v25 = vld [vmem:[%s13097_s18 + $0x2] sm:$0x1]  ;;  %v9226_v52 = vld [vmem:[%s13097_s18 + $0x3] sm:$0x1] }
0x131a   : > { %v10624_v63 = vpop.f32.mrf.mxu1 }
0x131c   : > { %v6622_v18 = vpop.f32.mrf.mxu1 }
0x131d   : > { %v6626_v26 = vadd.f32 %v6622_v18, %v6474_v23  ;;  %v9232_v18 = vld [vmem:[%s13097_s18 + $0x4] sm:$0x1]  ;;  %v9238_v23 = vld [vmem:[%s13097_s18 + $0x5] sm:$0x1] }
0x131e   : > { %v10638_v24 = vpop.f32.mrf.mxu1 }
0x131f   : > { %v9244_v24 = vld [vmem:[%s13097_s18 + $0x6] sm:$0x1] }
0x1320   : > { %v6774_v28 = vpop.f32.mrf.mxu1 }
0x1321   : > { %v6778_v60 = vadd.f32 %v6774_v28, %v6626_v26  ;;  %v9250_v26 = vld [vmem:[%s13097_s18 + $0x7] sm:$0x1]  ;;  %v9256_v28 = vld [vmem:[%s13097_s18 + $0x8] sm:$0x1] }
0x1322   : > { %v10652_v54 = vpop.f32.mrf.mxu1 }
0x1323   : > { %v6786_v21 = vadd.f32 %v9204_v1, %v6778_v60  ;;  %v9224_v1 = vld [vmem:[%s13098_s19 + $0x28] sm:$0xff]  ;;  %v9223_v60 = vld [vmem:[%s13098_s19 + $0x20] sm:$0xff] }
0x1325   : > { %v6788_v10 = vsel %vm6787_vm6, %v6786_v21, 0.0  ;;  %v6795_v12 = vmul.f32 %v6786_v21, %v6786_v21 }
0x1326   : > { %v6789_v61 = vrot.slane %v6788_v10, 4 }
0x1327   : > { %v6796_v59 = vsel %vm6787_vm6, %v6795_v12, 0.0 }
0x1328   : > { %v6790_v14 = vadd.f32 %v6789_v61, %v6788_v10  ;;  %v6797_v16 = vrot.slane %v6796_v59, 4 }
0x132a   : > { %v6791_v19 = vrot.slane %v6790_v14, 2  ;;  %v6798_v22 = vadd.f32 %v6797_v16, %v6796_v59  ;;  %v9230_v59 = vld [vmem:[%s13098_s19 + $0x38] sm:$0xff]  ;;  %v9229_v16 = vld [vmem:[%s13098_s19 + $0x30] sm:$0xff] }
0x132c   : > { %v6792_v38 = vadd.f32 %v6791_v19, %v6790_v14  ;;  %v6799_v29 = vrot.slane %v6798_v22, 2 }
0x132e   : > { %v6793_v0 = vrot.slane %v6792_v38, 1  ;;  %v6800_v27 = vadd.f32 %v6799_v29, %v6798_v22  ;;  %v9236_v22 = vld [vmem:[%s13098_s19 + $0x48] sm:$0xff]  ;;  %v9235_v29 = vld [vmem:[%s13098_s19 + $0x40] sm:$0xff] }
0x1330   : > { %v6794_v31 = vadd.f32 %v6793_v0, %v6792_v38  ;;  %v6801_v39 = vrot.slane %v6800_v27, 1 }
0x1332   : > { %v6802_v56 = vadd.f32 %v6801_v39, %v6800_v27  ;;  %10658 = vmatmul.mubr.msk.f32.vlgmr.msra.gmra.mxu0 %vm3117_vm3, %v6794_v31  ;;  %v9242_v27 = vld [vmem:[%s13098_s19 + $0x58] sm:$0xff]  ;;  %v9241_v39 = vld [vmem:[%s13098_s19 + $0x50] sm:$0xff] }
0x1333   : > { %10668 = vmatpush3.msra.mxu0 %v12846_v6  ;;  %10669 = vmatprep.mubr.msk.f32.mxu0 %vm10871_vm2, %v10870_v49 }
0x1334   : > { %10665 = vmatmul.mubr.msk.f32.vlgmr.msra.gmra.mxu1 %vm3117_vm3, %v6802_v56  ;;  %10677 = vmatprep.subr.mxu0 %v10870_v49 }
0x1335   : > { %10673 = vmatpush3.msra.mxu1 %v12846_v6  ;;  %10674 = vmatprep.mubr.msk.f32.mxu1 %vm10871_vm2, %v10870_v49 }
0x1336   : > { %10682 = vmatprep.subr.mxu1 %v10870_v49 }
0x13f2   : > { %v6872_v42 = vpop.f32.mrf.mxu0 }
0x13f3   : > { %v6877_v20 = vmul.f32 0.125, %v6872_v42  ;;  %v9248_v42 = vld [vmem:[%s13098_s19 + $0x68] sm:$0xff] }
0x13f4   : > { %v10659_v30 = vpop.f32.mrf.mxu0  ;;  %v6947_v55 = vpop.f32.mrf.mxu1 }
0x13f5   : > { %v6952_v43 = vmul.f32 %v6877_v20, %v6877_v20  ;;  %v6951_v57 = vmul.f32 0.125, %v6947_v55  ;;  %10670 = vmatmul.mubr.msk.f32.vlgmr.msra.gmra.mxu0 %vm3320_vm4, %v6877_v20  ;;  %v9247_v30 = vld [vmem:[%s13098_s19 + $0x60] sm:$0xff] }
0x13f6   : > { %v10666_v46 = vpop.f32.mrf.mxu1  ;;  %10679 = vmatprep.mubr.msk.f32.mxu0 %vm10871_vm2, %v10870_v49 }
0x13f7   : > { %v6953_v33 = vsub.f32 %v6951_v57, %v6952_v43  ;;  %v9254_v43 = vld [vmem:[%s13098_s19 + $0x78] sm:$0xff]  ;;  %v9253_v46 = vld [vmem:[%s13098_s19 + $0x70] sm:$0xff] }
0x13f9   : > { %v6954_v45 = vmax.f32 %v6953_v33, 0.0 }
0x13fb   : > { %10675 = vmatmul.mubr.msk.f32.vlgmr.msra.gmra.mxu1 %vm3320_vm4, %v6954_v45  ;;  %v9260_v45 = vld [vmem:[%s13098_s19 + $0x88] sm:$0xff] }
0x13fc   : > { %10684 = vmatprep.mubr.msk.f32.mxu1 %vm10871_vm2, %v10870_v49 }
0x14b5   : > { %v7024_v35 = vpop.f32.mrf.mxu0 }
0x14b6   : > { %v7105_v51 = vrot.slane %v7024_v35, %v12266_v47 }
0x14b7   : > { %v10671_v48 = vpop.f32.mrf.mxu0 }
0x14b8   : > { %v7106_v34 = vsub.f32 %v6786_v21, %v7105_v51  ;;  %v9259_v48 = vld [vmem:[%s13098_s19 + $0x80] sm:$0xff] }
0x14bb   : > { %v7097_v41 = vpop.f32.mrf.mxu1 }
0x14bc   : > { %v7098_v3 = vadd.f32 1e-05, %v7097_v41 }
0x14bd   : > { %v10676_v58 = vpop.f32.mrf.mxu1 }
0x14be   : > { %10823 = vrsqrt.f32 %v7098_v3 }
0x14cb   : > { %v10824_v53 = vpop.eup %10823 }
0x14cc   : > { %v7110_v5 = vrot.slane %v10824_v53, %v12266_v47  ;;  %v7129_v47 = vld [vmem:[%s13097_s18] sm:$0x1] }
0x14ce   : > { %v7111_v37 = vmul.f32 %v7110_v5, %v7106_v34 }
0x14d0   : > { %v7119_v11 = vmul.f32 %v9209_v8, %v7111_v37 }
0x14d2   : > { %v7127_v4 = vadd.f32 %v9210_v9, %v7119_v11 }
0x14d4   : > { %v7128_v2 = vmax.f32 %v7127_v4, 0.0 }
0x14d6   : > { %10678 = vmatpush3.msk.msra.mxu0 %vm1013_vm0, %v7128_v2  ;;  %10683 = vmatpush3.msk.msra.mxu1 %vm1013_vm0, %v7128_v2 }
0x14d7   : > { %10685 = vmatmul.mubr.msk.f32.vlgmr.msra.gmra.mxu1 %vm988_vm1, %v9213_v15  ;;  %10680 = vmatmul.mubr.msk.f32.vlgmr.msra.gmra.mxu0 %vm988_vm1, %v7129_v47 }
0x14d8   : > { %10687 = vmatprep.subr.mxu0 %v10870_v49  ;;  %10691 = vmatprep.mubr.msk.f32.mxu0 %vm10871_vm2, %v10870_v49 }
0x14d9   : > { %10688 = vmatpush3.msra.mxu0 %v9217_v17  ;;  %10694 = vmatprep.subr.mxu1 %v10870_v49 }
0x14da   : > { %10689 = vmatprep.subr.mxu0 %v10870_v49  ;;  %10698 = vmatprep.mubr.msk.f32.mxu1 %vm10871_vm2, %v10870_v49 }
0x14db   : > { %10690 = vmatpush3.msra.mxu0 %v9216_v32  ;;  %10695 = vmatpush3.msra.mxu1 %v7207_v44 }
0x14dc   : > { %10701 = vmatprep.subr.mxu0 %v10870_v49  ;;  %10696 = vmatprep.subr.mxu1 %v10870_v49 }
0x14dd   : > { %10697 = vmatpush3.msra.mxu1 %v7206_v13 }
0x14de   : > { %10706 = vmatprep.subr.mxu1 %v10870_v49 }
0x1597   : > { %v7279_v36 = vpop.f32.mrf.mxu1  ;;  %v7202_v7 = vpop.f32.mrf.mxu0 }
0x1598   : > { %10692 = vmatmul.mubr.msk.f32.vlgmr.msra.gmra.mxu0 %vm3117_vm3, %v7279_v36  ;;  %10699 = vmatmul.mubr.msk.f32.vlgmr.msra.gmra.mxu1 %vm3117_vm3, %v7202_v7  ;;  %v8496_v7 = vld [vmem:[%s13099_s20] sm:$0x1] }
0x1599   : > { %10702 = vmatpush3.msk.msra.mxu0 %vm1013_vm0, %v7128_v2  ;;  %10703 = vmatprep.mubr.msk.f32.mxu0 %vm10871_vm2, %v10870_v49  ;;  %v10686_v40 = vpop.f32.mrf.mxu1  ;;  %v10681_v63 = vpop.f32.mrf.mxu0 }
0x159a   : > { %10713 = vmatprep.subr.mxu0 %v10870_v49  ;;  %10710 = vmatprep.mubr.msk.f32.mxu1 %vm10871_vm2, %v10870_v49 }
0x159b   : > { %10707 = vmatpush3.msra.mxu1 %v9224_v1 }
0x159c   : > { %10704 = vmatmul.mubr.msk.f32.vlgmr.msra.gmra.mxu0 %vm988_vm1, %v9220_v25  ;;  %10708 = vmatprep.subr.mxu1 %v10870_v49 }
0x159d   : > { %10714 = vmatpush3.msk.msra.mxu0 %vm1013_vm0, %v7128_v2  ;;  %10715 = vmatprep.mubr.msk.f32.mxu0 %vm10871_vm2, %v10870_v49 }
0x159e   : > { %10725 = vmatprep.subr.mxu0 %v10870_v49  ;;  %10709 = vmatpush3.msra.mxu1 %v9223_v60 }
0x159f   : > { %10718 = vmatprep.subr.mxu1 %v10870_v49 }
0x15a0   : > { %10716 = vmatmul.mubr.msk.f32.vlgmr.msra.gmra.mxu0 %vm988_vm1, %v9226_v52 }
0x15a1   : > { %10726 = vmatpush3.msk.msra.mxu0 %vm1013_vm0, %v7128_v2  ;;  %10727 = vmatprep.mubr.msk.f32.mxu0 %vm10871_vm2, %v10870_v49 }
0x15a2   : > { %10737 = vmatprep.subr.mxu0 %v10870_v49 }
0x15a4   : > { %10728 = vmatmul.mubr.msk.f32.vlgmr.msra.gmra.mxu0 %vm988_vm1, %v9232_v18 }
0x15a5   : > { %10738 = vmatpush3.msk.msra.mxu0 %vm1013_vm0, %v7128_v2  ;;  %10739 = vmatprep.mubr.msk.f32.mxu0 %vm10871_vm2, %v10870_v49 }
0x15a6   : > { %10749 = vmatprep.subr.mxu0 %v10870_v49 }
0x15a8   : > { %10740 = vmatmul.mubr.msk.f32.vlgmr.msra.gmra.mxu0 %vm988_vm1, %v9238_v23 }
0x15a9   : > { %10750 = vmatpush3.msk.msra.mxu0 %vm1013_vm0, %v7128_v2  ;;  %10751 = vmatprep.mubr.msk.f32.mxu0 %vm10871_vm2, %v10870_v49 }
0x15aa   : > { %10761 = vmatprep.subr.mxu0 %v10870_v49 }
0x15ac   : > { %10752 = vmatmul.mubr.msk.f32.vlgmr.msra.gmra.mxu0 %vm988_vm1, %v9244_v24 }
0x15ad   : > { %10762 = vmatpush3.msk.msra.mxu0 %vm1013_vm0, %v7128_v2  ;;  %10763 = vmatprep.mubr.msk.f32.mxu0 %vm10871_vm2, %v10870_v49 }
0x15ae   : > { %10773 = vmatprep.subr.mxu0 %v10870_v49 }
0x15b0   : > { %10764 = vmatmul.mubr.msk.f32.vlgmr.msra.gmra.mxu0 %vm988_vm1, %v9250_v26 }
0x15b1   : > { %10774 = vmatpush3.msk.msra.mxu0 %vm1013_vm0, %v7128_v2  ;;  %10775 = vmatprep.mubr.msk.f32.mxu0 %vm10871_vm2, %v10870_v49 }
0x15b2   : > { %10785 = vmatprep.subr.mxu0 %v10870_v49 }
0x15b4   : > { %10776 = vmatmul.mubr.msk.f32.vlgmr.msra.gmra.mxu0 %vm988_vm1, %v9256_v28 }
0x15b5   : > { %10786 = vmatpush3.msra.mxu0 %v12603_v62  ;;  %10789 = vmatprep.mubr.msk.f32.mxu0 %vm10871_vm2, %v10870_v49 }
0x15b6   : > { %10787 = vmatprep.subr.mxu0 %v10870_v49 }
0x15b7   : > { %10788 = vmatpush3.msra.mxu0 %v12612_v50 }
0x15b8   : > { %10799 = vmatprep.subr.mxu0 %v10870_v49 }
0x1658   : > { %v7355_v54 = vpop.f32.mrf.mxu0  ;;  %v7428_v21 = vpop.f32.mrf.mxu1 }
0x1659   : > { %v12977_v10 = vadd.f32 %v7428_v21, %v7355_v54 }
0x165a   : > { %v10693_v12 = vpop.f32.mrf.mxu0  ;;  %v10700_v61 = vpop.f32.mrf.mxu1 }
0x165c   : > { %v7503_v14 = vpop.f32.mrf.mxu0 }
0x165d   : > { %10711 = vmatmul.mubr.msk.f32.vlgmr.msra.gmra.mxu1 %vm3117_vm3, %v7503_v14 }
0x165e   : > { %v10705_v19 = vpop.f32.mrf.mxu0  ;;  %10719 = vmatpush3.msra.mxu1 %v9230_v59  ;;  %10722 = vmatprep.mubr.msk.f32.mxu1 %vm10871_vm2, %v10870_v49 }
0x165f   : > { %10720 = vmatprep.subr.mxu1 %v10870_v49 }
0x1660   : > { %v7655_v38 = vpop.f32.mrf.mxu0  ;;  %10721 = vmatpush3.msra.mxu1 %v9229_v16  ;;  %v8802_v16 = vld [vmem:[%s13100_s21] sm:$0x1] }
0x1661   : > { %10723 = vmatmul.mubr.msk.f32.vlgmr.msra.gmra.mxu1 %vm3117_vm3, %v7655_v38  ;;  %10730 = vmatprep.subr.mxu1 %v10870_v49 }
0x1662   : > { %v10717_v0 = vpop.f32.mrf.mxu0  ;;  %10731 = vmatpush3.msra.mxu1 %v9236_v22  ;;  %10734 = vmatprep.mubr.msk.f32.mxu1 %vm10871_vm2, %v10870_v49  ;;  %v8804_v22 = vld [vmem:[%s13101_s22] sm:$0x1] }
0x1663   : > { %10732 = vmatprep.subr.mxu1 %v10870_v49 }
0x1664   : > { %v7807_v31 = vpop.f32.mrf.mxu0  ;;  %10733 = vmatpush3.msra.mxu1 %v9235_v29 }
0x1665   : > { %10735 = vmatmul.mubr.msk.f32.vlgmr.msra.gmra.mxu1 %vm3117_vm3, %v7807_v31  ;;  %10742 = vmatprep.subr.mxu1 %v10870_v49 }
0x1666   : > { %v10729_v56 = vpop.f32.mrf.mxu0  ;;  %10743 = vmatpush3.msra.mxu1 %v9242_v27  ;;  %10746 = vmatprep.mubr.msk.f32.mxu1 %vm10871_vm2, %v10870_v49 }
0x1667   : > { %10744 = vmatprep.subr.mxu1 %v10870_v49 }
0x1668   : > { %v7959_v20 = vpop.f32.mrf.mxu0  ;;  %10745 = vmatpush3.msra.mxu1 %v9241_v39 }
0x1669   : > { %10747 = vmatmul.mubr.msk.f32.vlgmr.msra.gmra.mxu1 %vm3117_vm3, %v7959_v20  ;;  %10754 = vmatprep.subr.mxu1 %v10870_v49 }
0x166a   : > { %v10741_v55 = vpop.f32.mrf.mxu0  ;;  %10755 = vmatpush3.msra.mxu1 %v9248_v42  ;;  %10758 = vmatprep.mubr.msk.f32.mxu1 %vm10871_vm2, %v10870_v49 }
0x166b   : > { %10756 = vmatprep.subr.mxu1 %v10870_v49 }
0x166c   : > { %v8111_v57 = vpop.f32.mrf.mxu0  ;;  %10757 = vmatpush3.msra.mxu1 %v9247_v30 }
0x166d   : > { %10759 = vmatmul.mubr.msk.f32.vlgmr.msra.gmra.mxu1 %vm3117_vm3, %v8111_v57  ;;  %10766 = vmatprep.subr.mxu1 %v10870_v49 }
0x166e   : > { %v10753_v33 = vpop.f32.mrf.mxu0  ;;  %10767 = vmatpush3.msra.mxu1 %v9254_v43  ;;  %10770 = vmatprep.mubr.msk.f32.mxu1 %vm10871_vm2, %v10870_v49 }
0x166f   : > { %10768 = vmatprep.subr.mxu1 %v10870_v49 }
0x1670   : > { %v8263_v35 = vpop.f32.mrf.mxu0  ;;  %10769 = vmatpush3.msra.mxu1 %v9253_v46 }
0x1671   : > { %10771 = vmatmul.mubr.msk.f32.vlgmr.msra.gmra.mxu1 %vm3117_vm3, %v8263_v35  ;;  %10778 = vmatprep.subr.mxu1 %v10870_v49 }
0x1672   : > { %v10765_v41 = vpop.f32.mrf.mxu0  ;;  %10779 = vmatpush3.msra.mxu1 %v9260_v45  ;;  %10782 = vmatprep.mubr.msk.f32.mxu1 %vm10871_vm2, %v10870_v49 }
0x1673   : > { %10780 = vmatprep.subr.mxu1 %v10870_v49 }
0x1674   : > { %v8415_v3 = vpop.f32.mrf.mxu0  ;;  %10781 = vmatpush3.msra.mxu1 %v9259_v48 }
0x1675   : > { %10783 = vmatmul.mubr.msk.f32.vlgmr.msra.gmra.mxu1 %vm3117_vm3, %v8415_v3  ;;  %10792 = vmatprep.subr.mxu1 %v10870_v49 }
0x1676   : > { %v10777_v58 = vpop.f32.mrf.mxu0  ;;  %10793 = vmatpush3.msra.mxu1 %v12603_v62  ;;  %10796 = vmatprep.mubr.msk.f32.mxu1 %vm10871_vm2, %v10870_v49 }
0x1677   : > { %10794 = vmatprep.subr.mxu1 %v10870_v49 }
0x1678   : > { %10795 = vmatpush3.msra.mxu1 %v12612_v50 }
0x1679   : > { %10804 = vmatprep.subr.mxu1 %v10870_v49 }
0x171d   : > { %v7579_v51 = vpop.f32.mrf.mxu1 }
0x171e   : > { %v7583_v11 = vadd.f32 %v7579_v51, %v12977_v10 }
0x171f   : > { %v10712_v53 = vpop.f32.mrf.mxu1 }
0x1721   : > { %v7731_v34 = vpop.f32.mrf.mxu1 }
0x1722   : > { %v7735_v62 = vadd.f32 %v7731_v34, %v7583_v11 }
0x1723   : > { %v10724_v5 = vpop.f32.mrf.mxu1 }
0x1725   : > { %v7883_v8 = vpop.f32.mrf.mxu1 }
0x1726   : > { %v7887_v15 = vadd.f32 %v7883_v8, %v7735_v62 }
0x1727   : > { %v10736_v37 = vpop.f32.mrf.mxu1 }
0x1729   : > { %v8035_v9 = vpop.f32.mrf.mxu1 }
0x172a   : > { %v8039_v17 = vadd.f32 %v8035_v9, %v7887_v15 }
0x172b   : > { %v10748_v4 = vpop.f32.mrf.mxu1 }
0x172d   : > { %v8187_v2 = vpop.f32.mrf.mxu1 }
0x172e   : > { %v8191_v44 = vadd.f32 %v8187_v2, %v8039_v17 }
0x172f   : > { %v10760_v47 = vpop.f32.mrf.mxu1 }
0x1731   : > { %v8339_v32 = vpop.f32.mrf.mxu1 }
0x1732   : > { %v8343_v13 = vadd.f32 %v8339_v32, %v8191_v44 }
0x1733   : > { %v10772_v50 = vpop.f32.mrf.mxu1 }
0x1735   : > { %v8491_v36 = vpop.f32.mrf.mxu1 }
0x1736   : > { %v8495_v25 = vadd.f32 %v8491_v36, %v8343_v13 }
0x1737   : > { %v10784_v40 = vpop.f32.mrf.mxu1 }
0x1738   : > { %v8497_v63 = vadd.f32 %v8496_v7, %v8495_v25 }
0x173a   : > { %v8499_v52 = vmul.f32 %v8497_v63, %v8497_v63  ;;  %10790 = vmatmul.mubr.msk.f32.vlgmr.msra.gmra.mxu0 %vm3117_vm3, %v8497_v63 }
0x173b   : > { %10800 = vmatpush3.msra.mxu0 %v12846_v6  ;;  %10801 = vmatprep.mubr.msk.f32.mxu0 %vm10871_vm2, %v10870_v49 }
0x173c   : > { %10797 = vmatmul.mubr.msk.f32.vlgmr.msra.gmra.mxu1 %vm3117_vm3, %v8499_v52 }
0x173d   : > { %10805 = vmatpush3.msra.mxu1 %v12846_v6  ;;  %10806 = vmatprep.mubr.msk.f32.mxu1 %vm10871_vm2, %v10870_v49 }
0x17fa   : > { %v8570_v18 = vpop.f32.mrf.mxu0 }
0x17fb   : > { %v8575_v23 = vmul.f32 0.5, %v8570_v18 }
0x17fc   : > { %v10791_v24 = vpop.f32.mrf.mxu0  ;;  %v8645_v26 = vpop.f32.mrf.mxu1 }
0x17fd   : > { %v8650_v28 = vmul.f32 %v8575_v23, %v8575_v23  ;;  %v8649_v1 = vmul.f32 0.5, %v8645_v26  ;;  %10802 = vmatmul.mubr.msk.f32.vlgmr.msra.gmra.mxu0 %vm3320_vm4, %v8575_v23 }
0x17fe   : > { %v10798_v60 = vpop.f32.mrf.mxu1 }
0x17ff   : > { %v8651_v54 = vsub.f32 %v8649_v1, %v8650_v28 }
0x1801   : > { %v8652_v21 = vmax.f32 %v8651_v54, 0.0 }
0x1803   : > { %10807 = vmatmul.mubr.msk.f32.vlgmr.msra.gmra.mxu1 %vm3320_vm4, %v8652_v21 }
0x18bd   : > { %v8722_v10 = vpop.f32.mrf.mxu0 }
0x18be   : > { %v8800_v49 = vsub.f32 %v8497_v63, %v8722_v10 }
0x18bf   : > { %v10803_v12 = vpop.f32.mrf.mxu0 }
0x18c3   : > { %v8795_v6 = vpop.f32.mrf.mxu1 }
0x18c4   : > { %v8796_v61 = vadd.f32 1e-05, %v8795_v6 }
0x18c5   : > { %v10808_v59 = vpop.f32.mrf.mxu1 }
0x18c6   : > { %10825 = vrsqrt.f32 %v8796_v61 }
0x18d3   : > { %v10826_v14 = vpop.eup %10825 }
0x18d4   : > { %v8801_v19 = vmul.f32 %v10826_v14, %v8800_v49 }
0x18d6   : > { %v8803_v38 = vmul.f32 %v8802_v16, %v8801_v19 }
0x18d8   : > { %v8805_v29 = vadd.f32 %v8804_v22, %v8803_v38 }
0x18da   : > { %v8806_v0 = vmax.f32 %v8805_v29, 0.0 }
0x18dc   : > { %8808 = vst.msk [vmem:[%s706_s27] sm:$0x1] %vm8807_vm7, %v8806_v0 }
0x18dd PF: > { %s33_s4 = sadd.s32 1, %s10868_s4  }
0x18de   : > { %p30_p4 = scmp.ge.s32.totalorder %s33_s4, 6  }
0x18e0   :  { %32 = sbr.rel (!%p30_p4) target bundleno = 9 (0x9), region = 206 }

</bundles_post_ra>
